<compile_context>
chip_gen: v7x
topology: tpu7x:2x2x1
jax: 0.10.0
libtpu: 0.0.40
codegen_flags: <defaults>
</compile_context>

<pallas_src>
import functools
import math

import jax
import jax.numpy as jnp
from jax.experimental import pallas as pl
from jax.experimental.pallas import tpu as pltpu

K = 3      # kernel size
PAD = 1    # spatial padding


def dwconv_kernel(xp_ref, w_ref, b_ref, o_ref, *, rt):
    """3x3 depthwise conv (stride 1, pad 1) + bias on one (Bt, H, W, CT) block.

    xp_ref : (Bt, H+2, W+2, CT)  zero-padded input block (padding done in HBM)
    w_ref  : (K*K, CT)           per-channel taps, row = ky*K + kx
    b_ref  : (1, CT)             bias
    o_ref  : (Bt, H, W, CT)      output block
    """
    Bt, H, W, CT = o_ref.shape

    w_all = w_ref[...]                                       # (9, CT), loaded once
    # Bias broadcast hoisted out of all loops (JAX does not CSE broadcast_in_dim).
    bias_tile = jnp.broadcast_to(
        b_ref[...].reshape(1, 1, 1, CT).astype(jnp.float32), (1, rt, W, CT))

    n_strips = H // rt                                       # rt divides H (wrapper)

    for bt in range(Bt):                                     # static, typically 1-2
        def strip(s, carry):
            r0 = s * rt
            acc = bias_tile                                  # (1, rt, W, CT) f32 in vregs
            for ky in range(K):
                for kx in range(K):
                    tap = xp_ref[pl.ds(bt, 1),
                                 pl.ds(r0 + ky, rt),
                                 pl.ds(kx, W), :]            # (1, rt, W, CT)
                    acc = acc + w_all[ky * K + kx] * tap
            o_ref[pl.ds(bt, 1), pl.ds(r0, rt), :, :] = acc.astype(o_ref.dtype)
            return carry

        jax.lax.fori_loop(0, n_strips, strip, 0, unroll=True)


def _largest_divisor_at_most(n, cap):
    cap = max(1, min(n, cap))
    for d in range(cap, 0, -1):
        if n % d == 0:
            return d
    return 1


def dwconv_forward_nhwc(x_nhwc, weight, bias):
    """x_nhwc: (B, H, W, C); weight: (C, K, K); bias: (C,) -> (B, H, W, C)."""
    B, H, W, C = x_nhwc.shape
    out_dtype = x_nhwc.dtype
    itemsize = jnp.dtype(x_nhwc.dtype).itemsize

    # Channel tile: 128 lanes when possible (lane-dense, unmasked stores).
    # Otherwise fall back to the whole C axis (correct, but lane-masked --
    # production C should be a multiple of 128; 768 is fine).
    CT = 128 if C % 128 == 0 else C

    # Row-strip size: largest divisor of H whose f32 accumulator
    # (rt * W * CT * 4 bytes) stays within ~64 KB (a fraction of the vreg file).
    rt = _largest_divisor_at_most(H, max(1, (64 * 1024) // max(1, W * CT * 4)))

    # Batch images per grid step: amortize ~0.35 us/step overhead for small images.
    per_image = (H + 2 * PAD) * (W + 2 * PAD) * CT * itemsize
    Bt = _largest_divisor_at_most(B, max(1, (1 << 20) // max(1, per_image)))

    # Zero halo produced once in HBM (single XLA pad, fuses with adjacent ops).
    xp = jnp.pad(x_nhwc, ((0, 0), (PAD, PAD), (PAD, PAD), (0, 0)))
    Hp, Wp = H + 2 * PAD, W + 2 * PAD

    w_flat = weight.reshape(C, K * K).T.astype(jnp.float32)     # (9, C)
    b2 = bias.reshape(1, C).astype(jnp.float32)

    step_bytes = (Bt * Hp * Wp * CT + Bt * H * W * CT) * itemsize \
                 + (K * K * CT + CT) * 4
    vmem_limit = int(min(32 << 20, max(8 << 20, 6 * step_bytes)))  # headroom, v7x-safe

    return pl.pallas_call(
        functools.partial(dwconv_kernel, rt=rt),
        out_shape=jax.ShapeDtypeStruct((B, H, W, C), out_dtype),
        grid=(B // Bt, C // CT),
        in_specs=[
            pl.BlockSpec((Bt, Hp, Wp, CT), lambda b, c: (b, 0, 0, c)),
            pl.BlockSpec((K * K, CT), lambda b, c: (0, c)),
            pl.BlockSpec((1, CT), lambda b, c: (0, c)),
        ],
        out_specs=pl.BlockSpec((Bt, H, W, CT), lambda b, c: (b, 0, 0, c)),
        compiler_params=pltpu.CompilerParams(
            dimension_semantics=("parallel", "parallel"),
            vmem_limit_bytes=vmem_limit),
    )(xp, w_flat, b2)


@jax.jit
def dwconv_forward(x_nchw, weight, bias):
    """NCHW interface matching the PyTorch module.

    The two transposes are the price of the PyTorch NCHW layout; NHWC models
    should call dwconv_forward_nhwc directly to avoid the extra HBM passes.
    """
    x = jnp.transpose(x_nchw, (0, 2, 3, 1))                     # NCHW -> NHWC
    out = dwconv_forward_nhwc(x, weight, bias)
    return jnp.transpose(out, (0, 3, 1, 2))                     # NHWC -> NCHW


if __name__ == "__main__":
    # Module default is dim=768; use a small multiple of 128 so the channel-grid
    # axis is exercised (2 channel blocks) while staying lane-dense.
    DIM, B, H, W = 256, 2, 16, 16
    key = jax.random.PRNGKey(0)
    kx_, kw_, kb_ = jax.random.split(key, 3)
    x = jax.random.normal(kx_, (B, DIM, H, W), jnp.float32)
    # PyTorch Conv2d default init bounds: 1/sqrt(fan_in), fan_in = K*K depthwise.
    bound = 1.0 / math.sqrt(K * K)
    weight = jax.random.uniform(kw_, (DIM, K, K), jnp.float32, -bound, bound)
    bias = jax.random.uniform(kb_, (DIM,), jnp.float32, -bound, bound)

    out = dwconv_forward(x, weight, bias)
    jax.block_until_ready(out)
    assert out.shape == x.shape and out.dtype == x.dtype

    # Pure-JAX depthwise-conv reference for numerical parity.
    ref = jax.lax.conv_general_dilated(
        x, weight[:, None, :, :], window_strides=(1, 1),
        padding=((PAD, PAD), (PAD, PAD)), feature_group_count=DIM,
        dimension_numbers=("NCHW", "OIHW", "NCHW")) + bias[None, :, None, None]
    assert jnp.max(jnp.abs(out - ref)) < 1e-4
    print("KERNEL_OK")
</pallas_src>

<mosaic_0001>
module attributes {stable_mosaic.version = 11 : i64} {
  func.func @dwconv_kernel(%arg0: i32, %arg1: i32, %arg2: memref<2x18x18x128xf32, #tpu.memory_space<vmem>>, %arg3: memref<9x128xf32, #tpu.memory_space<vmem>>, %arg4: memref<1x128xf32, #tpu.memory_space<vmem>>, %arg5: memref<2x16x16x128xf32, #tpu.memory_space<vmem>>) attributes {dimension_semantics = [#tpu.dimension_semantics<parallel>, #tpu.dimension_semantics<parallel>], iteration_bounds = array<i64: 1, 2>, scalar_prefetch = 0 : i64, scratch_operands = 0 : i64, tpu.core_type = #tpu.core_type<tc>, window_params = [{transform_indices = @transform_0, window_bounds = array<i64: 2, 18, 18, 128>}, {transform_indices = @transform_1, window_bounds = array<i64: 9, 128>}, {transform_indices = @transform_2, window_bounds = array<i64: 1, 128>}, {transform_indices = @transform_3, window_bounds = array<i64: 2, 16, 16, 128>}]} {
    %c0 = arith.constant 0 : index
    %c0_0 = arith.constant 0 : index
    %0 = vector.load %arg3[%c0, %c0_0] : memref<9x128xf32, #tpu.memory_space<vmem>>, vector<9x128xf32>
    %c0_1 = arith.constant 0 : index
    %c0_2 = arith.constant 0 : index
    %1 = vector.load %arg4[%c0_1, %c0_2] : memref<1x128xf32, #tpu.memory_space<vmem>>, vector<1x128xf32>
    %2 = vector.shape_cast %1 : vector<1x128xf32> to vector<1x1x1x128xf32>
    %3 = vector.shape_cast %2 : vector<1x1x1x128xf32> to vector<1x1x1x128xf32>
    %4 = vector.broadcast %3 : vector<1x1x1x128xf32> to vector<1x8x16x128xf32>
    %c0_i32 = arith.constant 0 : i32
    %c8_i32 = arith.constant 8 : i32
    %5 = arith.muli %c0_i32, %c8_i32 : i32
    %c0_i32_3 = arith.constant 0 : i32
    %6 = arith.addi %5, %c0_i32_3 : i32
    %c0_4 = arith.constant 0 : index
    %7 = arith.index_cast %6 : i32 to index
    %c0_5 = arith.constant 0 : index
    %c0_6 = arith.constant 0 : index
    %8 = vector.load %arg2[%c0_4, %7, %c0_5, %c0_6] : memref<2x18x18x128xf32, #tpu.memory_space<vmem>>, vector<1x8x16x128xf32>
    %9 = vector.extract_strided_slice %0 {offsets = [0, 0], sizes = [1, 128], strides = [1, 1]} : vector<9x128xf32> to vector<1x128xf32>
    %10 = vector.shape_cast %9 : vector<1x128xf32> to vector<128xf32>
    %11 = vector.shape_cast %10 : vector<128xf32> to vector<1x1x1x128xf32>
    %12 = vector.broadcast %11 : vector<1x1x1x128xf32> to vector<1x8x16x128xf32>
    %13 = arith.mulf %12, %8 : vector<1x8x16x128xf32>
    %14 = arith.addf %4, %13 : vector<1x8x16x128xf32>
    %c0_i32_7 = arith.constant 0 : i32
    %15 = arith.addi %5, %c0_i32_7 : i32
    %c0_8 = arith.constant 0 : index
    %16 = arith.index_cast %15 : i32 to index
    %c1 = arith.constant 1 : index
    %c0_9 = arith.constant 0 : index
    %17 = vector.load %arg2[%c0_8, %16, %c1, %c0_9] : memref<2x18x18x128xf32, #tpu.memory_space<vmem>>, vector<1x8x16x128xf32>
    %18 = vector.extract_strided_slice %0 {offsets = [1, 0], sizes = [1, 128], strides = [1, 1]} : vector<9x128xf32> to vector<1x128xf32>
    %19 = vector.shape_cast %18 : vector<1x128xf32> to vector<128xf32>
    %20 = vector.shape_cast %19 : vector<128xf32> to vector<1x1x1x128xf32>
    %21 = vector.broadcast %20 : vector<1x1x1x128xf32> to vector<1x8x16x128xf32>
    %22 = arith.mulf %21, %17 : vector<1x8x16x128xf32>
    %23 = arith.addf %14, %22 : vector<1x8x16x128xf32>
    %c0_i32_10 = arith.constant 0 : i32
    %24 = arith.addi %5, %c0_i32_10 : i32
    %c0_11 = arith.constant 0 : index
    %25 = arith.index_cast %24 : i32 to index
    %c2 = arith.constant 2 : index
    %c0_12 = arith.constant 0 : index
    %26 = vector.load %arg2[%c0_11, %25, %c2, %c0_12] : memref<2x18x18x128xf32, #tpu.memory_space<vmem>>, vector<1x8x16x128xf32>
    %27 = vector.extract_strided_slice %0 {offsets = [2, 0], sizes = [1, 128], strides = [1, 1]} : vector<9x128xf32> to vector<1x128xf32>
    %28 = vector.shape_cast %27 : vector<1x128xf32> to vector<128xf32>
    %29 = vector.shape_cast %28 : vector<128xf32> to vector<1x1x1x128xf32>
    %30 = vector.broadcast %29 : vector<1x1x1x128xf32> to vector<1x8x16x128xf32>
    %31 = arith.mulf %30, %26 : vector<1x8x16x128xf32>
    %32 = arith.addf %23, %31 : vector<1x8x16x128xf32>
    %c1_i32 = arith.constant 1 : i32
    %33 = arith.addi %5, %c1_i32 : i32
    %c0_13 = arith.constant 0 : index
    %34 = arith.index_cast %33 : i32 to index
    %c0_14 = arith.constant 0 : index
    %c0_15 = arith.constant 0 : index
    %35 = vector.load %arg2[%c0_13, %34, %c0_14, %c0_15] : memref<2x18x18x128xf32, #tpu.memory_space<vmem>>, vector<1x8x16x128xf32>
    %36 = vector.extract_strided_slice %0 {offsets = [3, 0], sizes = [1, 128], strides = [1, 1]} : vector<9x128xf32> to vector<1x128xf32>
    %37 = vector.shape_cast %36 : vector<1x128xf32> to vector<128xf32>
    %38 = vector.shape_cast %37 : vector<128xf32> to vector<1x1x1x128xf32>
    %39 = vector.broadcast %38 : vector<1x1x1x128xf32> to vector<1x8x16x128xf32>
    %40 = arith.mulf %39, %35 : vector<1x8x16x128xf32>
    %41 = arith.addf %32, %40 : vector<1x8x16x128xf32>
    %c1_i32_16 = arith.constant 1 : i32
    %42 = arith.addi %5, %c1_i32_16 : i32
    %c0_17 = arith.constant 0 : index
    %43 = arith.index_cast %42 : i32 to index
    %c1_18 = arith.constant 1 : index
    %c0_19 = arith.constant 0 : index
    %44 = vector.load %arg2[%c0_17, %43, %c1_18, %c0_19] : memref<2x18x18x128xf32, #tpu.memory_space<vmem>>, vector<1x8x16x128xf32>
    %45 = vector.extract_strided_slice %0 {offsets = [4, 0], sizes = [1, 128], strides = [1, 1]} : vector<9x128xf32> to vector<1x128xf32>
    %46 = vector.shape_cast %45 : vector<1x128xf32> to vector<128xf32>
    %47 = vector.shape_cast %46 : vector<128xf32> to vector<1x1x1x128xf32>
    %48 = vector.broadcast %47 : vector<1x1x1x128xf32> to vector<1x8x16x128xf32>
    %49 = arith.mulf %48, %44 : vector<1x8x16x128xf32>
    %50 = arith.addf %41, %49 : vector<1x8x16x128xf32>
    %c1_i32_20 = arith.constant 1 : i32
    %51 = arith.addi %5, %c1_i32_20 : i32
    %c0_21 = arith.constant 0 : index
    %52 = arith.index_cast %51 : i32 to index
    %c2_22 = arith.constant 2 : index
    %c0_23 = arith.constant 0 : index
    %53 = vector.load %arg2[%c0_21, %52, %c2_22, %c0_23] : memref<2x18x18x128xf32, #tpu.memory_space<vmem>>, vector<1x8x16x128xf32>
    %54 = vector.extract_strided_slice %0 {offsets = [5, 0], sizes = [1, 128], strides = [1, 1]} : vector<9x128xf32> to vector<1x128xf32>
    %55 = vector.shape_cast %54 : vector<1x128xf32> to vector<128xf32>
    %56 = vector.shape_cast %55 : vector<128xf32> to vector<1x1x1x128xf32>
    %57 = vector.broadcast %56 : vector<1x1x1x128xf32> to vector<1x8x16x128xf32>
    %58 = arith.mulf %57, %53 : vector<1x8x16x128xf32>
    %59 = arith.addf %50, %58 : vector<1x8x16x128xf32>
    %c2_i32 = arith.constant 2 : i32
    %60 = arith.addi %5, %c2_i32 : i32
    %c0_24 = arith.constant 0 : index
    %61 = arith.index_cast %60 : i32 to index
    %c0_25 = arith.constant 0 : index
    %c0_26 = arith.constant 0 : index
    %62 = vector.load %arg2[%c0_24, %61, %c0_25, %c0_26] : memref<2x18x18x128xf32, #tpu.memory_space<vmem>>, vector<1x8x16x128xf32>
    %63 = vector.extract_strided_slice %0 {offsets = [6, 0], sizes = [1, 128], strides = [1, 1]} : vector<9x128xf32> to vector<1x128xf32>
    %64 = vector.shape_cast %63 : vector<1x128xf32> to vector<128xf32>
    %65 = vector.shape_cast %64 : vector<128xf32> to vector<1x1x1x128xf32>
    %66 = vector.broadcast %65 : vector<1x1x1x128xf32> to vector<1x8x16x128xf32>
    %67 = arith.mulf %66, %62 : vector<1x8x16x128xf32>
    %68 = arith.addf %59, %67 : vector<1x8x16x128xf32>
    %c2_i32_27 = arith.constant 2 : i32
    %69 = arith.addi %5, %c2_i32_27 : i32
    %c0_28 = arith.constant 0 : index
    %70 = arith.index_cast %69 : i32 to index
    %c1_29 = arith.constant 1 : index
    %c0_30 = arith.constant 0 : index
    %71 = vector.load %arg2[%c0_28, %70, %c1_29, %c0_30] : memref<2x18x18x128xf32, #tpu.memory_space<vmem>>, vector<1x8x16x128xf32>
    %72 = vector.extract_strided_slice %0 {offsets = [7, 0], sizes = [1, 128], strides = [1, 1]} : vector<9x128xf32> to vector<1x128xf32>
    %73 = vector.shape_cast %72 : vector<1x128xf32> to vector<128xf32>
    %74 = vector.shape_cast %73 : vector<128xf32> to vector<1x1x1x128xf32>
    %75 = vector.broadcast %74 : vector<1x1x1x128xf32> to vector<1x8x16x128xf32>
    %76 = arith.mulf %75, %71 : vector<1x8x16x128xf32>
    %77 = arith.addf %68, %76 : vector<1x8x16x128xf32>
    %c2_i32_31 = arith.constant 2 : i32
    %78 = arith.addi %5, %c2_i32_31 : i32
    %c0_32 = arith.constant 0 : index
    %79 = arith.index_cast %78 : i32 to index
    %c2_33 = arith.constant 2 : index
    %c0_34 = arith.constant 0 : index
    %80 = vector.load %arg2[%c0_32, %79, %c2_33, %c0_34] : memref<2x18x18x128xf32, #tpu.memory_space<vmem>>, vector<1x8x16x128xf32>
    %81 = vector.extract_strided_slice %0 {offsets = [8, 0], sizes = [1, 128], strides = [1, 1]} : vector<9x128xf32> to vector<1x128xf32>
    %82 = vector.shape_cast %81 : vector<1x128xf32> to vector<128xf32>
    %83 = vector.shape_cast %82 : vector<128xf32> to vector<1x1x1x128xf32>
    %84 = vector.broadcast %83 : vector<1x1x1x128xf32> to vector<1x8x16x128xf32>
    %85 = arith.mulf %84, %80 : vector<1x8x16x128xf32>
    %86 = arith.addf %77, %85 : vector<1x8x16x128xf32>
    %c0_35 = arith.constant 0 : index
    %87 = arith.index_cast %5 : i32 to index
    %c0_36 = arith.constant 0 : index
    %c0_37 = arith.constant 0 : index
    %88 = vector.load %arg5[%c0_35, %87, %c0_36, %c0_37] : memref<2x16x16x128xf32, #tpu.memory_space<vmem>>, vector<1x8x16x128xf32>
    tpu.vector_store %arg5[%c0_35, %87, %c0_36, %c0_37], %86 {strides = array<i32>} : memref<2x16x16x128xf32, #tpu.memory_space<vmem>>, vector<1x8x16x128xf32>,
    %c1_i32_38 = arith.constant 1 : i32
    %c8_i32_39 = arith.constant 8 : i32
    %89 = arith.muli %c1_i32_38, %c8_i32_39 : i32
    %c0_i32_40 = arith.constant 0 : i32
    %90 = arith.addi %89, %c0_i32_40 : i32
    %c0_41 = arith.constant 0 : index
    %91 = arith.index_cast %90 : i32 to index
    %c0_42 = arith.constant 0 : index
    %c0_43 = arith.constant 0 : index
    %92 = vector.load %arg2[%c0_41, %91, %c0_42, %c0_43] : memref<2x18x18x128xf32, #tpu.memory_space<vmem>>, vector<1x8x16x128xf32>
    %93 = vector.extract_strided_slice %0 {offsets = [0, 0], sizes = [1, 128], strides = [1, 1]} : vector<9x128xf32> to vector<1x128xf32>
    %94 = vector.shape_cast %93 : vector<1x128xf32> to vector<128xf32>
    %95 = vector.shape_cast %94 : vector<128xf32> to vector<1x1x1x128xf32>
    %96 = vector.broadcast %95 : vector<1x1x1x128xf32> to vector<1x8x16x128xf32>
    %97 = arith.mulf %96, %92 : vector<1x8x16x128xf32>
    %98 = arith.addf %4, %97 : vector<1x8x16x128xf32>
    %c0_i32_44 = arith.constant 0 : i32
    %99 = arith.addi %89, %c0_i32_44 : i32
    %c0_45 = arith.constant 0 : index
    %100 = arith.index_cast %99 : i32 to index
    %c1_46 = arith.constant 1 : index
    %c0_47 = arith.constant 0 : index
    %101 = vector.load %arg2[%c0_45, %100, %c1_46, %c0_47] : memref<2x18x18x128xf32, #tpu.memory_space<vmem>>, vector<1x8x16x128xf32>
    %102 = vector.extract_strided_slice %0 {offsets = [1, 0], sizes = [1, 128], strides = [1, 1]} : vector<9x128xf32> to vector<1x128xf32>
    %103 = vector.shape_cast %102 : vector<1x128xf32> to vector<128xf32>
    %104 = vector.shape_cast %103 : vector<128xf32> to vector<1x1x1x128xf32>
    %105 = vector.broadcast %104 : vector<1x1x1x128xf32> to vector<1x8x16x128xf32>
    %106 = arith.mulf %105, %101 : vector<1x8x16x128xf32>
    %107 = arith.addf %98, %106 : vector<1x8x16x128xf32>
    %c0_i32_48 = arith.constant 0 : i32
    %108 = arith.addi %89, %c0_i32_48 : i32
    %c0_49 = arith.constant 0 : index
    %109 = arith.index_cast %108 : i32 to index
    %c2_50 = arith.constant 2 : index
    %c0_51 = arith.constant 0 : index
    %110 = vector.load %arg2[%c0_49, %109, %c2_50, %c0_51] : memref<2x18x18x128xf32, #tpu.memory_space<vmem>>, vector<1x8x16x128xf32>
    %111 = vector.extract_strided_slice %0 {offsets = [2, 0], sizes = [1, 128], strides = [1, 1]} : vector<9x128xf32> to vector<1x128xf32>
    %112 = vector.shape_cast %111 : vector<1x128xf32> to vector<128xf32>
    %113 = vector.shape_cast %112 : vector<128xf32> to vector<1x1x1x128xf32>
    %114 = vector.broadcast %113 : vector<1x1x1x128xf32> to vector<1x8x16x128xf32>
    %115 = arith.mulf %114, %110 : vector<1x8x16x128xf32>
    %116 = arith.addf %107, %115 : vector<1x8x16x128xf32>
    %c1_i32_52 = arith.constant 1 : i32
    %117 = arith.addi %89, %c1_i32_52 : i32
    %c0_53 = arith.constant 0 : index
    %118 = arith.index_cast %117 : i32 to index
    %c0_54 = arith.constant 0 : index
    %c0_55 = arith.constant 0 : index
    %119 = vector.load %arg2[%c0_53, %118, %c0_54, %c0_55] : memref<2x18x18x128xf32, #tpu.memory_space<vmem>>, vector<1x8x16x128xf32>
    %120 = vector.extract_strided_slice %0 {offsets = [3, 0], sizes = [1, 128], strides = [1, 1]} : vector<9x128xf32> to vector<1x128xf32>
    %121 = vector.shape_cast %120 : vector<1x128xf32> to vector<128xf32>
    %122 = vector.shape_cast %121 : vector<128xf32> to vector<1x1x1x128xf32>
    %123 = vector.broadcast %122 : vector<1x1x1x128xf32> to vector<1x8x16x128xf32>
    %124 = arith.mulf %123, %119 : vector<1x8x16x128xf32>
    %125 = arith.addf %116, %124 : vector<1x8x16x128xf32>
    %c1_i32_56 = arith.constant 1 : i32
    %126 = arith.addi %89, %c1_i32_56 : i32
    %c0_57 = arith.constant 0 : index
    %127 = arith.index_cast %126 : i32 to index
    %c1_58 = arith.constant 1 : index
    %c0_59 = arith.constant 0 : index
    %128 = vector.load %arg2[%c0_57, %127, %c1_58, %c0_59] : memref<2x18x18x128xf32, #tpu.memory_space<vmem>>, vector<1x8x16x128xf32>
    %129 = vector.extract_strided_slice %0 {offsets = [4, 0], sizes = [1, 128], strides = [1, 1]} : vector<9x128xf32> to vector<1x128xf32>
    %130 = vector.shape_cast %129 : vector<1x128xf32> to vector<128xf32>
    %131 = vector.shape_cast %130 : vector<128xf32> to vector<1x1x1x128xf32>
    %132 = vector.broadcast %131 : vector<1x1x1x128xf32> to vector<1x8x16x128xf32>
    %133 = arith.mulf %132, %128 : vector<1x8x16x128xf32>
    %134 = arith.addf %125, %133 : vector<1x8x16x128xf32>
    %c1_i32_60 = arith.constant 1 : i32
    %135 = arith.addi %89, %c1_i32_60 : i32
    %c0_61 = arith.constant 0 : index
    %136 = arith.index_cast %135 : i32 to index
    %c2_62 = arith.constant 2 : index
    %c0_63 = arith.constant 0 : index
    %137 = vector.load %arg2[%c0_61, %136, %c2_62, %c0_63] : memref<2x18x18x128xf32, #tpu.memory_space<vmem>>, vector<1x8x16x128xf32>
    %138 = vector.extract_strided_slice %0 {offsets = [5, 0], sizes = [1, 128], strides = [1, 1]} : vector<9x128xf32> to vector<1x128xf32>
    %139 = vector.shape_cast %138 : vector<1x128xf32> to vector<128xf32>
    %140 = vector.shape_cast %139 : vector<128xf32> to vector<1x1x1x128xf32>
    %141 = vector.broadcast %140 : vector<1x1x1x128xf32> to vector<1x8x16x128xf32>
    %142 = arith.mulf %141, %137 : vector<1x8x16x128xf32>
    %143 = arith.addf %134, %142 : vector<1x8x16x128xf32>
    %c2_i32_64 = arith.constant 2 : i32
    %144 = arith.addi %89, %c2_i32_64 : i32
    %c0_65 = arith.constant 0 : index
    %145 = arith.index_cast %144 : i32 to index
    %c0_66 = arith.constant 0 : index
    %c0_67 = arith.constant 0 : index
    %146 = vector.load %arg2[%c0_65, %145, %c0_66, %c0_67] : memref<2x18x18x128xf32, #tpu.memory_space<vmem>>, vector<1x8x16x128xf32>
    %147 = vector.extract_strided_slice %0 {offsets = [6, 0], sizes = [1, 128], strides = [1, 1]} : vector<9x128xf32> to vector<1x128xf32>
    %148 = vector.shape_cast %147 : vector<1x128xf32> to vector<128xf32>
    %149 = vector.shape_cast %148 : vector<128xf32> to vector<1x1x1x128xf32>
    %150 = vector.broadcast %149 : vector<1x1x1x128xf32> to vector<1x8x16x128xf32>
    %151 = arith.mulf %150, %146 : vector<1x8x16x128xf32>
    %152 = arith.addf %143, %151 : vector<1x8x16x128xf32>
    %c2_i32_68 = arith.constant 2 : i32
    %153 = arith.addi %89, %c2_i32_68 : i32
    %c0_69 = arith.constant 0 : index
    %154 = arith.index_cast %153 : i32 to index
    %c1_70 = arith.constant 1 : index
    %c0_71 = arith.constant 0 : index
    %155 = vector.load %arg2[%c0_69, %154, %c1_70, %c0_71] : memref<2x18x18x128xf32, #tpu.memory_space<vmem>>, vector<1x8x16x128xf32>
    %156 = vector.extract_strided_slice %0 {offsets = [7, 0], sizes = [1, 128], strides = [1, 1]} : vector<9x128xf32> to vector<1x128xf32>
    %157 = vector.shape_cast %156 : vector<1x128xf32> to vector<128xf32>
    %158 = vector.shape_cast %157 : vector<128xf32> to vector<1x1x1x128xf32>
    %159 = vector.broadcast %158 : vector<1x1x1x128xf32> to vector<1x8x16x128xf32>
    %160 = arith.mulf %159, %155 : vector<1x8x16x128xf32>
    %161 = arith.addf %152, %160 : vector<1x8x16x128xf32>
    %c2_i32_72 = arith.constant 2 : i32
    %162 = arith.addi %89, %c2_i32_72 : i32
    %c0_73 = arith.constant 0 : index
    %163 = arith.index_cast %162 : i32 to index
    %c2_74 = arith.constant 2 : index
    %c0_75 = arith.constant 0 : index
    %164 = vector.load %arg2[%c0_73, %163, %c2_74, %c0_75] : memref<2x18x18x128xf32, #tpu.memory_space<vmem>>, vector<1x8x16x128xf32>
    %165 = vector.extract_strided_slice %0 {offsets = [8, 0], sizes = [1, 128], strides = [1, 1]} : vector<9x128xf32> to vector<1x128xf32>
    %166 = vector.shape_cast %165 : vector<1x128xf32> to vector<128xf32>
    %167 = vector.shape_cast %166 : vector<128xf32> to vector<1x1x1x128xf32>
    %168 = vector.broadcast %167 : vector<1x1x1x128xf32> to vector<1x8x16x128xf32>
    %169 = arith.mulf %168, %164 : vector<1x8x16x128xf32>
    %170 = arith.addf %161, %169 : vector<1x8x16x128xf32>
    %c0_76 = arith.constant 0 : index
    %171 = arith.index_cast %89 : i32 to index
    %c0_77 = arith.constant 0 : index
    %c0_78 = arith.constant 0 : index
    %172 = vector.load %arg5[%c0_76, %171, %c0_77, %c0_78] : memref<2x16x16x128xf32, #tpu.memory_space<vmem>>, vector<1x8x16x128xf32>
    tpu.vector_store %arg5[%c0_76, %171, %c0_77, %c0_78], %170 {strides = array<i32>} : memref<2x16x16x128xf32, #tpu.memory_space<vmem>>, vector<1x8x16x128xf32>,
    %c2_i32_79 = arith.constant 2 : i32
    %c0_i32_80 = arith.constant 0 : i32
    %c8_i32_81 = arith.constant 8 : i32
    %173 = arith.muli %c0_i32_80, %c8_i32_81 : i32
    %c0_i32_82 = arith.constant 0 : i32
    %174 = arith.addi %173, %c0_i32_82 : i32
    %c1_83 = arith.constant 1 : index
    %175 = arith.index_cast %174 : i32 to index
    %c0_84 = arith.constant 0 : index
    %c0_85 = arith.constant 0 : index
    %176 = vector.load %arg2[%c1_83, %175, %c0_84, %c0_85] : memref<2x18x18x128xf32, #tpu.memory_space<vmem>>, vector<1x8x16x128xf32>
    %177 = vector.extract_strided_slice %0 {offsets = [0, 0], sizes = [1, 128], strides = [1, 1]} : vector<9x128xf32> to vector<1x128xf32>
    %178 = vector.shape_cast %177 : vector<1x128xf32> to vector<128xf32>
    %179 = vector.shape_cast %178 : vector<128xf32> to vector<1x1x1x128xf32>
    %180 = vector.broadcast %179 : vector<1x1x1x128xf32> to vector<1x8x16x128xf32>
    %181 = arith.mulf %180, %176 : vector<1x8x16x128xf32>
    %182 = arith.addf %4, %181 : vector<1x8x16x128xf32>
    %c0_i32_86 = arith.constant 0 : i32
    %183 = arith.addi %173, %c0_i32_86 : i32
    %c1_87 = arith.constant 1 : index
    %184 = arith.index_cast %183 : i32 to index
    %c1_88 = arith.constant 1 : index
    %c0_89 = arith.constant 0 : index
    %185 = vector.load %arg2[%c1_87, %184, %c1_88, %c0_89] : memref<2x18x18x128xf32, #tpu.memory_space<vmem>>, vector<1x8x16x128xf32>
    %186 = vector.extract_strided_slice %0 {offsets = [1, 0], sizes = [1, 128], strides = [1, 1]} : vector<9x128xf32> to vector<1x128xf32>
    %187 = vector.shape_cast %186 : vector<1x128xf32> to vector<128xf32>
    %188 = vector.shape_cast %187 : vector<128xf32> to vector<1x1x1x128xf32>
    %189 = vector.broadcast %188 : vector<1x1x1x128xf32> to vector<1x8x16x128xf32>
    %190 = arith.mulf %189, %185 : vector<1x8x16x128xf32>
    %191 = arith.addf %182, %190 : vector<1x8x16x128xf32>
    %c0_i32_90 = arith.constant 0 : i32
    %192 = arith.addi %173, %c0_i32_90 : i32
    %c1_91 = arith.constant 1 : index
    %193 = arith.index_cast %192 : i32 to index
    %c2_92 = arith.constant 2 : index
    %c0_93 = arith.constant 0 : index
    %194 = vector.load %arg2[%c1_91, %193, %c2_92, %c0_93] : memref<2x18x18x128xf32, #tpu.memory_space<vmem>>, vector<1x8x16x128xf32>
    %195 = vector.extract_strided_slice %0 {offsets = [2, 0], sizes = [1, 128], strides = [1, 1]} : vector<9x128xf32> to vector<1x128xf32>
    %196 = vector.shape_cast %195 : vector<1x128xf32> to vector<128xf32>
    %197 = vector.shape_cast %196 : vector<128xf32> to vector<1x1x1x128xf32>
    %198 = vector.broadcast %197 : vector<1x1x1x128xf32> to vector<1x8x16x128xf32>
    %199 = arith.mulf %198, %194 : vector<1x8x16x128xf32>
    %200 = arith.addf %191, %199 : vector<1x8x16x128xf32>
    %c1_i32_94 = arith.constant 1 : i32
    %201 = arith.addi %173, %c1_i32_94 : i32
    %c1_95 = arith.constant 1 : index
    %202 = arith.index_cast %201 : i32 to index
    %c0_96 = arith.constant 0 : index
    %c0_97 = arith.constant 0 : index
    %203 = vector.load %arg2[%c1_95, %202, %c0_96, %c0_97] : memref<2x18x18x128xf32, #tpu.memory_space<vmem>>, vector<1x8x16x128xf32>
    %204 = vector.extract_strided_slice %0 {offsets = [3, 0], sizes = [1, 128], strides = [1, 1]} : vector<9x128xf32> to vector<1x128xf32>
    %205 = vector.shape_cast %204 : vector<1x128xf32> to vector<128xf32>
    %206 = vector.shape_cast %205 : vector<128xf32> to vector<1x1x1x128xf32>
    %207 = vector.broadcast %206 : vector<1x1x1x128xf32> to vector<1x8x16x128xf32>
    %208 = arith.mulf %207, %203 : vector<1x8x16x128xf32>
    %209 = arith.addf %200, %208 : vector<1x8x16x128xf32>
    %c1_i32_98 = arith.constant 1 : i32
    %210 = arith.addi %173, %c1_i32_98 : i32
    %c1_99 = arith.constant 1 : index
    %211 = arith.index_cast %210 : i32 to index
    %c1_100 = arith.constant 1 : index
    %c0_101 = arith.constant 0 : index
    %212 = vector.load %arg2[%c1_99, %211, %c1_100, %c0_101] : memref<2x18x18x128xf32, #tpu.memory_space<vmem>>, vector<1x8x16x128xf32>
    %213 = vector.extract_strided_slice %0 {offsets = [4, 0], sizes = [1, 128], strides = [1, 1]} : vector<9x128xf32> to vector<1x128xf32>
    %214 = vector.shape_cast %213 : vector<1x128xf32> to vector<128xf32>
    %215 = vector.shape_cast %214 : vector<128xf32> to vector<1x1x1x128xf32>
    %216 = vector.broadcast %215 : vector<1x1x1x128xf32> to vector<1x8x16x128xf32>
    %217 = arith.mulf %216, %212 : vector<1x8x16x128xf32>
    %218 = arith.addf %209, %217 : vector<1x8x16x128xf32>
    %c1_i32_102 = arith.constant 1 : i32
    %219 = arith.addi %173, %c1_i32_102 : i32
    %c1_103 = arith.constant 1 : index
    %220 = arith.index_cast %219 : i32 to index
    %c2_104 = arith.constant 2 : index
    %c0_105 = arith.constant 0 : index
    %221 = vector.load %arg2[%c1_103, %220, %c2_104, %c0_105] : memref<2x18x18x128xf32, #tpu.memory_space<vmem>>, vector<1x8x16x128xf32>
    %222 = vector.extract_strided_slice %0 {offsets = [5, 0], sizes = [1, 128], strides = [1, 1]} : vector<9x128xf32> to vector<1x128xf32>
    %223 = vector.shape_cast %222 : vector<1x128xf32> to vector<128xf32>
    %224 = vector.shape_cast %223 : vector<128xf32> to vector<1x1x1x128xf32>
    %225 = vector.broadcast %224 : vector<1x1x1x128xf32> to vector<1x8x16x128xf32>
    %226 = arith.mulf %225, %221 : vector<1x8x16x128xf32>
    %227 = arith.addf %218, %226 : vector<1x8x16x128xf32>
    %c2_i32_106 = arith.constant 2 : i32
    %228 = arith.addi %173, %c2_i32_106 : i32
    %c1_107 = arith.constant 1 : index
    %229 = arith.index_cast %228 : i32 to index
    %c0_108 = arith.constant 0 : index
    %c0_109 = arith.constant 0 : index
    %230 = vector.load %arg2[%c1_107, %229, %c0_108, %c0_109] : memref<2x18x18x128xf32, #tpu.memory_space<vmem>>, vector<1x8x16x128xf32>
    %231 = vector.extract_strided_slice %0 {offsets = [6, 0], sizes = [1, 128], strides = [1, 1]} : vector<9x128xf32> to vector<1x128xf32>
    %232 = vector.shape_cast %231 : vector<1x128xf32> to vector<128xf32>
    %233 = vector.shape_cast %232 : vector<128xf32> to vector<1x1x1x128xf32>
    %234 = vector.broadcast %233 : vector<1x1x1x128xf32> to vector<1x8x16x128xf32>
    %235 = arith.mulf %234, %230 : vector<1x8x16x128xf32>
    %236 = arith.addf %227, %235 : vector<1x8x16x128xf32>
    %c2_i32_110 = arith.constant 2 : i32
    %237 = arith.addi %173, %c2_i32_110 : i32
    %c1_111 = arith.constant 1 : index
    %238 = arith.index_cast %237 : i32 to index
    %c1_112 = arith.constant 1 : index
    %c0_113 = arith.constant 0 : index
    %239 = vector.load %arg2[%c1_111, %238, %c1_112, %c0_113] : memref<2x18x18x128xf32, #tpu.memory_space<vmem>>, vector<1x8x16x128xf32>
    %240 = vector.extract_strided_slice %0 {offsets = [7, 0], sizes = [1, 128], strides = [1, 1]} : vector<9x128xf32> to vector<1x128xf32>
    %241 = vector.shape_cast %240 : vector<1x128xf32> to vector<128xf32>
    %242 = vector.shape_cast %241 : vector<128xf32> to vector<1x1x1x128xf32>
    %243 = vector.broadcast %242 : vector<1x1x1x128xf32> to vector<1x8x16x128xf32>
    %244 = arith.mulf %243, %239 : vector<1x8x16x128xf32>
    %245 = arith.addf %236, %244 : vector<1x8x16x128xf32>
    %c2_i32_114 = arith.constant 2 : i32
    %246 = arith.addi %173, %c2_i32_114 : i32
    %c1_115 = arith.constant 1 : index
    %247 = arith.index_cast %246 : i32 to index
    %c2_116 = arith.constant 2 : index
    %c0_117 = arith.constant 0 : index
    %248 = vector.load %arg2[%c1_115, %247, %c2_116, %c0_117] : memref<2x18x18x128xf32, #tpu.memory_space<vmem>>, vector<1x8x16x128xf32>
    %249 = vector.extract_strided_slice %0 {offsets = [8, 0], sizes = [1, 128], strides = [1, 1]} : vector<9x128xf32> to vector<1x128xf32>
    %250 = vector.shape_cast %249 : vector<1x128xf32> to vector<128xf32>
    %251 = vector.shape_cast %250 : vector<128xf32> to vector<1x1x1x128xf32>
    %252 = vector.broadcast %251 : vector<1x1x1x128xf32> to vector<1x8x16x128xf32>
    %253 = arith.mulf %252, %248 : vector<1x8x16x128xf32>
    %254 = arith.addf %245, %253 : vector<1x8x16x128xf32>
    %c1_118 = arith.constant 1 : index
    %255 = arith.index_cast %173 : i32 to index
    %c0_119 = arith.constant 0 : index
    %c0_120 = arith.constant 0 : index
    %256 = vector.load %arg5[%c1_118, %255, %c0_119, %c0_120] : memref<2x16x16x128xf32, #tpu.memory_space<vmem>>, vector<1x8x16x128xf32>
    tpu.vector_store %arg5[%c1_118, %255, %c0_119, %c0_120], %254 {strides = array<i32>} : memref<2x16x16x128xf32, #tpu.memory_space<vmem>>, vector<1x8x16x128xf32>,
    %c1_i32_121 = arith.constant 1 : i32
    %c8_i32_122 = arith.constant 8 : i32
    %257 = arith.muli %c1_i32_121, %c8_i32_122 : i32
    %c0_i32_123 = arith.constant 0 : i32
    %258 = arith.addi %257, %c0_i32_123 : i32
    %c1_124 = arith.constant 1 : index
    %259 = arith.index_cast %258 : i32 to index
    %c0_125 = arith.constant 0 : index
    %c0_126 = arith.constant 0 : index
    %260 = vector.load %arg2[%c1_124, %259, %c0_125, %c0_126] : memref<2x18x18x128xf32, #tpu.memory_space<vmem>>, vector<1x8x16x128xf32>
    %261 = vector.extract_strided_slice %0 {offsets = [0, 0], sizes = [1, 128], strides = [1, 1]} : vector<9x128xf32> to vector<1x128xf32>
    %262 = vector.shape_cast %261 : vector<1x128xf32> to vector<128xf32>
    %263 = vector.shape_cast %262 : vector<128xf32> to vector<1x1x1x128xf32>
    %264 = vector.broadcast %263 : vector<1x1x1x128xf32> to vector<1x8x16x128xf32>
    %265 = arith.mulf %264, %260 : vector<1x8x16x128xf32>
    %266 = arith.addf %4, %265 : vector<1x8x16x128xf32>
    %c0_i32_127 = arith.constant 0 : i32
    %267 = arith.addi %257, %c0_i32_127 : i32
    %c1_128 = arith.constant 1 : index
    %268 = arith.index_cast %267 : i32 to index
    %c1_129 = arith.constant 1 : index
    %c0_130 = arith.constant 0 : index
    %269 = vector.load %arg2[%c1_128, %268, %c1_129, %c0_130] : memref<2x18x18x128xf32, #tpu.memory_space<vmem>>, vector<1x8x16x128xf32>
    %270 = vector.extract_strided_slice %0 {offsets = [1, 0], sizes = [1, 128], strides = [1, 1]} : vector<9x128xf32> to vector<1x128xf32>
    %271 = vector.shape_cast %270 : vector<1x128xf32> to vector<128xf32>
    %272 = vector.shape_cast %271 : vector<128xf32> to vector<1x1x1x128xf32>
    %273 = vector.broadcast %272 : vector<1x1x1x128xf32> to vector<1x8x16x128xf32>
    %274 = arith.mulf %273, %269 : vector<1x8x16x128xf32>
    %275 = arith.addf %266, %274 : vector<1x8x16x128xf32>
    %c0_i32_131 = arith.constant 0 : i32
    %276 = arith.addi %257, %c0_i32_131 : i32
    %c1_132 = arith.constant 1 : index
    %277 = arith.index_cast %276 : i32 to index
    %c2_133 = arith.constant 2 : index
    %c0_134 = arith.constant 0 : index
    %278 = vector.load %arg2[%c1_132, %277, %c2_133, %c0_134] : memref<2x18x18x128xf32, #tpu.memory_space<vmem>>, vector<1x8x16x128xf32>
    %279 = vector.extract_strided_slice %0 {offsets = [2, 0], sizes = [1, 128], strides = [1, 1]} : vector<9x128xf32> to vector<1x128xf32>
    %280 = vector.shape_cast %279 : vector<1x128xf32> to vector<128xf32>
    %281 = vector.shape_cast %280 : vector<128xf32> to vector<1x1x1x128xf32>
    %282 = vector.broadcast %281 : vector<1x1x1x128xf32> to vector<1x8x16x128xf32>
    %283 = arith.mulf %282, %278 : vector<1x8x16x128xf32>
    %284 = arith.addf %275, %283 : vector<1x8x16x128xf32>
    %c1_i32_135 = arith.constant 1 : i32
    %285 = arith.addi %257, %c1_i32_135 : i32
    %c1_136 = arith.constant 1 : index
    %286 = arith.index_cast %285 : i32 to index
    %c0_137 = arith.constant 0 : index
    %c0_138 = arith.constant 0 : index
    %287 = vector.load %arg2[%c1_136, %286, %c0_137, %c0_138] : memref<2x18x18x128xf32, #tpu.memory_space<vmem>>, vector<1x8x16x128xf32>
    %288 = vector.extract_strided_slice %0 {offsets = [3, 0], sizes = [1, 128], strides = [1, 1]} : vector<9x128xf32> to vector<1x128xf32>
    %289 = vector.shape_cast %288 : vector<1x128xf32> to vector<128xf32>
    %290 = vector.shape_cast %289 : vector<128xf32> to vector<1x1x1x128xf32>
    %291 = vector.broadcast %290 : vector<1x1x1x128xf32> to vector<1x8x16x128xf32>
    %292 = arith.mulf %291, %287 : vector<1x8x16x128xf32>
    %293 = arith.addf %284, %292 : vector<1x8x16x128xf32>
    %c1_i32_139 = arith.constant 1 : i32
    %294 = arith.addi %257, %c1_i32_139 : i32
    %c1_140 = arith.constant 1 : index
    %295 = arith.index_cast %294 : i32 to index
    %c1_141 = arith.constant 1 : index
    %c0_142 = arith.constant 0 : index
    %296 = vector.load %arg2[%c1_140, %295, %c1_141, %c0_142] : memref<2x18x18x128xf32, #tpu.memory_space<vmem>>, vector<1x8x16x128xf32>
    %297 = vector.extract_strided_slice %0 {offsets = [4, 0], sizes = [1, 128], strides = [1, 1]} : vector<9x128xf32> to vector<1x128xf32>
    %298 = vector.shape_cast %297 : vector<1x128xf32> to vector<128xf32>
    %299 = vector.shape_cast %298 : vector<128xf32> to vector<1x1x1x128xf32>
    %300 = vector.broadcast %299 : vector<1x1x1x128xf32> to vector<1x8x16x128xf32>
    %301 = arith.mulf %300, %296 : vector<1x8x16x128xf32>
    %302 = arith.addf %293, %301 : vector<1x8x16x128xf32>
    %c1_i32_143 = arith.constant 1 : i32
    %303 = arith.addi %257, %c1_i32_143 : i32
    %c1_144 = arith.constant 1 : index
    %304 = arith.index_cast %303 : i32 to index
    %c2_145 = arith.constant 2 : index
    %c0_146 = arith.constant 0 : index
    %305 = vector.load %arg2[%c1_144, %304, %c2_145, %c0_146] : memref<2x18x18x128xf32, #tpu.memory_space<vmem>>, vector<1x8x16x128xf32>
    %306 = vector.extract_strided_slice %0 {offsets = [5, 0], sizes = [1, 128], strides = [1, 1]} : vector<9x128xf32> to vector<1x128xf32>
    %307 = vector.shape_cast %306 : vector<1x128xf32> to vector<128xf32>
    %308 = vector.shape_cast %307 : vector<128xf32> to vector<1x1x1x128xf32>
    %309 = vector.broadcast %308 : vector<1x1x1x128xf32> to vector<1x8x16x128xf32>
    %310 = arith.mulf %309, %305 : vector<1x8x16x128xf32>
    %311 = arith.addf %302, %310 : vector<1x8x16x128xf32>
    %c2_i32_147 = arith.constant 2 : i32
    %312 = arith.addi %257, %c2_i32_147 : i32
    %c1_148 = arith.constant 1 : index
    %313 = arith.index_cast %312 : i32 to index
    %c0_149 = arith.constant 0 : index
    %c0_150 = arith.constant 0 : index
    %314 = vector.load %arg2[%c1_148, %313, %c0_149, %c0_150] : memref<2x18x18x128xf32, #tpu.memory_space<vmem>>, vector<1x8x16x128xf32>
    %315 = vector.extract_strided_slice %0 {offsets = [6, 0], sizes = [1, 128], strides = [1, 1]} : vector<9x128xf32> to vector<1x128xf32>
    %316 = vector.shape_cast %315 : vector<1x128xf32> to vector<128xf32>
    %317 = vector.shape_cast %316 : vector<128xf32> to vector<1x1x1x128xf32>
    %318 = vector.broadcast %317 : vector<1x1x1x128xf32> to vector<1x8x16x128xf32>
    %319 = arith.mulf %318, %314 : vector<1x8x16x128xf32>
    %320 = arith.addf %311, %319 : vector<1x8x16x128xf32>
    %c2_i32_151 = arith.constant 2 : i32
    %321 = arith.addi %257, %c2_i32_151 : i32
    %c1_152 = arith.constant 1 : index
    %322 = arith.index_cast %321 : i32 to index
    %c1_153 = arith.constant 1 : index
    %c0_154 = arith.constant 0 : index
    %323 = vector.load %arg2[%c1_152, %322, %c1_153, %c0_154] : memref<2x18x18x128xf32, #tpu.memory_space<vmem>>, vector<1x8x16x128xf32>
    %324 = vector.extract_strided_slice %0 {offsets = [7, 0], sizes = [1, 128], strides = [1, 1]} : vector<9x128xf32> to vector<1x128xf32>
    %325 = vector.shape_cast %324 : vector<1x128xf32> to vector<128xf32>
    %326 = vector.shape_cast %325 : vector<128xf32> to vector<1x1x1x128xf32>
    %327 = vector.broadcast %326 : vector<1x1x1x128xf32> to vector<1x8x16x128xf32>
    %328 = arith.mulf %327, %323 : vector<1x8x16x128xf32>
    %329 = arith.addf %320, %328 : vector<1x8x16x128xf32>
    %c2_i32_155 = arith.constant 2 : i32
    %330 = arith.addi %257, %c2_i32_155 : i32
    %c1_156 = arith.constant 1 : index
    %331 = arith.index_cast %330 : i32 to index
    %c2_157 = arith.constant 2 : index
    %c0_158 = arith.constant 0 : index
    %332 = vector.load %arg2[%c1_156, %331, %c2_157, %c0_158] : memref<2x18x18x128xf32, #tpu.memory_space<vmem>>, vector<1x8x16x128xf32>
    %333 = vector.extract_strided_slice %0 {offsets = [8, 0], sizes = [1, 128], strides = [1, 1]} : vector<9x128xf32> to vector<1x128xf32>
    %334 = vector.shape_cast %333 : vector<1x128xf32> to vector<128xf32>
    %335 = vector.shape_cast %334 : vector<128xf32> to vector<1x1x1x128xf32>
    %336 = vector.broadcast %335 : vector<1x1x1x128xf32> to vector<1x8x16x128xf32>
    %337 = arith.mulf %336, %332 : vector<1x8x16x128xf32>
    %338 = arith.addf %329, %337 : vector<1x8x16x128xf32>
    %c1_159 = arith.constant 1 : index
    %339 = arith.index_cast %257 : i32 to index
    %c0_160 = arith.constant 0 : index
    %c0_161 = arith.constant 0 : index
    %340 = vector.load %arg5[%c1_159, %339, %c0_160, %c0_161] : memref<2x16x16x128xf32, #tpu.memory_space<vmem>>, vector<1x8x16x128xf32>
    tpu.vector_store %arg5[%c1_159, %339, %c0_160, %c0_161], %338 {strides = array<i32>} : memref<2x16x16x128xf32, #tpu.memory_space<vmem>>, vector<1x8x16x128xf32>,
    %c2_i32_162 = arith.constant 2 : i32
    return
  }
  func.func @transform_0(%arg0: i32, %arg1: i32) -> (i32, i32, i32, i32) {
    %c0_i32 = arith.constant 0 : i32
    %c0_i32_0 = arith.constant 0 : i32
    %c0_i32_1 = arith.constant 0 : i32
    return %arg0, %c0_i32, %c0_i32_0, %arg1 : i32, i32, i32, i32
  }
  func.func @transform_1(%arg0: i32, %arg1: i32) -> (i32, i32) {
    %c0_i32 = arith.constant 0 : i32
    %c0_i32_0 = arith.constant 0 : i32
    return %c0_i32, %arg1 : i32, i32
  }
  func.func @transform_2(%arg0: i32, %arg1: i32) -> (i32, i32) {
    %c0_i32 = arith.constant 0 : i32
    %c0_i32_0 = arith.constant 0 : i32
    return %c0_i32, %arg1 : i32, i32
  }
  func.func @transform_3(%arg0: i32, %arg1: i32) -> (i32, i32, i32, i32) {
    %c0_i32 = arith.constant 0 : i32
    %c0_i32_0 = arith.constant 0 : i32
    %c0_i32_1 = arith.constant 0 : i32
    return %arg0, %c0_i32, %c0_i32_0, %arg1 : i32, i32, i32, i32
  }
}

</mosaic_0001>

<bundles_post_ra>
// kernel: dwconv_forward.1
= control target key start
LH: loop header
LB: loop body
LE: loop exit
PB: predicated region body
PF: predicated region fallthrough
CT: control target
= control target key end

     0   :  { %8 = vsyncpa [#allocation5], 0  ;;  %s4813_s0 = inlined_call_operand.vmem [shape: f32[2,18,18,256], index: 0, kind: input, shape index: {}]   ;;  %s4814_s1 = inlined_call_operand.vmem [shape: f32[9,256], index: 1, kind: input, shape index: {}]   ;;  %s4815_s2 = inlined_call_operand.vmem [shape: f32[1,256], index: 2, kind: input, shape index: {}]   ;;  %s4816_s3 = inlined_call_operand.hbm [shape: f32[2,16,16,256], index: 3, kind: output, shape index: {}]  }
   0x1   :  { %10 = vsyncpa [#allocation5 + $0x1], 0  ;;  %s3458_s12 = smov 0   ;;  %s3460_s13 = smov 0  }
   0x2   :  { %s3462_s14 = smov 0   ;;  %s3464_s15 = smov 0  }
   0x3   :  { %s3466_s16 = smov 0   ;;  %s3468_s17 = smov 0  }
   0x4 LB: > { %s2698_s18 = sadd.s32 4294967295, %s3432_s17   ;;  %s2699_s19 = sadd.s32 4294967294, %s3432_s17   ;;  %s3432_s17 = sphi %s3468_s17, %s16_s17   ;;  %s3428_s16 = sphi %s3466_s16, %s4824_s16   ;;  %s3424_s15 = sphi %s3464_s15, %s4823_s15   ;;  %s3420_s14 = sphi %s3462_s14, %s4822_s14   ;;  %s3416_s13 = sphi %s3460_s13, %s4821_s13   ;;  %s3412_s12 = sphi %s3458_s12, %s4820_s12  }
   0x5   : > { %s25_s20 = sadd.s32 1, %s3428_s16  ;;  %s37_s21 = sadd.s32 1, %s3420_s14 }
   0x6   : > { %p26_p0 = scmp.ge.s32.totalorder %s25_s20, 2  ;;  %p44_p1 = scmp.ne.s32.totalorder %s3420_s14, %s3416_s13 }
   0x7   : > { %p45_p2 = scmp.eq.s32.totalorder %s3432_s17, 0  ;;  %p128_p3 = scmp.eq.s32.totalorder %s2698_s18, 1 }
   0x8   : > { %s4826_s20 = smov (%p26_p0, %s25_s20), 0  ;;  %p133_p6 = scmp.ne.s32.totalorder %s3416_s13, %s3412_s12 }
   0x9   : > { %p3497_p4 = por %p45_p2, %p44_p1  ;;  %p3501_p5 = por %p128_p3, %p44_p1 }
   0xa   : > { %s33_s24 = ssub.s32 %s3428_s16, %s4826_s20  ;;  %p134_p8 = scmp.eq.s32.totalorder %s2699_s19, 1 }
   0xb   : > { %p35_p7 = scmp.eq.s32.totalorder %s33_s24, 0  ;;  %p2701_p10 = scmp.ge.s32.totalorder %s3432_s17, 2 }
   0xc   : > { %p3512_p9 = por %p134_p8, %p133_p6 }
   0xd   : > { %s3510_s25 = scalar_select %p35_p7, %s3420_s14, %s37_s21  }
   0xe   : > { %150 = sbr.rel (%p2701_p10) target bundleno = 86 (0x56), region = 16 }
  0x15   : > { %153 = sbr.rel (!%p3497_p4) target bundleno = 79 (0x4f), region = 20  ;;  %s155_s27 = sand.u32 (%p3497_p4), 1, %s3420_s14  }
  0x16   : > { %s2702_s28 = sshll.u32 (%p3497_p4), %s3428_s16, 3  ;;  %s3290_s29 = smul.u32 (%p3497_p4), 864, %s155_s27 }
  0x17   : > { %s3526_s5 = scalar_lea.vmem (%p3497_p4), %s4813_s0, %s2702_s28 }
  0x18   : > { %v404_v0 = vld [vmem:[%s3526_s5] sm:$0xff] (%p3497_p4)  ;;  %v406_v1 = vld [vmem:[%s3526_s5 + $0x10] sm:$0xff] (%p3497_p4)  ;;  %s3534_s6 = scalar_lea.vmem (%p3497_p4), [#allocation2], %s3290_s29 }
  0x19   : > { %v408_v2 = vld [vmem:[%s3526_s5 + $0x20] sm:$0xff] (%p3497_p4)  ;;  %v410_v3 = vld [vmem:[%s3526_s5 + $0x30] sm:$0xff] (%p3497_p4)  ;;  %405 = vst [vmem:[%s3534_s6] sm:$0xff] (%p3497_p4), %v404_v0  ;;  %407 = vst [vmem:[%s3534_s6 + $0x8] sm:$0xff] (%p3497_p4), %v406_v1 }
  0x1a   : > { %v412_v4 = vld [vmem:[%s3526_s5 + $0x40] sm:$0xff] (%p3497_p4)  ;;  %v414_v5 = vld [vmem:[%s3526_s5 + $0x50] sm:$0xff] (%p3497_p4)  ;;  %409 = vst [vmem:[%s3534_s6 + $0x10] sm:$0xff] (%p3497_p4), %v408_v2  ;;  %411 = vst [vmem:[%s3534_s6 + $0x18] sm:$0xff] (%p3497_p4), %v410_v3 }
  0x1b   : > { %413 = vst [vmem:[%s3534_s6 + $0x20] sm:$0xff] (%p3497_p4), %v412_v4  ;;  %415 = vst [vmem:[%s3534_s6 + $0x28] sm:$0xff] (%p3497_p4), %v414_v5  ;;  %v416_v6 = vld [vmem:[%s3526_s5 + $0x60] sm:$0xff] (%p3497_p4)  ;;  %v418_v7 = vld [vmem:[%s3526_s5 + $0x70] sm:$0xff] (%p3497_p4) }
  0x1c   : > { %v420_v8 = vld [vmem:[%s3526_s5 + $0x80] sm:$0xff]  ;;  %417 = vst [vmem:[%s3534_s6 + $0x30] sm:$0xff] %v416_v6  ;;  %419 = vst [vmem:[%s3534_s6 + $0x38] sm:$0xff] %v418_v7  ;;  %v422_v9 = vld [vmem:[%s3526_s5 + $0x90] sm:$0xff] }
  0x1d   : > { %421 = vst [vmem:[%s3534_s6 + $0x40] sm:$0xff] %v420_v8  ;;  %v424_v10 = vld [vmem:[%s3526_s5 + $0xa0] sm:$0xff]  ;;  %v426_v11 = vld [vmem:[%s3526_s5 + $0xb0] sm:$0xff]  ;;  %423 = vst [vmem:[%s3534_s6 + $0x48] sm:$0xff] %v422_v9 }
  0x1e   : > { %425 = vst [vmem:[%s3534_s6 + $0x50] sm:$0xff] %v424_v10  ;;  %427 = vst [vmem:[%s3534_s6 + $0x58] sm:$0xff] %v426_v11  ;;  %v428_v12 = vld [vmem:[%s3526_s5 + $0xc0] sm:$0xff]  ;;  %v430_v13 = vld [vmem:[%s3526_s5 + $0xd0] sm:$0xff] }
  0x1f   : > { %v432_v14 = vld [vmem:[%s3526_s5 + $0xe0] sm:$0xff]  ;;  %429 = vst [vmem:[%s3534_s6 + $0x60] sm:$0xff] %v428_v12  ;;  %431 = vst [vmem:[%s3534_s6 + $0x68] sm:$0xff] %v430_v13  ;;  %v434_v15 = vld [vmem:[%s3526_s5 + $0xf0] sm:$0xff] }
  0x20   : > { %433 = vst [vmem:[%s3534_s6 + $0x70] sm:$0xff] %v432_v14  ;;  %v436_v16 = vld [vmem:[%s3526_s5 + $0x100] sm:$0xff]  ;;  %v438_v17 = vld [vmem:[%s3526_s5 + $0x110] sm:$0xff]  ;;  %435 = vst [vmem:[%s3534_s6 + $0x78] sm:$0xff] %v434_v15 }
  0x21   : > { %437 = vst [vmem:[%s3534_s6 + $0x80] sm:$0xff] %v436_v16  ;;  %439 = vst [vmem:[%s3534_s6 + $0x88] sm:$0xff] %v438_v17  ;;  %v440_v18 = vld [vmem:[%s3526_s5 + $0x120] sm:$0xff]  ;;  %v442_v19 = vld [vmem:[%s3526_s5 + $0x130] sm:$0xff] }
  0x22   : > { %v444_v20 = vld [vmem:[%s3526_s5 + $0x140] sm:$0xff]  ;;  %441 = vst [vmem:[%s3534_s6 + $0x90] sm:$0xff] %v440_v18  ;;  %443 = vst [vmem:[%s3534_s6 + $0x98] sm:$0xff] %v442_v19  ;;  %v446_v21 = vld [vmem:[%s3526_s5 + $0x150] sm:$0xff] }
  0x23   : > { %445 = vst [vmem:[%s3534_s6 + $0xa0] sm:$0xff] %v444_v20  ;;  %v448_v22 = vld [vmem:[%s3526_s5 + $0x160] sm:$0xff]  ;;  %v450_v23 = vld [vmem:[%s3526_s5 + $0x170] sm:$0xff]  ;;  %447 = vst [vmem:[%s3534_s6 + $0xa8] sm:$0xff] %v446_v21 }
  0x24   : > { %449 = vst [vmem:[%s3534_s6 + $0xb0] sm:$0xff] %v448_v22  ;;  %451 = vst [vmem:[%s3534_s6 + $0xb8] sm:$0xff] %v450_v23  ;;  %v452_v24 = vld [vmem:[%s3526_s5 + $0x180] sm:$0xff]  ;;  %v454_v25 = vld [vmem:[%s3526_s5 + $0x190] sm:$0xff] }
  0x25   : > { %v456_v26 = vld [vmem:[%s3526_s5 + $0x1a0] sm:$0xff]  ;;  %453 = vst [vmem:[%s3534_s6 + $0xc0] sm:$0xff] %v452_v24  ;;  %455 = vst [vmem:[%s3534_s6 + $0xc8] sm:$0xff] %v454_v25  ;;  %v458_v27 = vld [vmem:[%s3526_s5 + $0x1b0] sm:$0xff] }
  0x26   : > { %457 = vst [vmem:[%s3534_s6 + $0xd0] sm:$0xff] %v456_v26  ;;  %v460_v28 = vld [vmem:[%s3526_s5 + $0x1c0] sm:$0xff]  ;;  %v462_v29 = vld [vmem:[%s3526_s5 + $0x1d0] sm:$0xff]  ;;  %459 = vst [vmem:[%s3534_s6 + $0xd8] sm:$0xff] %v458_v27 }
  0x27   : > { %461 = vst [vmem:[%s3534_s6 + $0xe0] sm:$0xff] %v460_v28  ;;  %463 = vst [vmem:[%s3534_s6 + $0xe8] sm:$0xff] %v462_v29  ;;  %v464_v30 = vld [vmem:[%s3526_s5 + $0x1e0] sm:$0xff]  ;;  %v466_v31 = vld [vmem:[%s3526_s5 + $0x1f0] sm:$0xff] }
  0x28   : > { %v468_v32 = vld [vmem:[%s3526_s5 + $0x200] sm:$0xff]  ;;  %465 = vst [vmem:[%s3534_s6 + $0xf0] sm:$0xff] %v464_v30  ;;  %467 = vst [vmem:[%s3534_s6 + $0xf8] sm:$0xff] %v466_v31  ;;  %v470_v33 = vld [vmem:[%s3526_s5 + $0x210] sm:$0xff] }
  0x29   : > { %469 = vst [vmem:[%s3534_s6 + $0x100] sm:$0xff] %v468_v32  ;;  %v472_v34 = vld [vmem:[%s3526_s5 + $0x220] sm:$0xff]  ;;  %v474_v35 = vld [vmem:[%s3526_s5 + $0x230] sm:$0xff]  ;;  %471 = vst [vmem:[%s3534_s6 + $0x108] sm:$0xff] %v470_v33 }
  0x2a   : > { %473 = vst [vmem:[%s3534_s6 + $0x110] sm:$0xff] %v472_v34  ;;  %475 = vst [vmem:[%s3534_s6 + $0x118] sm:$0xff] %v474_v35  ;;  %v476_v36 = vld [vmem:[%s3526_s5 + $0x240] sm:$0xff]  ;;  %v478_v37 = vld [vmem:[%s3526_s5 + $0x250] sm:$0xff] }
  0x2b   : > { %v480_v38 = vld [vmem:[%s3526_s5 + $0x260] sm:$0xff]  ;;  %477 = vst [vmem:[%s3534_s6 + $0x120] sm:$0xff] %v476_v36  ;;  %479 = vst [vmem:[%s3534_s6 + $0x128] sm:$0xff] %v478_v37  ;;  %v482_v39 = vld [vmem:[%s3526_s5 + $0x270] sm:$0xff] }
  0x2c   : > { %481 = vst [vmem:[%s3534_s6 + $0x130] sm:$0xff] %v480_v38  ;;  %v484_v40 = vld [vmem:[%s3526_s5 + $0x280] sm:$0xff]  ;;  %v486_v41 = vld [vmem:[%s3526_s5 + $0x290] sm:$0xff]  ;;  %483 = vst [vmem:[%s3534_s6 + $0x138] sm:$0xff] %v482_v39 }
  0x2d   : > { %485 = vst [vmem:[%s3534_s6 + $0x140] sm:$0xff] %v484_v40  ;;  %487 = vst [vmem:[%s3534_s6 + $0x148] sm:$0xff] %v486_v41  ;;  %v488_v42 = vld [vmem:[%s3526_s5 + $0x2a0] sm:$0xff]  ;;  %v490_v43 = vld [vmem:[%s3526_s5 + $0x2b0] sm:$0xff] }
  0x2e   : > { %v492_v44 = vld [vmem:[%s3526_s5 + $0x2c0] sm:$0xff]  ;;  %489 = vst [vmem:[%s3534_s6 + $0x150] sm:$0xff] %v488_v42  ;;  %491 = vst [vmem:[%s3534_s6 + $0x158] sm:$0xff] %v490_v43  ;;  %v494_v45 = vld [vmem:[%s3526_s5 + $0x2d0] sm:$0xff] }
  0x2f   : > { %493 = vst [vmem:[%s3534_s6 + $0x160] sm:$0xff] %v492_v44  ;;  %v496_v46 = vld [vmem:[%s3526_s5 + $0x2e0] sm:$0xff]  ;;  %v498_v47 = vld [vmem:[%s3526_s5 + $0x2f0] sm:$0xff]  ;;  %495 = vst [vmem:[%s3534_s6 + $0x168] sm:$0xff] %v494_v45 }
  0x30   : > { %497 = vst [vmem:[%s3534_s6 + $0x170] sm:$0xff] %v496_v46  ;;  %499 = vst [vmem:[%s3534_s6 + $0x178] sm:$0xff] %v498_v47  ;;  %v500_v48 = vld [vmem:[%s3526_s5 + $0x300] sm:$0xff]  ;;  %v502_v49 = vld [vmem:[%s3526_s5 + $0x310] sm:$0xff] }
  0x31   : > { %v504_v50 = vld [vmem:[%s3526_s5 + $0x320] sm:$0xff]  ;;  %501 = vst [vmem:[%s3534_s6 + $0x180] sm:$0xff] %v500_v48  ;;  %503 = vst [vmem:[%s3534_s6 + $0x188] sm:$0xff] %v502_v49  ;;  %v506_v51 = vld [vmem:[%s3526_s5 + $0x330] sm:$0xff] }
  0x32   : > { %505 = vst [vmem:[%s3534_s6 + $0x190] sm:$0xff] %v504_v50  ;;  %v508_v52 = vld [vmem:[%s3526_s5 + $0x340] sm:$0xff]  ;;  %v510_v53 = vld [vmem:[%s3526_s5 + $0x350] sm:$0xff]  ;;  %507 = vst [vmem:[%s3534_s6 + $0x198] sm:$0xff] %v506_v51 }
  0x33   : > { %509 = vst [vmem:[%s3534_s6 + $0x1a0] sm:$0xff] %v508_v52  ;;  %511 = vst [vmem:[%s3534_s6 + $0x1a8] sm:$0xff] %v510_v53  ;;  %v512_v54 = vld [vmem:[%s3526_s5 + $0x360] sm:$0xff]  ;;  %v514_v55 = vld [vmem:[%s3526_s5 + $0x370] sm:$0xff] }
  0x34   : > { %v516_v56 = vld [vmem:[%s3526_s5 + $0x380] sm:$0xff]  ;;  %513 = vst [vmem:[%s3534_s6 + $0x1b0] sm:$0xff] %v512_v54  ;;  %515 = vst [vmem:[%s3534_s6 + $0x1b8] sm:$0xff] %v514_v55  ;;  %v518_v57 = vld [vmem:[%s3526_s5 + $0x390] sm:$0xff] }
  0x35   : > { %517 = vst [vmem:[%s3534_s6 + $0x1c0] sm:$0xff] %v516_v56  ;;  %v520_v58 = vld [vmem:[%s3526_s5 + $0x3a0] sm:$0xff]  ;;  %v522_v59 = vld [vmem:[%s3526_s5 + $0x3b0] sm:$0xff]  ;;  %519 = vst [vmem:[%s3534_s6 + $0x1c8] sm:$0xff] %v518_v57 }
  0x36   : > { %521 = vst [vmem:[%s3534_s6 + $0x1d0] sm:$0xff] %v520_v58  ;;  %523 = vst [vmem:[%s3534_s6 + $0x1d8] sm:$0xff] %v522_v59  ;;  %v524_v60 = vld [vmem:[%s3526_s5 + $0x3c0] sm:$0xff]  ;;  %v526_v61 = vld [vmem:[%s3526_s5 + $0x3d0] sm:$0xff] }
  0x37   : > { %v528_v62 = vld [vmem:[%s3526_s5 + $0x3e0] sm:$0xff]  ;;  %525 = vst [vmem:[%s3534_s6 + $0x1e0] sm:$0xff] %v524_v60  ;;  %527 = vst [vmem:[%s3534_s6 + $0x1e8] sm:$0xff] %v526_v61  ;;  %v530_v63 = vld [vmem:[%s3526_s5 + $0x3f0] sm:$0xff] }
  0x38   : > { %529 = vst [vmem:[%s3534_s6 + $0x1f0] sm:$0xff] %v528_v62  ;;  %v532_v0 = vld [vmem:[%s3526_s5 + $0x400] sm:$0xff]  ;;  %v534_v1 = vld [vmem:[%s3526_s5 + $0x410] sm:$0xff]  ;;  %531 = vst [vmem:[%s3534_s6 + $0x1f8] sm:$0xff] %v530_v63 }
  0x39   : > { %533 = vst [vmem:[%s3534_s6 + $0x200] sm:$0xff] %v532_v0  ;;  %535 = vst [vmem:[%s3534_s6 + $0x208] sm:$0xff] %v534_v1  ;;  %v536_v2 = vld [vmem:[%s3526_s5 + $0x420] sm:$0xff]  ;;  %v538_v3 = vld [vmem:[%s3526_s5 + $0x430] sm:$0xff] }
  0x3a   : > { %v540_v4 = vld [vmem:[%s3526_s5 + $0x440] sm:$0xff]  ;;  %537 = vst [vmem:[%s3534_s6 + $0x210] sm:$0xff] %v536_v2  ;;  %539 = vst [vmem:[%s3534_s6 + $0x218] sm:$0xff] %v538_v3  ;;  %v542_v5 = vld [vmem:[%s3526_s5 + $0x450] sm:$0xff] }
  0x3b   : > { %541 = vst [vmem:[%s3534_s6 + $0x220] sm:$0xff] %v540_v4  ;;  %v544_v6 = vld [vmem:[%s3526_s5 + $0x460] sm:$0xff]  ;;  %v546_v7 = vld [vmem:[%s3526_s5 + $0x470] sm:$0xff]  ;;  %543 = vst [vmem:[%s3534_s6 + $0x228] sm:$0xff] %v542_v5 }
  0x3c   : > { %545 = vst [vmem:[%s3534_s6 + $0x230] sm:$0xff] %v544_v6  ;;  %547 = vst [vmem:[%s3534_s6 + $0x238] sm:$0xff] %v546_v7  ;;  %v548_v8 = vld [vmem:[%s3526_s5 + $0x480] sm:$0xff]  ;;  %v550_v9 = vld [vmem:[%s3526_s5 + $0x490] sm:$0xff] }
  0x3d   : > { %v552_v10 = vld [vmem:[%s3526_s5 + $0x4a0] sm:$0xff]  ;;  %549 = vst [vmem:[%s3534_s6 + $0x240] sm:$0xff] %v548_v8  ;;  %551 = vst [vmem:[%s3534_s6 + $0x248] sm:$0xff] %v550_v9  ;;  %v554_v11 = vld [vmem:[%s3526_s5 + $0x4b0] sm:$0xff] }
  0x3e   : > { %553 = vst [vmem:[%s3534_s6 + $0x250] sm:$0xff] %v552_v10  ;;  %v556_v12 = vld [vmem:[%s3526_s5 + $0x4c0] sm:$0xff]  ;;  %v558_v13 = vld [vmem:[%s3526_s5 + $0x4d0] sm:$0xff]  ;;  %555 = vst [vmem:[%s3534_s6 + $0x258] sm:$0xff] %v554_v11 }
  0x3f   : > { %557 = vst [vmem:[%s3534_s6 + $0x260] sm:$0xff] %v556_v12  ;;  %559 = vst [vmem:[%s3534_s6 + $0x268] sm:$0xff] %v558_v13  ;;  %v560_v14 = vld [vmem:[%s3526_s5 + $0x4e0] sm:$0xff]  ;;  %v562_v15 = vld [vmem:[%s3526_s5 + $0x4f0] sm:$0xff] }
  0x40   : > { %v564_v16 = vld [vmem:[%s3526_s5 + $0x500] sm:$0xff]  ;;  %561 = vst [vmem:[%s3534_s6 + $0x270] sm:$0xff] %v560_v14  ;;  %563 = vst [vmem:[%s3534_s6 + $0x278] sm:$0xff] %v562_v15  ;;  %v566_v17 = vld [vmem:[%s3526_s5 + $0x510] sm:$0xff] }
  0x41   : > { %565 = vst [vmem:[%s3534_s6 + $0x280] sm:$0xff] %v564_v16  ;;  %v568_v18 = vld [vmem:[%s3526_s5 + $0x520] sm:$0xff]  ;;  %v570_v19 = vld [vmem:[%s3526_s5 + $0x530] sm:$0xff]  ;;  %567 = vst [vmem:[%s3534_s6 + $0x288] sm:$0xff] %v566_v17 }
  0x42   : > { %569 = vst [vmem:[%s3534_s6 + $0x290] sm:$0xff] %v568_v18  ;;  %571 = vst [vmem:[%s3534_s6 + $0x298] sm:$0xff] %v570_v19  ;;  %v572_v20 = vld [vmem:[%s3526_s5 + $0x540] sm:$0xff]  ;;  %v574_v21 = vld [vmem:[%s3526_s5 + $0x550] sm:$0xff] }
  0x43   : > { %v576_v22 = vld [vmem:[%s3526_s5 + $0x560] sm:$0xff]  ;;  %573 = vst [vmem:[%s3534_s6 + $0x2a0] sm:$0xff] %v572_v20  ;;  %575 = vst [vmem:[%s3534_s6 + $0x2a8] sm:$0xff] %v574_v21  ;;  %v578_v23 = vld [vmem:[%s3526_s5 + $0x570] sm:$0xff] }
  0x44   : > { %577 = vst [vmem:[%s3534_s6 + $0x2b0] sm:$0xff] %v576_v22  ;;  %v580_v24 = vld [vmem:[%s3526_s5 + $0x580] sm:$0xff]  ;;  %v582_v25 = vld [vmem:[%s3526_s5 + $0x590] sm:$0xff]  ;;  %579 = vst [vmem:[%s3534_s6 + $0x2b8] sm:$0xff] %v578_v23 }
  0x45   : > { %581 = vst [vmem:[%s3534_s6 + $0x2c0] sm:$0xff] %v580_v24  ;;  %583 = vst [vmem:[%s3534_s6 + $0x2c8] sm:$0xff] %v582_v25  ;;  %v584_v26 = vld [vmem:[%s3526_s5 + $0x5a0] sm:$0xff]  ;;  %v586_v27 = vld [vmem:[%s3526_s5 + $0x5b0] sm:$0xff] }
  0x46   : > { %v588_v28 = vld [vmem:[%s3526_s5 + $0x5c0] sm:$0xff]  ;;  %585 = vst [vmem:[%s3534_s6 + $0x2d0] sm:$0xff] %v584_v26  ;;  %587 = vst [vmem:[%s3534_s6 + $0x2d8] sm:$0xff] %v586_v27  ;;  %v590_v29 = vld [vmem:[%s3526_s5 + $0x5d0] sm:$0xff] }
  0x47   : > { %589 = vst [vmem:[%s3534_s6 + $0x2e0] sm:$0xff] %v588_v28  ;;  %v592_v30 = vld [vmem:[%s3526_s5 + $0x5e0] sm:$0xff]  ;;  %v594_v31 = vld [vmem:[%s3526_s5 + $0x5f0] sm:$0xff]  ;;  %591 = vst [vmem:[%s3534_s6 + $0x2e8] sm:$0xff] %v590_v29 }
  0x48   : > { %593 = vst [vmem:[%s3534_s6 + $0x2f0] sm:$0xff] %v592_v30  ;;  %595 = vst [vmem:[%s3534_s6 + $0x2f8] sm:$0xff] %v594_v31  ;;  %v596_v32 = vld [vmem:[%s3526_s5 + $0x600] sm:$0xff]  ;;  %v598_v33 = vld [vmem:[%s3526_s5 + $0x610] sm:$0xff] }
  0x49   : > { %v600_v34 = vld [vmem:[%s3526_s5 + $0x620] sm:$0xff]  ;;  %597 = vst [vmem:[%s3534_s6 + $0x300] sm:$0xff] %v596_v32  ;;  %599 = vst [vmem:[%s3534_s6 + $0x308] sm:$0xff] %v598_v33  ;;  %v602_v35 = vld [vmem:[%s3526_s5 + $0x630] sm:$0xff] }
  0x4a   : > { %601 = vst [vmem:[%s3534_s6 + $0x310] sm:$0xff] %v600_v34  ;;  %v604_v36 = vld [vmem:[%s3526_s5 + $0x640] sm:$0xff]  ;;  %v606_v37 = vld [vmem:[%s3526_s5 + $0x650] sm:$0xff]  ;;  %603 = vst [vmem:[%s3534_s6 + $0x318] sm:$0xff] %v602_v35 }
  0x4b   : > { %605 = vst [vmem:[%s3534_s6 + $0x320] sm:$0xff] %v604_v36  ;;  %607 = vst [vmem:[%s3534_s6 + $0x328] sm:$0xff] %v606_v37  ;;  %v608_v38 = vld [vmem:[%s3526_s5 + $0x660] sm:$0xff]  ;;  %v610_v39 = vld [vmem:[%s3526_s5 + $0x670] sm:$0xff] }
  0x4c   : > { %v612_v40 = vld [vmem:[%s3526_s5 + $0x680] sm:$0xff]  ;;  %609 = vst [vmem:[%s3534_s6 + $0x330] sm:$0xff] %v608_v38  ;;  %611 = vst [vmem:[%s3534_s6 + $0x338] sm:$0xff] %v610_v39  ;;  %v614_v41 = vld [vmem:[%s3526_s5 + $0x690] sm:$0xff] }
  0x4d   : > { %613 = vst [vmem:[%s3534_s6 + $0x340] sm:$0xff] %v612_v40  ;;  %v616_v42 = vld [vmem:[%s3526_s5 + $0x6a0] sm:$0xff]  ;;  %v618_v43 = vld [vmem:[%s3526_s5 + $0x6b0] sm:$0xff]  ;;  %615 = vst [vmem:[%s3534_s6 + $0x348] sm:$0xff] %v614_v41 }
  0x4e   : > { %617 = vst [vmem:[%s3534_s6 + $0x350] sm:$0xff] %v616_v42  ;;  %619 = vst [vmem:[%s3534_s6 + $0x358] sm:$0xff] %v618_v43 }
  0x4f PF: > { %625 = sbr.rel (!%p3497_p4) target bundleno = 86 (0x56), region = 58  ;;  %s627_s7 = sand.u32 (%p3497_p4), 1, %s3420_s14  }
  0x50   : > { %s2704_s8 = sshll.u32 (%p3497_p4), %s3428_s16, 3  ;;  %s2703_s9 = sshll.u32 (%p3497_p4), %s627_s7, 4 }
  0x51   : > { %s631_s18 = scalar_lea.vmem (%p3497_p4), %s4814_s1, %s2704_s8  ;;  %s629_s19 = scalar_lea.vmem (%p3497_p4), [#allocation3], %s2703_s9 }
  0x52   : > { %v661_v44 = vld [vmem:[%s631_s18] sm:$0xff] (%p3497_p4)  ;;  %v663_v45 = vld [vmem:[%s631_s18 + $0x10] sm:$0xff] (%p3497_p4) }
  0x53   : > { %662 = vst [vmem:[%s629_s19] sm:$0xff] (%p3497_p4), %v661_v44  ;;  %664 = vst [vmem:[%s629_s19 + $0x8] sm:$0xff] (%p3497_p4), %v663_v45 }
  0x56 PF: > { %p2705_p11 = scmp.ge.s32.totalorder %s3432_s17, 1  ;;  %p675_p12 = scmp.lt.s32.totalorder %s3432_s17, 3 }
  0x58   : > { %p676_p13 = pnand %p2705_p11, %p675_p12 }
  0x59   : > { %s3756_s21 = sand.u32 (!%p676_p13), 1, %s3416_s13   ;;  %p720_p0 = scmp.lt.s32.totalorder (!%p676_p13), %s3424_s15, 1  ;;  %v749_v46 = vlaneseq (!%p676_p13) }
  0x5a   : > { %679 = sbr.rel (%p676_p13) target bundleno = 410 (0x19a), region = 100  ;;  %s2706_s24 = sshll.u32 (!%p676_p13), %s3756_s21, 4 }
  0x5b   : > { %s3291_s22 = smul.u32 (!%p676_p13), 864, %s3756_s21  ;;  %v750_v47 = vshrl.u32 (!%p676_p13), %v749_v46, 7  ;;  %s3761_s27 = scalar_lea.vmem (!%p676_p13), [#allocation3], %s2706_s24 }
  0x5c   : > { %v724_v48 = vld [vmem:[%s3761_s27] sm:$0xff] (!%p676_p13)  ;;  %v3797_v8 = vld [vmem:[%s3761_s27 + $0x8] ss:$0 sm:$0xff] (!%p676_p13)  ;;  %s2707_s6 = sshll.u32 (!%p676_p13), %s3756_s21, 9  ;;  %s3287_s8 = sshll.u32 (!%p676_p13), %s3424_s15, 7 }
  0x5d   : > { %v751_v49 = vsub.s32 (!%p676_p13), 0, %v750_v47  ;;  %v803_v50 = vsub.s32 (!%p676_p13), 1, %v750_v47  ;;  %s3765_s29 = scalar_lea.vmem (!%p676_p13), [#allocation2], %s3291_s22  ;;  %v855_v53 = vsub.s32 (!%p676_p13), 2, %v750_v47  ;;  %v908_v54 = vsub.s32 (!%p676_p13), 3, %v750_v47  ;;  %s3885_s7 = scalar_lea.vmem (!%p676_p13), [#allocation4], %s2707_s6 }
  0x5e   : > { %v733_v51 = vld [vmem:[%s3765_s29] sm:$0xff] (!%p676_p13)  ;;  %v960_v55 = vsub.s32 (!%p676_p13), 4, %v750_v47  ;;  %v1012_v58 = vsub.s32 (!%p676_p13), 5, %v750_v47  ;;  %v1065_v59 = vsub.s32 (!%p676_p13), 6, %v750_v47  ;;  %v1117_v1 = vsub.s32 (!%p676_p13), 7, %v750_v47  ;;  %v734_v6 = vld [vmem:[%s3765_s29 + $0x8] sm:$0xff] (!%p676_p13)  ;;  %s4761_s18 = scalar_lea.hbm (!%p676_p13), %s4816_s3, %s3287_s8 }
  0x5f   : > { %v785_v52 = vld [vmem:[%s3765_s29 + $0x1] sm:$0xff] (!%p676_p13)  ;;  %v3774_v56 = vrot.slane (!%p676_p13), %v724_v48, %v751_v49  ;;  %v3776_v57 = vrot.slane (!%p676_p13), %v724_v48, %v803_v50  ;;  %v3782_v62 = vrot.slane (!%p676_p13), %v724_v48, %v855_v53  ;;  %v3784_v63 = vrot.slane (!%p676_p13), %v724_v48, %v908_v54  ;;  %v786_v7 = vld [vmem:[%s3765_s29 + $0x9] sm:$0xff] (!%p676_p13)  ;;  %v2709_v12 = vld [vmem:[%s3765_s29 + $0x18] sm:$0xff] (!%p676_p13)  ;;  %s2591_s9 = sshll.u32 (!%p676_p13), %s3885_s7, 4  ;;  %s3434_s22 = smov (!%p676_p13), [#allocation4]   ;;  %s4763_s9 = int_to_ptr.vmem [resolvable:$true] %s2591_s9 }
  0x60   : > { %v837_v61 = vld [vmem:[%s3765_s29 + $0x2] sm:$0xff] (!%p676_p13)  ;;  %v3786_v0 = vrot.slane (!%p676_p13), %v724_v48, %v960_v55  ;;  %v3790_v4 = vrot.slane (!%p676_p13), %v724_v48, %v1012_v58  ;;  %v3792_v5 = vrot.slane (!%p676_p13), %v724_v48, %v1065_v59  ;;  %v3799_v9 = vrot.slane (!%p676_p13), %v724_v48, %v1117_v1  ;;  %v2725_v13 = vld [vmem:[%s3765_s29 + $0x19] sm:$0xff] (!%p676_p13)  ;;  %v838_v14 = vld [vmem:[%s3765_s29 + $0xa] sm:$0xff] (!%p676_p13)  ;;  %s3354_s19 = scalar_lea.vmem (!%p676_p13), %s4763_s9, 8192  ;;  %s3358_s24 = sshll.u32 (!%p676_p13), %s3434_s22, 4  ;;  %s3359_s24 = int_to_ptr.vmem [resolvable:$false] %s3358_s24 }
  0x61   : > { %s721_s28 = scalar_select %p720_p0, %s3424_s15, 1  ;;  %v753_v2 = vmul.f32 %v3774_v56, %v733_v51  ;;  %v805_v3 = vmul.f32 %v3776_v57, %v785_v52  ;;  %v857_v11 = vmul.f32 %v3782_v62, %v837_v61  ;;  %v910_v15 = vmul.f32 %v2709_v12, %v3784_v63  ;;  %v2741_v17 = vld [vmem:[%s3765_s29 + $0x1a] sm:$0xff]  ;;  %v2757_v18 = vld [vmem:[%s3765_s29 + $0x30] sm:$0xff]  ;;  %v2742_v35 = vld [vmem:[%s3765_s29 + $0x22] sm:$0xff] }
  0x62   : > { %v962_v16 = vmul.f32 %v2725_v13, %v3786_v0  ;;  %v2789_v19 = vld [vmem:[%s3765_s29 + $0x32] sm:$0xff]  ;;  %v754_v20 = vmul.f32 %v3774_v56, %v734_v6  ;;  %v806_v21 = vmul.f32 %v3776_v57, %v786_v7  ;;  %v1014_v23 = vmul.f32 %v2741_v17, %v3790_v4  ;;  %v2710_v27 = vld [vmem:[%s3765_s29 + $0x20] sm:$0xff]  ;;  %v3847_v59 = vld [vmem:[%s3765_s29 + $0x48] sm:$0xff]  ;;  %s2576_s15 = scalar_lea.sflag [#allocation5], %s3756_s21  ;;  %p3355_p1 = scmp.ne.s32.totalorder %s4763_s9, %s3354_s19 }
  0x63   : > { %s3772_s5 = scalar_lea.vmem %s4815_s2, %s721_s28  ;;  %v1067_v24 = vmul.f32 %v2757_v18, %v3792_v5  ;;  %v2773_v25 = vld [vmem:[%s3765_s29 + $0x31] sm:$0xff]  ;;  %v3817_v26 = vmul.f32 %v3797_v8, %v2789_v19  ;;  %v858_v30 = vmul.f32 %v3782_v62, %v838_v14  ;;  %v911_v31 = vmul.f32 %v2710_v27, %v3784_v63  ;;  %v2726_v32 = vld [vmem:[%s3765_s29 + $0x21] sm:$0xff]  ;;  %v3829_v37 = vld [vmem:[%s3765_s29 + $0x39] sm:$0xff]  ;;  %p3361_p4 = scmp.lt.s32.totalorder %s4763_s9, %s3359_s24 }
  0x64   : > { %v3779_v60 = vld [vmem:[%s3772_s5] ss:$0 sm:$0xff]  ;;  %v1119_v28 = vmul.f32 %v2773_v25, %v3799_v9  ;;  %v963_v34 = vmul.f32 %v2726_v32, %v3786_v0  ;;  %v2758_v36 = vld [vmem:[%s3765_s29 + $0x38] sm:$0xff]  ;;  %v755_v38 = vmul.f32 %v2709_v12, %v3774_v56  ;;  %v807_v39 = vmul.f32 %v2725_v13, %v3776_v57  ;;  %p3356_p2 = pnand %p3355_p1, %p3501_p5 }
  0x65   : > { %v769_v10 = vadd.f32 %v3779_v60, %v753_v2  ;;  %v770_v29 = vadd.f32 %v3779_v60, %v754_v20  ;;  %v1015_v41 = vmul.f32 %v2742_v35, %v3790_v4  ;;  %v1068_v42 = vmul.f32 %v2758_v36, %v3792_v5  ;;  %v2790_v44 = vld [vmem:[%s3765_s29 + $0x3a] sm:$0xff]  ;;  %v3852_v2 = vld [vmem:[%s3765_s29 + $0x49] sm:$0xff] }
  0x66   : > { %v1120_v43 = vmul.f32 %v3829_v37, %v3799_v9  ;;  %v1172_v46 = vmul.f32 %v3797_v8, %v2790_v44  ;;  %v771_v47 = vadd.f32 %v3779_v60, %v755_v38  ;;  %v859_v48 = vmul.f32 %v2741_v17, %v3782_v62  ;;  %p3357_p3 = pneg %p3356_p2 }
  0x67   : > { %v821_v22 = vadd.f32 %v805_v3, %v769_v10  ;;  %v822_v40 = vadd.f32 %v806_v21, %v770_v29  ;;  %v912_v50 = vmul.f32 %v2757_v18, %v3784_v63  ;;  %v756_v51 = vmul.f32 %v2710_v27, %v3774_v56  ;;  %v3855_v3 = vld [vmem:[%s3765_s29 + $0x4a] sm:$0xff] }
  0x68   : > { %v808_v52 = vmul.f32 %v2726_v32, %v3776_v57  ;;  %v823_v54 = vadd.f32 %v807_v39, %v771_v47  ;;  %v964_v55 = vmul.f32 %v2773_v25, %v3786_v0  ;;  %v1016_v58 = vmul.f32 %v2789_v19, %v3790_v4  ;;  %v2776_v39 = vld [vmem:[%s3765_s29 + $0x51] sm:$0xff] }
  0x69   : > { %v873_v33 = vadd.f32 %v857_v11, %v821_v22  ;;  %v874_v49 = vadd.f32 %v858_v30, %v822_v40  ;;  %v1069_v1 = vmul.f32 %v3847_v59, %v3792_v5  ;;  %v772_v6 = vadd.f32 %v3779_v60, %v756_v51  ;;  %v3870_v30 = vld [vmem:[%s3765_s29 + $0x50] sm:$0xff] }
  0x6a   : > { %v860_v7 = vmul.f32 %v2742_v35, %v3782_v62  ;;  %v875_v11 = vadd.f32 %v859_v48, %v823_v54  ;;  %v1121_v12 = vmul.f32 %v3852_v2, %v3799_v9  ;;  %v1173_v13 = vmul.f32 %v3797_v8, %v3855_v3  ;;  %v2792_v54 = vld [vmem:[%s3765_s29 + $0x52] sm:$0xff] }
  0x6b   : > { %v926_v45 = vadd.f32 %v910_v15, %v873_v33  ;;  %v927_v61 = vadd.f32 %v911_v31, %v874_v49  ;;  %v824_v15 = vadd.f32 %v808_v52, %v772_v6  ;;  %v757_v17 = vmul.f32 %v2757_v18, %v3774_v56 }
  0x6c   : > { %v928_v21 = vadd.f32 %v912_v50, %v875_v11  ;;  %v965_v22 = vmul.f32 %v3829_v37, %v3786_v0  ;;  %v861_v32 = vmul.f32 %v2789_v19, %v3782_v62  ;;  %v1017_v18 = vmul.f32 %v2790_v44, %v3790_v4 }
  0x6d   : > { %v978_v53 = vadd.f32 %v962_v16, %v926_v45  ;;  %v979_v14 = vadd.f32 %v963_v34, %v927_v61  ;;  %v913_v16 = vmul.f32 %v2758_v36, %v3784_v63  ;;  %v876_v29 = vadd.f32 %v860_v7, %v824_v15 }
  0x6e   : > { %v773_v31 = vadd.f32 %v3779_v60, %v757_v17  ;;  %v980_v34 = vadd.f32 %v964_v55, %v928_v21  ;;  %v1122_v19 = vmul.f32 %v2776_v39, %v3799_v9  ;;  %v810_v51 = vmul.f32 %v3829_v37, %v3776_v57  ;;  %v2777_v37 = vld [vmem:[%s3765_s29 + $0x61] sm:$0xff] }
  0x6f   : > { %v1030_v10 = vadd.f32 %v1014_v23, %v978_v53  ;;  %v809_v23 = vmul.f32 %v2773_v25, %v3776_v57  ;;  %v1031_v27 = vadd.f32 %v1015_v41, %v979_v14  ;;  %v929_v38 = vadd.f32 %v913_v16, %v876_v29 }
  0x70   : > { %v914_v25 = vmul.f32 %v3847_v59, %v3784_v63  ;;  %v1032_v45 = vadd.f32 %v1016_v58, %v980_v34  ;;  %v862_v52 = vmul.f32 %v2790_v44, %v3782_v62  ;;  %v915_v44 = vmul.f32 %v3870_v30, %v3784_v63  ;;  %v2778_v34 = vld [vmem:[%s3765_s29 + $0x69] sm:$0xff] }
  0x71   : > { %v1083_v20 = vadd.f32 %v1067_v24, %v1030_v10  ;;  %v1070_v24 = vmul.f32 %v3870_v30, %v3792_v5  ;;  %v1084_v35 = vadd.f32 %v1068_v42, %v1031_v27  ;;  %v825_v40 = vadd.f32 %v809_v23, %v773_v31 }
  0x72   : > { %v981_v48 = vadd.f32 %v965_v22, %v929_v38  ;;  %v758_v42 = vmul.f32 %v2758_v36, %v3774_v56  ;;  %v1085_v50 = vadd.f32 %v1069_v1, %v1032_v45  ;;  %v2761_v36 = vld [vmem:[%s3765_s29 + $0x60] sm:$0xff]  ;;  %v1174_v1 = vmul.f32 %v3797_v8, %v2792_v54 }
  0x73   : > { %v1135_v33 = vadd.f32 %v1119_v28, %v1083_v20  ;;  %v966_v28 = vmul.f32 %v3852_v2, %v3786_v0  ;;  %v1136_v47 = vadd.f32 %v1120_v43, %v1084_v35  ;;  %v877_v49 = vadd.f32 %v861_v32, %v825_v40  ;;  %v2793_v20 = vld [vmem:[%s3765_s29 + $0x62] sm:$0xff] }
  0x74   : > { %v1033_v53 = vadd.f32 %v1017_v18, %v981_v48  ;;  %v774_v58 = vadd.f32 %v3779_v60, %v758_v42  ;;  %v1137_v61 = vadd.f32 %v1121_v12, %v1085_v50  ;;  %v1071_v6 = vmul.f32 %v2761_v36, %v3792_v5  ;;  %v2762_v32 = vld [vmem:[%s3765_s29 + $0x68] sm:$0xff]  ;;  %v2763_v50 = vld [vmem:[%s3765_s29 + $0x78] sm:$0xff] }
  0x75   : > { %v1187_v41 = vadd.f32 %v3817_v26, %v1135_v33  ;;  %v1018_v26 = vmul.f32 %v3855_v3, %v3790_v4  ;;  %v1188_v43 = vadd.f32 %v1172_v46, %v1136_v47  ;;  %v930_v55 = vadd.f32 %v914_v25, %v877_v49 }
  0x76   : > { %v1086_v7 = vadd.f32 %v1070_v24, %v1033_v53  ;;  %v826_v11 = vadd.f32 %v810_v51, %v774_v58  ;;  %v1189_v46 = vadd.f32 %v1173_v13, %v1137_v61  ;;  %v1123_v14 = vmul.f32 %v2777_v37, %v3799_v9  ;;  %v2779_v51 = vld [vmem:[%s3765_s29 + $0x79] sm:$0xff] }
  0x77   : > { %1203 = vst [vmem:[%s3885_s7] sm:$0xff] %v1187_v41  ;;  %1204 = vst [vmem:[%s3885_s7 + $0x8] sm:$0xff] %v1188_v43  ;;  %v982_v10 = vadd.f32 %v966_v28, %v930_v55  ;;  %v759_v12 = vmul.f32 %v3847_v59, %v3774_v56  ;;  %v811_v15 = vmul.f32 %v3852_v2, %v3776_v57  ;;  %v2794_v41 = vld [vmem:[%s3765_s29 + $0x6a] sm:$0xff] }
  0x78   : > { %v1138_v16 = vadd.f32 %v1122_v19, %v1086_v7  ;;  %v878_v21 = vadd.f32 %v862_v52, %v826_v11  ;;  %v967_v22 = vmul.f32 %v2776_v39, %v3786_v0  ;;  %1205 = vst [vmem:[%s3885_s7 + $0x10] sm:$0xff] %v1189_v46  ;;  %v1175_v13 = vmul.f32 %v3797_v8, %v2793_v20  ;;  %v2764_v46 = vld [vmem:[%s3765_s29 + $0x80] sm:$0xff] }
  0x79   : > { %v1034_v17 = vadd.f32 %v1018_v26, %v982_v10  ;;  %v775_v23 = vadd.f32 %v3779_v60, %v759_v12  ;;  %v863_v27 = vmul.f32 %v3855_v3, %v3782_v62  ;;  %v1019_v31 = vmul.f32 %v2792_v54, %v3790_v4 }
  0x7a   : > { %v1190_v59 = vadd.f32 %v1174_v1, %v1138_v16  ;;  %v931_v2 = vadd.f32 %v915_v44, %v878_v21  ;;  %v1072_v33 = vmul.f32 %v2762_v32, %v3792_v5  ;;  %v916_v24 = vmul.f32 %v2761_v36, %v3784_v63  ;;  %v2780_v21 = vld [vmem:[%s3765_s29 + $0x81] sm:$0xff] }
  0x7b   : > { %v1087_v29 = vadd.f32 %v1071_v6, %v1034_v17  ;;  %v827_v18 = vadd.f32 %v811_v15, %v775_v23  ;;  %v760_v35 = vmul.f32 %v3870_v30, %v3774_v56  ;;  %v1124_v40 = vmul.f32 %v2778_v34, %v3799_v9 }
  0x7c   : > { %1206 = vst [vmem:[%s3885_s7 + $0x18] sm:$0xff] %v1190_v59  ;;  %v983_v3 = vadd.f32 %v967_v22, %v931_v2  ;;  %v812_v25 = vmul.f32 %v2776_v39, %v3776_v57  ;;  %v968_v19 = vmul.f32 %v2777_v37, %v3786_v0  ;;  %v864_v47 = vmul.f32 %v2792_v54, %v3782_v62  ;;  %v2795_v54 = vld [vmem:[%s3765_s29 + $0x7a] sm:$0xff]  ;;  %v2796_v22 = vld [vmem:[%s3765_s29 + $0x82] sm:$0xff] }
  0x7d   : > { %v1139_v38 = vadd.f32 %v1123_v14, %v1087_v29  ;;  %v879_v45 = vadd.f32 %v863_v27, %v827_v18  ;;  %v776_v28 = vadd.f32 %v3779_v60, %v760_v35  ;;  %v1176_v49 = vmul.f32 %v3797_v8, %v2794_v41  ;;  %v2765_v18 = vld [vmem:[%s3765_s29 + $0x90] sm:$0xff] }
  0x7e   : > { %v1035_v30 = vadd.f32 %v1019_v31, %v983_v3  ;;  %v1020_v42 = vmul.f32 %v2793_v20, %v3790_v4  ;;  %v1073_v39 = vmul.f32 %v2763_v50, %v3792_v5  ;;  %v917_v43 = vmul.f32 %v2762_v32, %v3784_v63 }
  0x7f   : > { %v1191_v48 = vadd.f32 %v1175_v13, %v1139_v38  ;;  %v932_v26 = vadd.f32 %v916_v24, %v879_v45  ;;  %v828_v52 = vadd.f32 %v812_v25, %v776_v28  ;;  %v1125_v55 = vmul.f32 %v2779_v51, %v3799_v9 }
  0x80   : > { %v1088_v53 = vadd.f32 %v1072_v33, %v1035_v30  ;;  %v761_v58 = vmul.f32 %v2761_v36, %v3774_v56  ;;  %v813_v61 = vmul.f32 %v2777_v37, %v3776_v57  ;;  %v1177_v6 = vmul.f32 %v3797_v8, %v2795_v54 }
  0x81   : > { %1207 = vst [vmem:[%s3885_s7 + $0x20] sm:$0xff] %v1191_v48  ;;  %v984_v1 = vadd.f32 %v968_v19, %v932_v26  ;;  %v880_v7 = vadd.f32 %v864_v47, %v828_v52  ;;  %v969_v10 = vmul.f32 %v2778_v34, %v3786_v0  ;;  %v1021_v44 = vmul.f32 %v2794_v41, %v3790_v4 }
  0x82   : > { %v1140_v11 = vadd.f32 %v1124_v40, %v1088_v53  ;;  %v777_v14 = vadd.f32 %v3779_v60, %v761_v58  ;;  %v865_v12 = vmul.f32 %v2793_v20, %v3782_v62  ;;  %v1074_v37 = vmul.f32 %v2764_v46, %v3792_v5 }
  0x83   : > { %v1036_v36 = vadd.f32 %v1020_v42, %v984_v1  ;;  %v933_v15 = vadd.f32 %v917_v43, %v880_v7  ;;  %v918_v16 = vmul.f32 %v2763_v50, %v3784_v63  ;;  %v762_v23 = vmul.f32 %v2762_v32, %v3774_v56  ;;  %v2797_v42 = vld [vmem:[%s3765_s29 + $0x92] sm:$0xff] }
  0x84   : > { %v1192_v17 = vadd.f32 %v1176_v49, %v1140_v11  ;;  %v829_v13 = vadd.f32 %v813_v61, %v777_v14  ;;  %v814_v27 = vmul.f32 %v2778_v34, %v3776_v57  ;;  %v1126_v2 = vmul.f32 %v2780_v21, %v3799_v9  ;;  %v2781_v49 = vld [vmem:[%s3765_s29 + $0x91] sm:$0xff] }
  0x85   : > { %v1089_v59 = vadd.f32 %v1073_v39, %v1036_v36  ;;  %v985_v29 = vadd.f32 %v969_v10, %v933_v15  ;;  %v1178_v20 = vmul.f32 %v3797_v8, %v2796_v22  ;;  %v970_v33 = vmul.f32 %v2779_v51, %v3786_v0  ;;  %v2766_v61 = vld [vmem:[%s3765_s29 + $0x98] sm:$0xff] }
  0x86   : > { %1208 = vst [vmem:[%s3885_s7 + $0x28] sm:$0xff] %v1192_v17  ;;  %v881_v31 = vadd.f32 %v865_v12, %v829_v13  ;;  %v778_v24 = vadd.f32 %v3779_v60, %v762_v23  ;;  %v866_v35 = vmul.f32 %v2794_v41, %v3782_v62  ;;  %v1022_v34 = vmul.f32 %v2795_v54, %v3790_v4  ;;  %v2782_v12 = vld [vmem:[%s3765_s29 + $0x99] sm:$0xff] }
  0x87   : > { %v1141_v32 = vadd.f32 %v1125_v55, %v1089_v59  ;;  %v1037_v38 = vadd.f32 %v1021_v44, %v985_v29  ;;  %v1075_v3 = vmul.f32 %v2765_v18, %v3792_v5  ;;  %v919_v45 = vmul.f32 %v2764_v46, %v3784_v63  ;;  %v2798_v36 = vld [vmem:[%s3765_s29 + $0x9a] sm:$0xff]  ;;  %v2767_v29 = vld [vmem:[%s3765_s29 + $0xa8] sm:$0xff] }
  0x88   : > { %v934_v40 = vadd.f32 %v918_v16, %v881_v31  ;;  %v830_v25 = vadd.f32 %v814_v27, %v778_v24  ;;  %v763_v19 = vmul.f32 %v2763_v50, %v3774_v56  ;;  %v971_v48 = vmul.f32 %v2780_v21, %v3786_v0 }
  0x89   : > { %v1193_v28 = vadd.f32 %v1177_v6, %v1141_v32  ;;  %v1090_v47 = vadd.f32 %v1074_v37, %v1037_v38  ;;  %v815_v41 = vmul.f32 %v2779_v51, %v3776_v57  ;;  %v867_v52 = vmul.f32 %v2795_v54, %v3782_v62  ;;  %v2783_v38 = vld [vmem:[%s3765_s29 + $0xa9] sm:$0xff] }
  0x8a   : > { %v986_v30 = vadd.f32 %v970_v33, %v934_v40  ;;  %v882_v26 = vadd.f32 %v866_v35, %v830_v25  ;;  %v779_v39 = vadd.f32 %v3779_v60, %v763_v19  ;;  %v1127_v50 = vmul.f32 %v2781_v49, %v3799_v9 }
  0x8b   : > { %1209 = vst [vmem:[%s3885_s7 + $0x30] sm:$0xff] %v1193_v28  ;;  %v1142_v43 = vadd.f32 %v1126_v2, %v1090_v47  ;;  %v1179_v53 = vmul.f32 %v3797_v8, %v2797_v42  ;;  %v1023_v55 = vmul.f32 %v2796_v22, %v3790_v4  ;;  %v920_v6 = vmul.f32 %v2765_v18, %v3784_v63 }
  0x8c   : > { %v1038_v51 = vadd.f32 %v1022_v34, %v986_v30  ;;  %v935_v58 = vadd.f32 %v919_v45, %v882_v26  ;;  %v831_v1 = vadd.f32 %v815_v41, %v779_v39  ;;  %v1076_v54 = vmul.f32 %v2766_v61, %v3792_v5  ;;  %v2799_v34 = vld [vmem:[%s3765_s29 + $0xaa] sm:$0xff] }
  0x8d   : > { %v1194_v7 = vadd.f32 %v1178_v20, %v1142_v43  ;;  %v764_v10 = vmul.f32 %v2764_v46, %v3774_v56  ;;  %v816_v11 = vmul.f32 %v2780_v21, %v3776_v57  ;;  %v972_v37 = vmul.f32 %v2781_v49, %v3786_v0  ;;  %v2768_v30 = vld [vmem:[%s3765_s29 + $0xb0] sm:$0xff] }
  0x8e   : > { %v1091_v44 = vadd.f32 %v1075_v3, %v1038_v51  ;;  %v987_v14 = vadd.f32 %v971_v48, %v935_v58  ;;  %v883_v15 = vadd.f32 %v867_v52, %v831_v1  ;;  %v1128_v16 = vmul.f32 %v2782_v12, %v3799_v9 }
  0x8f   : > { %1210 = vst [vmem:[%s3885_s7 + $0x38] sm:$0xff] %v1194_v7  ;;  %v1180_v17 = vmul.f32 %v3797_v8, %v2798_v36  ;;  %v780_v13 = vadd.f32 %v3779_v60, %v764_v10  ;;  %v868_v46 = vmul.f32 %v2796_v22, %v3782_v62  ;;  %v1024_v59 = vmul.f32 %v2797_v42, %v3790_v4  ;;  %v2800_v7 = vld [vmem:[%s3765_s29 + $0xb2] sm:$0xff] }
  0x90   : > { %v1143_v21 = vadd.f32 %v1127_v50, %v1091_v44  ;;  %v1039_v23 = vadd.f32 %v1023_v55, %v987_v14  ;;  %v936_v27 = vadd.f32 %v920_v6, %v883_v15  ;;  %v1077_v2 = vmul.f32 %v2767_v29, %v3792_v5  ;;  %v2769_v15 = vld [vmem:[%s3765_s29 + $0xc0] sm:$0xff] }
  0x91   : > { %v832_v20 = vadd.f32 %v816_v11, %v780_v13  ;;  %v921_v31 = vmul.f32 %v2766_v61, %v3784_v63  ;;  %v765_v33 = vmul.f32 %v2765_v18, %v3774_v56  ;;  %v817_v22 = vmul.f32 %v2781_v49, %v3776_v57 }
  0x92   : > { %v1195_v24 = vadd.f32 %v1179_v53, %v1143_v21  ;;  %v1092_v35 = vadd.f32 %v1076_v54, %v1039_v23  ;;  %v988_v32 = vadd.f32 %v972_v37, %v936_v27  ;;  %v973_v40 = vmul.f32 %v2782_v12, %v3786_v0  ;;  %v2784_v53 = vld [vmem:[%s3765_s29 + $0xb1] sm:$0xff]  ;;  %v2785_v21 = vld [vmem:[%s3765_s29 + $0xc1] sm:$0xff] }
  0x93   : > { %v884_v3 = vadd.f32 %v868_v46, %v832_v20  ;;  %v781_v25 = vadd.f32 %v3779_v60, %v765_v33  ;;  %v869_v45 = vmul.f32 %v2797_v42, %v3782_v62  ;;  %v1129_v18 = vmul.f32 %v2783_v38, %v3799_v9  ;;  %v2801_v23 = vld [vmem:[%s3765_s29 + $0xc2] sm:$0xff] }
  0x94   : > { %1211 = vst [vmem:[%s3885_s7 + $0x40] sm:$0xff] %v1195_v24  ;;  %v1144_v19 = vadd.f32 %v1128_v16, %v1092_v35  ;;  %v1040_v28 = vadd.f32 %v1024_v59, %v988_v32  ;;  %v1181_v47 = vmul.f32 %v3797_v8, %v2799_v34  ;;  %v1025_v41 = vmul.f32 %v2798_v36, %v3790_v4  ;;  %v2770_v35 = vld [vmem:[%s3765_s29 + $0xc8] sm:$0xff] }
  0x95   : > { %v937_v48 = vadd.f32 %v921_v31, %v884_v3  ;;  %v833_v49 = vadd.f32 %v817_v22, %v781_v25  ;;  %v922_v26 = vmul.f32 %v2767_v29, %v3784_v63  ;;  %v1078_v42 = vmul.f32 %v2768_v30, %v3792_v5 }
  0x96   : > { %v1196_v39 = vadd.f32 %v1180_v17, %v1144_v19  ;;  %v1093_v52 = vadd.f32 %v1077_v2, %v1040_v28  ;;  %v766_v43 = vmul.f32 %v2766_v61, %v3774_v56  ;;  %v974_v51 = vmul.f32 %v2783_v38, %v3786_v0  ;;  %v2786_v19 = vld [vmem:[%s3765_s29 + $0xc9] sm:$0xff] }
  0x97   : > { %v989_v50 = vadd.f32 %v973_v40, %v937_v48  ;;  %v885_v55 = vadd.f32 %v869_v45, %v833_v49  ;;  %v818_v58 = vmul.f32 %v2782_v12, %v3776_v57  ;;  %v1130_v6 = vmul.f32 %v2784_v53, %v3799_v9 }
  0x98   : > { %1212 = vst [vmem:[%s3885_s7 + $0x48] sm:$0xff] %v1196_v39  ;;  %v1145_v1 = vadd.f32 %v1129_v18, %v1093_v52  ;;  %v782_v54 = vadd.f32 %v3779_v60, %v766_v43  ;;  %v870_v10 = vmul.f32 %v2798_v36, %v3782_v62  ;;  %v1182_v11 = vmul.f32 %v3797_v8, %v2800_v7  ;;  %v2771_v52 = vld [vmem:[%s3765_s29 + $0xd8] sm:$0xff] }
  0x99   : > { %v1041_v61 = vadd.f32 %v1025_v41, %v989_v50  ;;  %v938_v44 = vadd.f32 %v922_v26, %v885_v55  ;;  %v1026_v14 = vmul.f32 %v2799_v34, %v3790_v4  ;;  %v1079_v37 = vmul.f32 %v2769_v15, %v3792_v5  ;;  %v2802_v26 = vld [vmem:[%s3765_s29 + $0xca] sm:$0xff] }
  0x9a   : > { %v1197_v12 = vadd.f32 %v1181_v47, %v1145_v1  ;;  %v834_v16 = vadd.f32 %v818_v58, %v782_v54  ;;  %v923_v17 = vmul.f32 %v2768_v30, %v3784_v63  ;;  %v767_v36 = vmul.f32 %v2767_v29, %v3774_v56  ;;  %v2787_v1 = vld [vmem:[%s3765_s29 + $0xd9] sm:$0xff] }
  0x9b   : > { %v1094_v13 = vadd.f32 %v1078_v42, %v1041_v61  ;;  %v990_v46 = vadd.f32 %v974_v51, %v938_v44  ;;  %v819_v27 = vmul.f32 %v2783_v38, %v3776_v57  ;;  %v1131_v59 = vmul.f32 %v2785_v21, %v3799_v9 }
  0x9c   : > { %1213 = vst [vmem:[%s3885_s7 + $0x50] sm:$0xff] %v1197_v12  ;;  %v1183_v2 = vmul.f32 %v3797_v8, %v2801_v23  ;;  %v886_v20 = vadd.f32 %v870_v10, %v834_v16  ;;  %v975_v31 = vmul.f32 %v2784_v53, %v3786_v0  ;;  %v783_v32 = vadd.f32 %v3779_v60, %v767_v36 }
  0x9d   : > { %v1146_v33 = vadd.f32 %v1130_v6, %v1094_v13  ;;  %v1042_v24 = vadd.f32 %v1026_v14, %v990_v46  ;;  %v871_v22 = vmul.f32 %v2799_v34, %v3782_v62  ;;  %v1027_v38 = vmul.f32 %v2800_v7, %v3790_v4  ;;  %v2772_v46 = vld [vmem:[%s3765_s29 + $0xe0] sm:$0xff] }
  0x9e   : > { %v939_v29 = vadd.f32 %v923_v17, %v886_v20  ;;  %v1080_v3 = vmul.f32 %v2770_v35, %v3792_v5  ;;  %v924_v40 = vmul.f32 %v2769_v15, %v3784_v63  ;;  %v835_v28 = vadd.f32 %v819_v27, %v783_v32 }
  0x9f   : > { %v1198_v25 = vadd.f32 %v1182_v11, %v1146_v33  ;;  %v1095_v45 = vadd.f32 %v1079_v37, %v1042_v24  ;;  %v768_v18 = vmul.f32 %v2768_v30, %v3774_v56  ;;  %v1132_v48 = vmul.f32 %v2786_v19, %v3799_v9  ;;  %v2803_v11 = vld [vmem:[%s3765_s29 + $0xda] sm:$0xff]  ;;  %v2804_v33 = vld [vmem:[%s3765_s29 + $0xe2] sm:$0xff] }
  0xa0   : > { %v991_v47 = vadd.f32 %v975_v31, %v939_v29  ;;  %v976_v34 = vmul.f32 %v2785_v21, %v3786_v0  ;;  %v820_v41 = vmul.f32 %v2784_v53, %v3776_v57  ;;  %v887_v39 = vadd.f32 %v871_v22, %v835_v28  ;;  %v2788_v31 = vld [vmem:[%s3765_s29 + $0xe1] sm:$0xff] }
  0xa1   : > { %1214 = vst [vmem:[%s3885_s7 + $0x58] sm:$0xff] %v1198_v25  ;;  %v1147_v49 = vadd.f32 %v1131_v59, %v1095_v45  ;;  %v784_v42 = vadd.f32 %v3779_v60, %v768_v18  ;;  %v872_v43 = vmul.f32 %v2800_v7, %v3782_v62  ;;  %v1184_v50 = vmul.f32 %v3797_v8, %v2802_v26  ;;  %v2902_v45 = vld [vmem:[%s3765_s29 + $0xf0] sm:$0xff] }
  0xa2   : > { %v1043_v30 = vadd.f32 %v1027_v38, %v991_v47  ;;  %v1028_v55 = vmul.f32 %v2801_v23, %v3790_v4  ;;  %v1081_v51 = vmul.f32 %v2771_v52, %v3792_v5  ;;  %v940_v53 = vadd.f32 %v924_v40, %v887_v39 }
  0xa3   : > { %v1199_v58 = vadd.f32 %v1183_v2, %v1147_v49  ;;  %v836_v6 = vadd.f32 %v820_v41, %v784_v42  ;;  %v925_v54 = vmul.f32 %v2770_v35, %v3784_v63  ;;  %v1133_v61 = vmul.f32 %v2787_v1, %v3799_v9 }
  0xa4   : > { %v1096_v10 = vadd.f32 %v1080_v3, %v1043_v30  ;;  %v1236_v7 = vmul.f32 %v2769_v15, %v3774_v56  ;;  %v1284_v44 = vmul.f32 %v2785_v21, %v3776_v57  ;;  %v992_v14 = vadd.f32 %v976_v34, %v940_v53 }
  0xa5   : > { %1215 = vst [vmem:[%s3885_s7 + $0x60] sm:$0xff] %v1199_v58  ;;  %v1185_v12 = vmul.f32 %v3797_v8, %v2803_v11  ;;  %v888_v37 = vadd.f32 %v872_v43, %v836_v6  ;;  %v977_v16 = vmul.f32 %v2786_v19, %v3786_v0  ;;  %v1029_v13 = vmul.f32 %v2802_v26, %v3790_v4 }
  0xa6   : > { %v1148_v17 = vadd.f32 %v1132_v48, %v1096_v10  ;;  %v1252_v36 = vadd.f32 %v3779_v60, %v1236_v7  ;;  %v1332_v15 = vmul.f32 %v2801_v23, %v3782_v62  ;;  %v1044_v27 = vadd.f32 %v1028_v55, %v992_v14  ;;  %v2918_v55 = vld [vmem:[%s3765_s29 + $0xf1] sm:$0xff] }
  0xa7   : > { %v941_v21 = vadd.f32 %v925_v54, %v888_v37  ;;  %v1082_v59 = vmul.f32 %v2772_v46, %v3792_v5  ;;  %v1381_v2 = vmul.f32 %v2771_v52, %v3784_v63  ;;  %v1237_v32 = vmul.f32 %v2770_v35, %v3774_v56 }
  0xa8   : > { %v1200_v20 = vadd.f32 %v1184_v50, %v1148_v17  ;;  %v1300_v24 = vadd.f32 %v1284_v44, %v1252_v36  ;;  %v1285_v22 = vmul.f32 %v2786_v19, %v3776_v57  ;;  %v1097_v29 = vadd.f32 %v1081_v51, %v1044_v27  ;;  %v2934_v51 = vld [vmem:[%s3765_s29 + $0xf2] sm:$0xff]  ;;  %v2935_v27 = vld [vmem:[%s3765_s29 + $0xfa] sm:$0xff] }
  0xa9   : > { %v993_v38 = vadd.f32 %v977_v16, %v941_v21  ;;  %v1134_v3 = vmul.f32 %v2788_v31, %v3799_v9  ;;  %v1186_v23 = vmul.f32 %v3797_v8, %v2804_v33  ;;  %v1429_v25 = vmul.f32 %v2787_v1, %v3786_v0  ;;  %v2903_v44 = vld [vmem:[%s3765_s29 + $0xf8] sm:$0xff] }
  0xaa   : > { %1216 = vst [vmem:[%s3885_s7 + $0x68] sm:$0xff] %v1200_v20  ;;  %v1348_v40 = vadd.f32 %v1332_v15, %v1300_v24  ;;  %v1253_v28 = vadd.f32 %v3779_v60, %v1237_v32  ;;  %v1333_v18 = vmul.f32 %v2802_v26, %v3782_v62  ;;  %v1149_v35 = vadd.f32 %v1133_v61, %v1097_v29  ;;  %v2919_v15 = vld [vmem:[%s3765_s29 + $0xf9] sm:$0xff] }
  0xab   : > { %v1045_v47 = vadd.f32 %v1029_v13, %v993_v38  ;;  %v1477_v19 = vmul.f32 %v2803_v11, %v3790_v4  ;;  %v1526_v48 = vmul.f32 %v2902_v45, %v3792_v5  ;;  %v1382_v49 = vmul.f32 %v2772_v46, %v3784_v63  ;;  %v2904_v38 = vld [vmem:[%s3765_s29 + $0x108] sm:$0xff] }
  0xac   : > { %v1397_v34 = vadd.f32 %v1381_v2, %v1348_v40  ;;  %v1301_v41 = vadd.f32 %v1285_v22, %v1253_v28  ;;  %v1238_v39 = vmul.f32 %v2771_v52, %v3774_v56  ;;  %v1201_v42 = vadd.f32 %v1185_v12, %v1149_v35 }
  0xad   : > { %v1098_v43 = vadd.f32 %v1082_v59, %v1045_v47  ;;  %v1430_v30 = vmul.f32 %v2788_v31, %v3786_v0  ;;  %v1286_v26 = vmul.f32 %v2787_v1, %v3776_v57  ;;  %v1334_v6 = vmul.f32 %v2803_v11, %v3782_v62  ;;  %v2920_v47 = vld [vmem:[%s3765_s29 + $0x109] sm:$0xff] }
  0xae   : > { %v1445_v50 = vadd.f32 %v1429_v25, %v1397_v34  ;;  %v1349_v58 = vadd.f32 %v1333_v18, %v1301_v41  ;;  %v1254_v53 = vadd.f32 %v3779_v60, %v1238_v39  ;;  %1217 = vst [vmem:[%s3885_s7 + $0x70] sm:$0xff] %v1201_v42  ;;  %v1574_v52 = vmul.f32 %v2918_v55, %v3799_v9 }
  0xaf   : > { %v1150_v54 = vadd.f32 %v1134_v3, %v1098_v43  ;;  %v1622_v10 = vmul.f32 %v2934_v51, %v3797_v8  ;;  %v1478_v61 = vmul.f32 %v2804_v33, %v3790_v4  ;;  %v1383_v12 = vmul.f32 %v2902_v45, %v3784_v63 }
  0xb0   : > { %v1493_v1 = vadd.f32 %v1477_v19, %v1445_v50  ;;  %v1398_v7 = vadd.f32 %v1382_v49, %v1349_v58  ;;  %v1302_v14 = vadd.f32 %v1286_v26, %v1254_v53  ;;  %v1527_v11 = vmul.f32 %v2903_v44, %v3792_v5  ;;  %v2936_v19 = vld [vmem:[%s3765_s29 + $0x10a] sm:$0xff] }
  0xb1   : > { %v1202_v37 = vadd.f32 %v1186_v23, %v1150_v54  ;;  %v1239_v16 = vmul.f32 %v2772_v46, %v3774_v56  ;;  %v1287_v17 = vmul.f32 %v2788_v31, %v3776_v57  ;;  %v1431_v59 = vmul.f32 %v2918_v55, %v3786_v0  ;;  %v2905_v50 = vld [vmem:[%s3765_s29 + $0x110] sm:$0xff] }
  0xb2   : > { %v1542_v13 = vadd.f32 %v1526_v48, %v1493_v1  ;;  %v1446_v36 = vadd.f32 %v1430_v30, %v1398_v7  ;;  %v1350_v21 = vadd.f32 %v1334_v6, %v1302_v14  ;;  %v1575_v2 = vmul.f32 %v2919_v15, %v3799_v9 }
  0xb3   : > { %1218 = vst [vmem:[%s3885_s7 + $0x78] sm:$0xff] %v1202_v37  ;;  %v1623_v20 = vmul.f32 %v2935_v27, %v3797_v8  ;;  %v1255_v24 = vadd.f32 %v3779_v60, %v1239_v16  ;;  %v1335_v46 = vmul.f32 %v2804_v33, %v3782_v62  ;;  %v1479_v29 = vmul.f32 %v2934_v51, %v3790_v4  ;;  %v2937_v37 = vld [vmem:[%s3765_s29 + $0x112] sm:$0xff] }
  0xb4   : > { %v1590_v31 = vadd.f32 %v1574_v52, %v1542_v13  ;;  %v1494_v32 = vadd.f32 %v1478_v61, %v1446_v36  ;;  %v1399_v22 = vadd.f32 %v1383_v12, %v1350_v21  ;;  %v1528_v3 = vmul.f32 %v2904_v38, %v3792_v5  ;;  %v2906_v21 = vld [vmem:[%s3765_s29 + $0x120] sm:$0xff] }
  0xb5   : > { %v1303_v23 = vadd.f32 %v1287_v17, %v1255_v24  ;;  %v1384_v40 = vmul.f32 %v2903_v44, %v3784_v63  ;;  %v1240_v25 = vmul.f32 %v2902_v45, %v3774_v56  ;;  %v1288_v33 = vmul.f32 %v2918_v55, %v3776_v57 }
  0xb6   : > { %v1638_v28 = vadd.f32 %v1622_v10, %v1590_v31  ;;  %v1543_v18 = vadd.f32 %v1527_v11, %v1494_v32  ;;  %v1447_v35 = vadd.f32 %v1431_v59, %v1399_v22  ;;  %v1432_v34 = vmul.f32 %v2919_v15, %v3786_v0  ;;  %v2921_v10 = vld [vmem:[%s3765_s29 + $0x111] sm:$0xff]  ;;  %v2922_v31 = vld [vmem:[%s3765_s29 + $0x121] sm:$0xff] }
  0xb7   : > { %v1351_v48 = vadd.f32 %v1335_v46, %v1303_v23  ;;  %v1256_v41 = vadd.f32 %v3779_v60, %v1240_v25  ;;  %v1336_v49 = vmul.f32 %v2934_v51, %v3782_v62  ;;  %v1576_v45 = vmul.f32 %v2920_v47, %v3799_v9  ;;  %v2938_v32 = vld [vmem:[%s3765_s29 + $0x122] sm:$0xff] }
  0xb8   : > { %2950 = vst [vmem:[%s3885_s7 + $0x80] sm:$0xff] %v1638_v28  ;;  %v1591_v39 = vadd.f32 %v1575_v2, %v1543_v18  ;;  %v1495_v42 = vadd.f32 %v1479_v29, %v1447_v35  ;;  %v1624_v43 = vmul.f32 %v2936_v19, %v3797_v8  ;;  %v1480_v26 = vmul.f32 %v2935_v27, %v3790_v4  ;;  %v2907_v18 = vld [vmem:[%s3765_s29 + $0x128] sm:$0xff] }
  0xb9   : > { %v1400_v30 = vadd.f32 %v1384_v40, %v1351_v48  ;;  %v1304_v55 = vadd.f32 %v1288_v33, %v1256_v41  ;;  %v1385_v58 = vmul.f32 %v2904_v38, %v3784_v63  ;;  %v1529_v51 = vmul.f32 %v2905_v50, %v3792_v5 }
  0xba   : > { %v1639_v53 = vadd.f32 %v1623_v20, %v1591_v39  ;;  %v1544_v6 = vadd.f32 %v1528_v3, %v1495_v42  ;;  %v1241_v54 = vmul.f32 %v2903_v44, %v3774_v56  ;;  %v1433_v1 = vmul.f32 %v2920_v47, %v3786_v0  ;;  %v2923_v39 = vld [vmem:[%s3765_s29 + $0x129] sm:$0xff] }
  0xbb   : > { %v1448_v52 = vadd.f32 %v1432_v34, %v1400_v30  ;;  %v1352_v61 = vadd.f32 %v1336_v49, %v1304_v55  ;;  %v1289_v7 = vmul.f32 %v2919_v15, %v3776_v57  ;;  %v1577_v12 = vmul.f32 %v2921_v10, %v3799_v9 }
  0xbc   : > { %2951 = vst [vmem:[%s3885_s7 + $0x88] sm:$0xff] %v1639_v53  ;;  %v1592_v14 = vadd.f32 %v1576_v45, %v1544_v6  ;;  %v1257_v11 = vadd.f32 %v3779_v60, %v1241_v54  ;;  %v1337_v16 = vmul.f32 %v2935_v27, %v3782_v62  ;;  %v1625_v17 = vmul.f32 %v2937_v37, %v3797_v8  ;;  %v2908_v6 = vld [vmem:[%s3765_s29 + $0x138] sm:$0xff] }
  0xbd   : > { %v1496_v44 = vadd.f32 %v1480_v26, %v1448_v52  ;;  %v1401_v13 = vadd.f32 %v1385_v58, %v1352_v61  ;;  %v1481_v36 = vmul.f32 %v2936_v19, %v3790_v4  ;;  %v1530_v59 = vmul.f32 %v2906_v21, %v3792_v5  ;;  %v2939_v58 = vld [vmem:[%s3765_s29 + $0x12a] sm:$0xff] }
  0xbe   : > { %v1640_v15 = vadd.f32 %v1624_v43, %v1592_v14  ;;  %v1305_v2 = vadd.f32 %v1289_v7, %v1257_v11  ;;  %v1386_v20 = vmul.f32 %v2905_v50, %v3784_v63  ;;  %v1242_v27 = vmul.f32 %v2904_v38, %v3774_v56  ;;  %v2924_v14 = vld [vmem:[%s3765_s29 + $0x139] sm:$0xff] }
  0xbf   : > { %v1545_v24 = vadd.f32 %v1529_v51, %v1496_v44  ;;  %v1449_v46 = vadd.f32 %v1433_v1, %v1401_v13  ;;  %v1290_v22 = vmul.f32 %v2920_v47, %v3776_v57  ;;  %v1578_v29 = vmul.f32 %v2922_v31, %v3799_v9  ;;  %v4164_v13 = vld [vmem:[%s3761_s27 + $0x8] ss:$0 sm:$0xff] }
  0xc0   : > { %2952 = vst [vmem:[%s3885_s7 + $0x90] sm:$0xff] %v1640_v15  ;;  %v1626_v3 = vmul.f32 %v2938_v32, %v3797_v8  ;;  %v1353_v23 = vadd.f32 %v1337_v16, %v1305_v2  ;;  %v1434_v40 = vmul.f32 %v2921_v10, %v3786_v0  ;;  %v1258_v35 = vadd.f32 %v3779_v60, %v1242_v27 }
  0xc1   : > { %v1593_v25 = vadd.f32 %v1577_v12, %v1545_v24  ;;  %v1497_v28 = vadd.f32 %v1481_v36, %v1449_v46  ;;  %v1338_v33 = vmul.f32 %v2936_v19, %v3782_v62  ;;  %v1482_v47 = vmul.f32 %v2937_v37, %v3790_v4  ;;  %v2909_v24 = vld [vmem:[%s3765_s29 + $0x140] sm:$0xff] }
  0xc2   : > { %v1402_v38 = vadd.f32 %v1386_v20, %v1353_v23  ;;  %v1531_v48 = vmul.f32 %v2907_v18, %v3792_v5  ;;  %v1387_v34 = vmul.f32 %v2906_v21, %v3784_v63  ;;  %v1306_v42 = vadd.f32 %v1290_v22, %v1258_v35  ;;  %v4171_v46 = vld [vmem:[%s3772_s5] ss:$0 sm:$0xff] }
  0xc3   : > { %v1641_v41 = vadd.f32 %v1625_v17, %v1593_v25  ;;  %v1546_v49 = vadd.f32 %v1530_v59, %v1497_v28  ;;  %v1243_v45 = vmul.f32 %v2905_v50, %v3774_v56  ;;  %v1579_v30 = vmul.f32 %v2923_v39, %v3799_v9  ;;  %v2941_v25 = vld [vmem:[%s3765_s29 + $0x142] sm:$0xff] }
  0xc4   : > { %v1450_v43 = vadd.f32 %v1434_v40, %v1402_v38  ;;  %v1435_v19 = vmul.f32 %v2922_v31, %v3786_v0  ;;  %v1291_v26 = vmul.f32 %v2921_v10, %v3776_v57  ;;  %v1354_v53 = vadd.f32 %v1338_v33, %v1306_v42  ;;  %v2925_v40 = vld [vmem:[%s3765_s29 + $0x141] sm:$0xff] }
  0xc5   : > { %2953 = vst [vmem:[%s3885_s7 + $0x98] sm:$0xff] %v1641_v41  ;;  %v1594_v55 = vadd.f32 %v1578_v29, %v1546_v49  ;;  %v1259_v51 = vadd.f32 %v3779_v60, %v1243_v45  ;;  %v1339_v54 = vmul.f32 %v2937_v37, %v3782_v62  ;;  %v1627_v52 = vmul.f32 %v2939_v58, %v3797_v8  ;;  %v2940_v37 = vld [vmem:[%s3765_s29 + $0x13a] sm:$0xff]  ;;  %v2910_v49 = vld [vmem:[%s3765_s29 + $0x150] sm:$0xff] }
  0xc6   : > { %v1498_v50 = vadd.f32 %v1482_v47, %v1450_v43  ;;  %v1483_v61 = vmul.f32 %v2938_v32, %v3790_v4  ;;  %v1532_v1 = vmul.f32 %v2908_v6, %v3792_v5  ;;  %v1403_v7 = vadd.f32 %v1387_v34, %v1354_v53 }
  0xc7   : > { %v1642_v10 = vadd.f32 %v1626_v3, %v1594_v55  ;;  %v1307_v12 = vadd.f32 %v1291_v26, %v1259_v51  ;;  %v1388_v11 = vmul.f32 %v2907_v18, %v3784_v63  ;;  %v1580_v16 = vmul.f32 %v2924_v14, %v3799_v9 }
  0xc8   : > { %v1547_v60 = vadd.f32 %v1531_v48, %v1498_v50  ;;  %v1244_v44 = vmul.f32 %v2906_v21, %v3774_v56  ;;  %v1292_v8 = vmul.f32 %v2922_v31, %v3776_v57  ;;  %v1451_v17 = vadd.f32 %v1435_v19, %v1403_v7 }
  0xc9   : > { %2954 = vst [vmem:[%s3885_s7 + $0xa0] sm:$0xff] %v1642_v10  ;;  %v1628_v36 = vmul.f32 %v4164_v13, %v2940_v37  ;;  %v1355_v15 = vadd.f32 %v1339_v54, %v1307_v12  ;;  %v1436_v59 = vmul.f32 %v2923_v39, %v3786_v0  ;;  %v1484_v20 = vmul.f32 %v2939_v58, %v3790_v4 }
  0xca   : > { %v1595_v2 = vadd.f32 %v1579_v30, %v1547_v60  ;;  %v1260_v21 = vadd.f32 %v4171_v46, %v1244_v44  ;;  %v1340_v31 = vmul.f32 %v2938_v32, %v3782_v62  ;;  %v1499_v27 = vadd.f32 %v1483_v61, %v1451_v17  ;;  %v2926_v61 = vld [vmem:[%s3765_s29 + $0x151] sm:$0xff] }
  0xcb   : > { %v1404_v22 = vadd.f32 %v1388_v11, %v1355_v15  ;;  %v1533_v29 = vmul.f32 %v2909_v24, %v3792_v5  ;;  %v1389_v3 = vmul.f32 %v2908_v6, %v3784_v63  ;;  %v1245_v35 = vmul.f32 %v2907_v18, %v3774_v56 }
  0xcc   : > { %v1643_v23 = vadd.f32 %v1627_v52, %v1595_v2  ;;  %v1308_v28 = vadd.f32 %v1292_v8, %v1260_v21  ;;  %v1293_v33 = vmul.f32 %v2923_v39, %v3776_v57  ;;  %v1548_v38 = vadd.f32 %v1532_v1, %v1499_v27  ;;  %v2942_v1 = vld [vmem:[%s3765_s29 + $0x152] sm:$0xff]  ;;  %v2943_v27 = vld [vmem:[%s3765_s29 + $0x15a] sm:$0xff] }
  0xcd   : > { %v1452_v47 = vadd.f32 %v1436_v59, %v1404_v22  ;;  %v1581_v48 = vmul.f32 %v2925_v40, %v3799_v9  ;;  %v1629_v32 = vmul.f32 %v4164_v13, %v2941_v25  ;;  %v1437_v41 = vmul.f32 %v2924_v14, %v3786_v0  ;;  %v2911_v8 = vld [vmem:[%s3765_s29 + $0x158] sm:$0xff] }
  0xce   : > { %2955 = vst [vmem:[%s3885_s7 + $0xa8] sm:$0xff] %v1643_v23  ;;  %v1356_v34 = vadd.f32 %v1340_v31, %v1308_v28  ;;  %v1261_v42 = vadd.f32 %v4171_v46, %v1245_v35  ;;  %v1341_v45 = vmul.f32 %v2939_v58, %v3782_v62  ;;  %v1596_v18 = vadd.f32 %v1580_v16, %v1548_v38  ;;  %v2927_v31 = vld [vmem:[%s3765_s29 + $0x159] sm:$0xff] }
  0xcf   : > { %v1500_v43 = vadd.f32 %v1484_v20, %v1452_v47  ;;  %v1485_v39 = vmul.f32 %v2940_v37, %v3790_v4  ;;  %v1534_v30 = vmul.f32 %v2910_v49, %v3792_v5  ;;  %v1390_v55 = vmul.f32 %v2909_v24, %v3784_v63  ;;  %v2912_v47 = vld [vmem:[%s3765_s29 + $0x168] sm:$0xff] }
  0xd0   : > { %v1405_v19 = vadd.f32 %v1389_v3, %v1356_v34  ;;  %v1309_v26 = vadd.f32 %v1293_v33, %v1261_v42  ;;  %v1246_v53 = vmul.f32 %v2908_v6, %v3774_v56  ;;  %v1644_v51 = vadd.f32 %v1628_v36, %v1596_v18 }
  0xd1   : > { %v1549_v54 = vadd.f32 %v1533_v29, %v1500_v43  ;;  %v1438_v50 = vmul.f32 %v2925_v40, %v3786_v0  ;;  %v1294_v58 = vmul.f32 %v2924_v14, %v3776_v57  ;;  %v1342_v12 = vmul.f32 %v2940_v37, %v3782_v62  ;;  %v2928_v43 = vld [vmem:[%s3765_s29 + $0x169] sm:$0xff] }
  0xd2   : > { %v1453_v52 = vadd.f32 %v1437_v41, %v1405_v19  ;;  %v1357_v10 = vadd.f32 %v1341_v45, %v1309_v26  ;;  %v1262_v7 = vadd.f32 %v4171_v46, %v1246_v53  ;;  %2956 = vst [vmem:[%s3885_s7 + $0xb0] sm:$0xff] %v1644_v51  ;;  %v1582_v6 = vmul.f32 %v2926_v61, %v3799_v9 }
  0xd3   : > { %v1597_v11 = vadd.f32 %v1581_v48, %v1549_v54  ;;  %v1630_v60 = vmul.f32 %v4164_v13, %v2942_v1  ;;  %v1486_v16 = vmul.f32 %v2941_v25, %v3790_v4  ;;  %v1391_v36 = vmul.f32 %v2910_v49, %v3784_v63 }
  0xd4   : > { %v1501_v14 = vadd.f32 %v1485_v39, %v1453_v52  ;;  %v1406_v44 = vadd.f32 %v1390_v55, %v1357_v10  ;;  %v1310_v17 = vadd.f32 %v1294_v58, %v1262_v7  ;;  %v1535_v37 = vmul.f32 %v2911_v8, %v3792_v5  ;;  %v2944_v39 = vld [vmem:[%s3765_s29 + $0x16a] sm:$0xff] }
  0xd5   : > { %v1645_v15 = vadd.f32 %v1629_v32, %v1597_v11  ;;  %v1247_v59 = vmul.f32 %v2909_v24, %v3774_v56  ;;  %v1295_v2 = vmul.f32 %v2925_v40, %v3776_v57  ;;  %v1439_v29 = vmul.f32 %v2926_v61, %v3786_v0  ;;  %v2913_v52 = vld [vmem:[%s3765_s29 + $0x170] sm:$0xff] }
  0xd6   : > { %v1550_v20 = vadd.f32 %v1534_v30, %v1501_v14  ;;  %v1454_v21 = vadd.f32 %v1438_v50, %v1406_v44  ;;  %v1358_v22 = vadd.f32 %v1342_v12, %v1310_v17  ;;  %v1583_v3 = vmul.f32 %v2927_v31, %v3799_v9 }
  0xd7   : > { %2957 = vst [vmem:[%s3885_s7 + $0xb8] sm:$0xff] %v1645_v15  ;;  %v1631_v23 = vmul.f32 %v4164_v13, %v2943_v27  ;;  %v1263_v28 = vadd.f32 %v4171_v46, %v1247_v59  ;;  %v1343_v24 = vmul.f32 %v2941_v25, %v3782_v62  ;;  %v1487_v38 = vmul.f32 %v2942_v1, %v3790_v4  ;;  %v2945_v15 = vld [vmem:[%s3765_s29 + $0x172] sm:$0xff] }
  0xd8   : > { %v1598_v40 = vadd.f32 %v1582_v6, %v1550_v20  ;;  %v1502_v35 = vadd.f32 %v1486_v16, %v1454_v21  ;;  %v1407_v33 = vadd.f32 %v1391_v36, %v1358_v22  ;;  %v1536_v48 = vmul.f32 %v2912_v47, %v3792_v5  ;;  %v2914_v22 = vld [vmem:[%s3765_s29 + $0x180] sm:$0xff] }
  0xd9   : > { %v1311_v32 = vadd.f32 %v1295_v2, %v1263_v28  ;;  %v1392_v34 = vmul.f32 %v2911_v8, %v3784_v63  ;;  %v1248_v41 = vmul.f32 %v2910_v49, %v3774_v56  ;;  %v1296_v25 = vmul.f32 %v2926_v61, %v3776_v57 }
  0xda   : > { %v1646_v42 = vadd.f32 %v1630_v60, %v1598_v40  ;;  %v1551_v45 = vadd.f32 %v1535_v37, %v1502_v35  ;;  %v1455_v18 = vadd.f32 %v1439_v29, %v1407_v33  ;;  %v1440_v19 = vmul.f32 %v2927_v31, %v3786_v0  ;;  %v2929_v60 = vld [vmem:[%s3765_s29 + $0x171] sm:$0xff]  ;;  %v2930_v40 = vld [vmem:[%s3765_s29 + $0x181] sm:$0xff] }
  0xdb   : > { %v1359_v30 = vadd.f32 %v1343_v24, %v1311_v32  ;;  %v1264_v26 = vadd.f32 %v4171_v46, %v1248_v41  ;;  %v1344_v55 = vmul.f32 %v2942_v1, %v3782_v62  ;;  %v1584_v49 = vmul.f32 %v2928_v43, %v3799_v9  ;;  %v2946_v35 = vld [vmem:[%s3765_s29 + $0x182] sm:$0xff] }
  0xdc   : > { %2958 = vst [vmem:[%s3885_s7 + $0xc0] sm:$0xff] %v1646_v42  ;;  %v1599_v53 = vadd.f32 %v1583_v3, %v1551_v45  ;;  %v1503_v51 = vadd.f32 %v1487_v38, %v1455_v18  ;;  %v1632_v54 = vmul.f32 %v4164_v13, %v2944_v39  ;;  %v1488_v58 = vmul.f32 %v2943_v27, %v3790_v4  ;;  %v2915_v45 = vld [vmem:[%s3765_s29 + $0x188] sm:$0xff] }
  0xdd   : > { %v1408_v50 = vadd.f32 %v1392_v34, %v1359_v30  ;;  %v1312_v61 = vadd.f32 %v1296_v25, %v1264_v26  ;;  %v1393_v10 = vmul.f32 %v2912_v47, %v3784_v63  ;;  %v1537_v1 = vmul.f32 %v2913_v52, %v3792_v5 }
  0xde   : > { %v1647_v7 = vadd.f32 %v1631_v23, %v1599_v53  ;;  %v1552_v12 = vadd.f32 %v1536_v48, %v1503_v51  ;;  %v1249_v11 = vmul.f32 %v2911_v8, %v3774_v56  ;;  %v1441_v14 = vmul.f32 %v2928_v43, %v3786_v0  ;;  %v2931_v53 = vld [vmem:[%s3765_s29 + $0x189] sm:$0xff] }
  0xdf   : > { %v1456_v6 = vadd.f32 %v1440_v19, %v1408_v50  ;;  %v1360_v16 = vadd.f32 %v1344_v55, %v1312_v61  ;;  %v1297_v44 = vmul.f32 %v2927_v31, %v3776_v57  ;;  %v1585_v36 = vmul.f32 %v2929_v60, %v3799_v9 }
  0xe0   : > { %2959 = vst [vmem:[%s3885_s7 + $0xc8] sm:$0xff] %v1647_v7  ;;  %v1600_v17 = vadd.f32 %v1584_v49, %v1552_v12  ;;  %v1265_v37 = vadd.f32 %v4171_v46, %v1249_v11  ;;  %v1345_v59 = vmul.f32 %v2943_v27, %v3782_v62  ;;  %v1633_v2 = vmul.f32 %v4164_v13, %v2945_v15  ;;  %v2916_v49 = vld [vmem:[%s3765_s29 + $0x198] sm:$0xff] }
  0xe1   : > { %v1504_v8 = vadd.f32 %v1488_v58, %v1456_v6  ;;  %v1409_v20 = vadd.f32 %v1393_v10, %v1360_v16  ;;  %v1489_v21 = vmul.f32 %v2944_v39, %v3790_v4  ;;  %v1538_v29 = vmul.f32 %v2914_v22, %v3792_v5  ;;  %v2947_v58 = vld [vmem:[%s3765_s29 + $0x18a] sm:$0xff] }
  0xe2   : > { %v1648_v31 = vadd.f32 %v1632_v54, %v1600_v17  ;;  %v1313_v3 = vadd.f32 %v1297_v44, %v1265_v37  ;;  %v1394_v23 = vmul.f32 %v2913_v52, %v3784_v63  ;;  %v1250_v27 = vmul.f32 %v2912_v47, %v3774_v56  ;;  %v2982_v16 = vld [vmem:[%s3765_s29 + $0x1b1] sm:$0xff] }
  0xe3   : > { %v1553_v28 = vadd.f32 %v1537_v1, %v1504_v8  ;;  %v1457_v24 = vadd.f32 %v1441_v14, %v1409_v20  ;;  %v1298_v33 = vmul.f32 %v2928_v43, %v3776_v57  ;;  %v1586_v38 = vmul.f32 %v2930_v40, %v3799_v9  ;;  %v2932_v1 = vld [vmem:[%s3765_s29 + $0x199] sm:$0xff] }
  0xe4   : > { %2960 = vst [vmem:[%s3885_s7 + $0xd0] sm:$0xff] %v1648_v31  ;;  %v1634_v48 = vmul.f32 %v4164_v13, %v2946_v35  ;;  %v1361_v32 = vadd.f32 %v1345_v59, %v1313_v3  ;;  %v1442_v34 = vmul.f32 %v2929_v60, %v3786_v0  ;;  %v1266_v18 = vadd.f32 %v4171_v46, %v1250_v27 }
  0xe5   : > { %v1601_v41 = vadd.f32 %v1585_v36, %v1553_v28  ;;  %v1505_v42 = vadd.f32 %v1489_v21, %v1457_v24  ;;  %v1346_v47 = vmul.f32 %v2944_v39, %v3782_v62  ;;  %v1490_v43 = vmul.f32 %v2945_v15, %v3790_v4  ;;  %v2948_v36 = vld [vmem:[%s3765_s29 + $0x19a] sm:$0xff] }
  0xe6   : > { %v1410_v25 = vadd.f32 %v1394_v23, %v1361_v32  ;;  %v1539_v30 = vmul.f32 %v2915_v45, %v3792_v5  ;;  %v1395_v19 = vmul.f32 %v2914_v22, %v3784_v63  ;;  %v1314_v51 = vadd.f32 %v1298_v33, %v1266_v18  ;;  %v2917_v22 = vld [vmem:[%s3765_s29 + $0x1a0] sm:$0xff] }
  0xe7   : > { %v1649_v26 = vadd.f32 %v1633_v2, %v1601_v41  ;;  %v1554_v55 = vadd.f32 %v1538_v29, %v1505_v42  ;;  %v1251_v54 = vmul.f32 %v2913_v52, %v3774_v56  ;;  %v1587_v39 = vmul.f32 %v2931_v53, %v3799_v9  ;;  %v2966_v52 = vld [vmem:[%s3765_s29 + $0x1b0] sm:$0xff]  ;;  %v3014_v41 = vld [vmem:[%s3765_s29 + $0x1c8] sm:$0xff] }
  0xe8   : > { %v1458_v50 = vadd.f32 %v1442_v34, %v1410_v25  ;;  %v1443_v61 = vmul.f32 %v2930_v40, %v3786_v0  ;;  %v1299_v10 = vmul.f32 %v2929_v60, %v3776_v57  ;;  %v1362_v12 = vadd.f32 %v1346_v47, %v1314_v51  ;;  %v2967_v40 = vld [vmem:[%s3765_s29 + $0x1b8] sm:$0xff] }
  0xe9   : > { %2961 = vst [vmem:[%s3885_s7 + $0xd8] sm:$0xff] %v1649_v26  ;;  %v1602_v7 = vadd.f32 %v1586_v38, %v1554_v55  ;;  %v1267_v11 = vadd.f32 %v4171_v46, %v1251_v54  ;;  %v1347_v6 = vmul.f32 %v2945_v15, %v3782_v62  ;;  %v1635_v44 = vmul.f32 %v4164_v13, %v2947_v58  ;;  %v2998_v15 = vld [vmem:[%s3765_s29 + $0x1b2] sm:$0xff]  ;;  %v2933_v38 = vld [vmem:[%s3765_s29 + $0x1a1] sm:$0xff]  ;;  %v3030_v54 = vld [vmem:[%s3765_s29 + $0x1c9] sm:$0xff] }
  0xea   : > { %v1506_v14 = vadd.f32 %v1490_v43, %v1458_v50  ;;  %v1491_v17 = vmul.f32 %v2946_v35, %v3790_v4  ;;  %v1540_v60 = vmul.f32 %v2916_v49, %v3792_v5  ;;  %v1411_v59 = vadd.f32 %v1395_v19, %v1362_v12  ;;  %v2983_v35 = vld [vmem:[%s3765_s29 + $0x1b9] sm:$0xff] }
  0xeb   : > { %v1650_v37 = vadd.f32 %v1634_v48, %v1602_v7  ;;  %v1315_v8 = vadd.f32 %v1299_v10, %v1267_v11  ;;  %v1396_v2 = vmul.f32 %v2915_v45, %v3784_v63  ;;  %v1588_v21 = vmul.f32 %v2932_v1, %v3799_v9  ;;  %v2949_v48 = vld [vmem:[%s3765_s29 + $0x1a2] sm:$0xff]  ;;  %v2999_v25 = vld [vmem:[%s3765_s29 + $0x1ba] sm:$0xff] }
  0xec   : > { %v1555_v20 = vadd.f32 %v1539_v30, %v1506_v14  ;;  %v1688_v31 = vmul.f32 %v2966_v52, %v3774_v56  ;;  %v1736_v29 = vmul.f32 %v2982_v16, %v3776_v57  ;;  %v1459_v3 = vadd.f32 %v1443_v61, %v1411_v59  ;;  %v3062_v61 = vld [vmem:[%s3765_s29 + $0x1e0] sm:$0xff]  ;;  %v3015_v52 = vld [vmem:[%s3765_s29 + $0x1d0] sm:$0xff] }
  0xed   : > { %2962 = vst [vmem:[%s3885_s7 + $0xe0] sm:$0xff] %v1650_v37  ;;  %v1636_v23 = vmul.f32 %v4164_v13, %v2948_v36  ;;  %v1363_v28 = vadd.f32 %v1347_v6, %v1315_v8  ;;  %v1444_v24 = vmul.f32 %v2931_v53, %v3786_v0  ;;  %v1492_v33 = vmul.f32 %v2947_v58, %v3790_v4  ;;  %v3046_v58 = vld [vmem:[%s3765_s29 + $0x1ca] sm:$0xff] }
  0xee   : > { %v1603_v27 = vadd.f32 %v1587_v39, %v1555_v20  ;;  %v1704_v32 = vadd.f32 %v4171_v46, %v1688_v31  ;;  %v1784_v34 = vmul.f32 %v2998_v15, %v3782_v62  ;;  %v1507_v42 = vadd.f32 %v1491_v17, %v1459_v3  ;;  %v3031_v17 = vld [vmem:[%s3765_s29 + $0x1d1] sm:$0xff]  ;;  %v3078_v15 = vld [vmem:[%s3765_s29 + $0x1e1] sm:$0xff] }
  0xef   : > { %v1412_v45 = vadd.f32 %v1396_v2, %v1363_v28  ;;  %v1541_v18 = vmul.f32 %v2917_v22, %v3792_v5  ;;  %v1833_v47 = vmul.f32 %v3014_v41, %v3784_v63  ;;  %v1689_v19 = vmul.f32 %v2967_v40, %v3774_v56  ;;  %v3094_v20 = vld [vmem:[%s3765_s29 + $0x1e2] sm:$0xff]  ;;  %v3047_v22 = vld [vmem:[%s3765_s29 + $0x1d2] sm:$0xff] }
  0xf0   : > { %v1651_v43 = vadd.f32 %v1635_v44, %v1603_v27  ;;  %v1752_v30 = vadd.f32 %v1736_v29, %v1704_v32  ;;  %v1737_v26 = vmul.f32 %v2983_v35, %v3776_v57  ;;  %v1556_v55 = vadd.f32 %v1540_v60, %v1507_v42  ;;  %v3063_v27 = vld [vmem:[%s3765_s29 + $0x1e8] sm:$0xff] }
  0xf1   : > { %v1460_v53 = vadd.f32 %v1444_v24, %v1412_v45  ;;  %v1589_v51 = vmul.f32 %v2933_v38, %v3799_v9  ;;  %v1637_v49 = vmul.f32 %v4164_v13, %v2949_v48  ;;  %v1881_v39 = vmul.f32 %v3030_v54, %v3786_v0 }
  0xf2   : > { %2963 = vst [vmem:[%s3885_s7 + $0xe8] sm:$0xff] %v1651_v43  ;;  %v1800_v50 = vadd.f32 %v1784_v34, %v1752_v30  ;;  %v1705_v10 = vadd.f32 %v4171_v46, %v1689_v19  ;;  %v1785_v7 = vmul.f32 %v2999_v25, %v3782_v62  ;;  %v1604_v12 = vadd.f32 %v1588_v21, %v1556_v55 }
  0xf3   : > { %v1508_v1 = vadd.f32 %v1492_v33, %v1460_v53  ;;  %v1929_v11 = vmul.f32 %v3046_v58, %v3790_v4  ;;  %v1978_v6 = vmul.f32 %v3062_v61, %v3792_v5  ;;  %v1834_v44 = vmul.f32 %v3015_v52, %v3784_v63 }
  0xf4   : > { %v1849_v16 = vadd.f32 %v1833_v47, %v1800_v50  ;;  %v1753_v14 = vadd.f32 %v1737_v26, %v1705_v10  ;;  %v1690_v60 = vmul.f32 %v3014_v41, %v3774_v56  ;;  %v1652_v36 = vadd.f32 %v1636_v23, %v1604_v12  ;;  %v3095_v47 = vld [vmem:[%s3765_s29 + $0x1ea] sm:$0xff]  ;;  %v3064_v50 = vld [vmem:[%s3765_s29 + $0x1f8] sm:$0xff] }
  0xf5   : > { %v1557_v37 = vadd.f32 %v1541_v18, %v1508_v1  ;;  %v1882_v59 = vmul.f32 %v3031_v17, %v3786_v0  ;;  %v1738_v8 = vmul.f32 %v3030_v54, %v3776_v57  ;;  %v1786_v29 = vmul.f32 %v3046_v58, %v3782_v62  ;;  %v3079_v18 = vld [vmem:[%s3765_s29 + $0x1e9] sm:$0xff] }
  0xf6   : > { %v1897_v2 = vadd.f32 %v1881_v39, %v1849_v16  ;;  %v1801_v21 = vadd.f32 %v1785_v7, %v1753_v14  ;;  %v1706_v31 = vadd.f32 %v4171_v46, %v1690_v60  ;;  %2964 = vst [vmem:[%s3885_s7 + $0xf0] sm:$0xff] %v1652_v36  ;;  %v2026_v23 = vmul.f32 %v3078_v15, %v3799_v9  ;;  %v3096_v16 = vld [vmem:[%s3765_s29 + $0x1fa] sm:$0xff] }
  0xf7   : > { %v1605_v3 = vadd.f32 %v1589_v51, %v1557_v37  ;;  %v2074_v28 = vmul.f32 %v4164_v13, %v3094_v20  ;;  %v1930_v24 = vmul.f32 %v3047_v22, %v3790_v4  ;;  %v1835_v38 = vmul.f32 %v3062_v61, %v3784_v63 }
  0xf8   : > { %v1945_v40 = vadd.f32 %v1929_v11, %v1897_v2  ;;  %v1850_v35 = vadd.f32 %v1834_v44, %v1801_v21  ;;  %v1754_v33 = vadd.f32 %v1738_v8, %v1706_v31  ;;  %v1979_v32 = vmul.f32 %v3063_v27, %v3792_v5 }
  0xf9   : > { %v1653_v48 = vadd.f32 %v1637_v49, %v1605_v3  ;;  %v1691_v34 = vmul.f32 %v3015_v52, %v3774_v56  ;;  %v1739_v41 = vmul.f32 %v3031_v17, %v3776_v57  ;;  %v1883_v43 = vmul.f32 %v3078_v15, %v3786_v0  ;;  %v3080_v52 = vld [vmem:[%s3765_s29 + $0x1f9] sm:$0xff] }
  0xfa   : > { %v1994_v42 = vadd.f32 %v1978_v6, %v1945_v40  ;;  %v1898_v45 = vadd.f32 %v1882_v59, %v1850_v35  ;;  %v1802_v25 = vadd.f32 %v1786_v29, %v1754_v33  ;;  %v2027_v30 = vmul.f32 %v3079_v18, %v3799_v9 }
  0xfb   : > { %2965 = vst [vmem:[%s3885_s7 + $0xf8] sm:$0xff] %v1653_v48  ;;  %v2075_v19 = vmul.f32 %v4164_v13, %v3095_v47  ;;  %v1707_v26 = vadd.f32 %v4171_v46, %v1691_v34  ;;  %v1787_v55 = vmul.f32 %v3047_v22, %v3782_v62  ;;  %v1931_v54 = vmul.f32 %v3094_v20, %v3790_v4  ;;  %v3097_v48 = vld [vmem:[%s3765_s29 + $0x202] sm:$0xff] }
  0xfc   : > { %v2042_v53 = vadd.f32 %v2026_v23, %v1994_v42  ;;  %v1946_v51 = vadd.f32 %v1930_v24, %v1898_v45  ;;  %v1851_v49 = vadd.f32 %v1835_v38, %v1802_v25  ;;  %v1980_v39 = vmul.f32 %v3064_v50, %v3792_v5  ;;  %v3066_v25 = vld [vmem:[%s3765_s29 + $0x210] sm:$0xff] }
  0xfd   : > { %v1755_v58 = vadd.f32 %v1739_v41, %v1707_v26  ;;  %v1836_v10 = vmul.f32 %v3063_v27, %v3784_v63  ;;  %v1692_v7 = vmul.f32 %v3062_v61, %v3774_v56  ;;  %v1740_v6 = vmul.f32 %v3078_v15, %v3776_v57  ;;  %v3065_v15 = vld [vmem:[%s3765_s29 + $0x200] sm:$0xff] }
  0xfe   : > { %v2090_v12 = vadd.f32 %v2074_v28, %v2042_v53  ;;  %v1995_v1 = vadd.f32 %v1979_v32, %v1946_v51  ;;  %v1899_v11 = vadd.f32 %v1883_v43, %v1851_v49  ;;  %v1884_v44 = vmul.f32 %v3079_v18, %v3786_v0  ;;  %v3081_v28 = vld [vmem:[%s3765_s29 + $0x201] sm:$0xff]  ;;  %v3082_v53 = vld [vmem:[%s3765_s29 + $0x211] sm:$0xff] }
  0xff   : > { %v1803_v14 = vadd.f32 %v1787_v55, %v1755_v58  ;;  %v1708_v17 = vadd.f32 %v4171_v46, %v1692_v7  ;;  %v1788_v60 = vmul.f32 %v3094_v20, %v3782_v62  ;;  %v2028_v61 = vmul.f32 %v3080_v52, %v3799_v9  ;;  %v3098_v51 = vld [vmem:[%s3765_s29 + $0x212] sm:$0xff] }
 0x100   : > { %3110 = vst [vmem:[%s3885_s7 + $0x100] sm:$0xff] %v2090_v12  ;;  %v2043_v36 = vadd.f32 %v2027_v30, %v1995_v1  ;;  %v1947_v37 = vadd.f32 %v1931_v54, %v1899_v11  ;;  %v2076_v59 = vmul.f32 %v4164_v13, %v3096_v16  ;;  %v1932_v2 = vmul.f32 %v3095_v47, %v3790_v4  ;;  %v3067_v1 = vld [vmem:[%s3765_s29 + $0x218] sm:$0xff] }
 0x101   : > { %v1852_v8 = vadd.f32 %v1836_v10, %v1803_v14  ;;  %v1756_v21 = vadd.f32 %v1740_v6, %v1708_v17  ;;  %v1837_v22 = vmul.f32 %v3064_v50, %v3784_v63  ;;  %v1981_v20 = vmul.f32 %v3065_v15, %v3792_v5 }
 0x102   : > { %v2091_v31 = vadd.f32 %v2075_v19, %v2043_v36  ;;  %v1996_v29 = vadd.f32 %v1980_v39, %v1947_v37  ;;  %v1693_v3 = vmul.f32 %v3063_v27, %v3774_v56  ;;  %v1885_v40 = vmul.f32 %v3080_v52, %v3786_v0  ;;  %v3083_v36 = vld [vmem:[%s3765_s29 + $0x219] sm:$0xff] }
 0x103   : > { %v1900_v23 = vadd.f32 %v1884_v44, %v1852_v8  ;;  %v1804_v24 = vadd.f32 %v1788_v60, %v1756_v21  ;;  %v1741_v35 = vmul.f32 %v3079_v18, %v3776_v57  ;;  %v2029_v38 = vmul.f32 %v3081_v28, %v3799_v9 }
 0x104   : > { %3111 = vst [vmem:[%s3885_s7 + $0x108] sm:$0xff] %v2091_v31  ;;  %v2044_v33 = vadd.f32 %v2028_v61, %v1996_v29  ;;  %v1709_v32 = vadd.f32 %v4171_v46, %v1693_v3  ;;  %v1789_v34 = vmul.f32 %v3095_v47, %v3782_v62  ;;  %v2077_v41 = vmul.f32 %v4164_v13, %v3097_v48  ;;  %v3068_v29 = vld [vmem:[%s3765_s29 + $0x228] sm:$0xff] }
 0x105   : > { %v1948_v27 = vadd.f32 %v1932_v2, %v1900_v23  ;;  %v1853_v42 = vadd.f32 %v1837_v22, %v1804_v24  ;;  %v1933_v45 = vmul.f32 %v3096_v16, %v3790_v4  ;;  %v1982_v43 = vmul.f32 %v3066_v25, %v3792_v5  ;;  %v3099_v22 = vld [vmem:[%s3765_s29 + $0x21a] sm:$0xff] }
 0x106   : > { %v2092_v18 = vadd.f32 %v2076_v59, %v2044_v33  ;;  %v1757_v30 = vadd.f32 %v1741_v35, %v1709_v32  ;;  %v1838_v19 = vmul.f32 %v3065_v15, %v3784_v63  ;;  %v1694_v47 = vmul.f32 %v3064_v50, %v3774_v56  ;;  %v3084_v33 = vld [vmem:[%s3765_s29 + $0x229] sm:$0xff] }
 0x107   : > { %v1997_v26 = vadd.f32 %v1981_v20, %v1948_v27  ;;  %v1901_v55 = vadd.f32 %v1885_v40, %v1853_v42  ;;  %v1742_v49 = vmul.f32 %v3080_v52, %v3776_v57  ;;  %v2030_v54 = vmul.f32 %v3082_v53, %v3799_v9 }
 0x108   : > { %3112 = vst [vmem:[%s3885_s7 + $0x110] sm:$0xff] %v2092_v18  ;;  %v2078_v39 = vmul.f32 %v4164_v13, %v3098_v51  ;;  %v1805_v58 = vadd.f32 %v1789_v34, %v1757_v30  ;;  %v1886_v10 = vmul.f32 %v3081_v28, %v3786_v0  ;;  %v1710_v11 = vadd.f32 %v4171_v46, %v1694_v47 }
 0x109   : > { %v2045_v7 = vadd.f32 %v2029_v38, %v1997_v26  ;;  %v1949_v12 = vadd.f32 %v1933_v45, %v1901_v55  ;;  %v1790_v6 = vmul.f32 %v3096_v16, %v3782_v62  ;;  %v1934_v52 = vmul.f32 %v3097_v48, %v3790_v4  ;;  %v3069_v55 = vld [vmem:[%s3765_s29 + $0x230] sm:$0xff] }
 0x10a   : > { %v1854_v50 = vadd.f32 %v1838_v19, %v1805_v58  ;;  %v1983_v14 = vmul.f32 %v3067_v1, %v3792_v5  ;;  %v1839_v44 = vmul.f32 %v3066_v25, %v3784_v63  ;;  %v1758_v37 = vadd.f32 %v1742_v49, %v1710_v11 }
 0x10b   : > { %v2093_v17 = vadd.f32 %v2077_v41, %v2045_v7  ;;  %v1998_v60 = vadd.f32 %v1982_v43, %v1949_v12  ;;  %v1695_v61 = vmul.f32 %v3065_v15, %v3774_v56  ;;  %v2031_v8 = vmul.f32 %v3083_v36, %v3799_v9  ;;  %v3100_v41 = vld [vmem:[%s3765_s29 + $0x22a] sm:$0xff]  ;;  %v3101_v7 = vld [vmem:[%s3765_s29 + $0x232] sm:$0xff] }
 0x10c   : > { %v1902_v59 = vadd.f32 %v1886_v10, %v1854_v50  ;;  %v1887_v16 = vmul.f32 %v3082_v53, %v3786_v0  ;;  %v1743_v2 = vmul.f32 %v3081_v28, %v3776_v57  ;;  %v1806_v31 = vadd.f32 %v1790_v6, %v1758_v37  ;;  %v3085_v10 = vld [vmem:[%s3765_s29 + $0x231] sm:$0xff] }
 0x10d   : > { %3113 = vst [vmem:[%s3885_s7 + $0x118] sm:$0xff] %v2093_v17  ;;  %v2046_v21 = vadd.f32 %v2030_v54, %v1998_v60  ;;  %v1711_v20 = vadd.f32 %v4171_v46, %v1695_v61  ;;  %v1791_v3 = vmul.f32 %v3097_v48, %v3782_v62  ;;  %v2079_v23 = vmul.f32 %v4164_v13, %v3099_v22  ;;  %v3070_v60 = vld [vmem:[%s3765_s29 + $0x240] sm:$0xff] }
 0x10e   : > { %v1950_v15 = vadd.f32 %v1934_v52, %v1902_v59  ;;  %v1935_v24 = vmul.f32 %v3098_v51, %v3790_v4  ;;  %v1984_v40 = vmul.f32 %v3068_v29, %v3792_v5  ;;  %v1855_v28 = vadd.f32 %v1839_v44, %v1806_v31 }
 0x10f   : > { %v2094_v35 = vadd.f32 %v2078_v39, %v2046_v21  ;;  %v1759_v38 = vadd.f32 %v1743_v2, %v1711_v20  ;;  %v1840_v32 = vmul.f32 %v3067_v1, %v3784_v63  ;;  %v2032_v27 = vmul.f32 %v3084_v33, %v3799_v9 }
 0x110   : > { %v1999_v34 = vadd.f32 %v1983_v14, %v1950_v15  ;;  %v1696_v48 = vmul.f32 %v3066_v25, %v3774_v56  ;;  %v1744_v42 = vmul.f32 %v3082_v53, %v3776_v57  ;;  %v1903_v45 = vadd.f32 %v1887_v16, %v1855_v28 }
 0x111   : > { %3114 = vst [vmem:[%s3885_s7 + $0x120] sm:$0xff] %v2094_v35  ;;  %v2080_v18 = vmul.f32 %v4164_v13, %v3100_v41  ;;  %v1807_v43 = vadd.f32 %v1791_v3, %v1759_v38  ;;  %v1888_v30 = vmul.f32 %v3083_v36, %v3786_v0  ;;  %v1936_v26 = vmul.f32 %v3099_v22, %v3790_v4 }
 0x112   : > { %v2047_v19 = vadd.f32 %v2031_v8, %v1999_v34  ;;  %v1712_v47 = vadd.f32 %v4171_v46, %v1696_v48  ;;  %v1792_v25 = vmul.f32 %v3098_v51, %v3782_v62  ;;  %v1951_v49 = vadd.f32 %v1935_v24, %v1903_v45  ;;  %v3086_v24 = vld [vmem:[%s3765_s29 + $0x241] sm:$0xff] }
 0x113   : > { %v1856_v53 = vadd.f32 %v1840_v32, %v1807_v43  ;;  %v1985_v54 = vmul.f32 %v3069_v55, %v3792_v5  ;;  %v1841_v39 = vmul.f32 %v3068_v29, %v3784_v63  ;;  %v1697_v11 = vmul.f32 %v3067_v1, %v3774_v56 }
 0x114   : > { %v2095_v58 = vadd.f32 %v2079_v23, %v2047_v19  ;;  %v1760_v12 = vadd.f32 %v1744_v42, %v1712_v47  ;;  %v1745_v6 = vmul.f32 %v3083_v36, %v3776_v57  ;;  %v2000_v50 = vadd.f32 %v1984_v40, %v1951_v49  ;;  %v3102_v40 = vld [vmem:[%s3765_s29 + $0x242] sm:$0xff]  ;;  %v3103_v49 = vld [vmem:[%s3765_s29 + $0x24a] sm:$0xff] }
 0x115   : > { %v1904_v52 = vadd.f32 %v1888_v30, %v1856_v53  ;;  %v2033_v14 = vmul.f32 %v3085_v10, %v3799_v9  ;;  %v2081_v51 = vmul.f32 %v4164_v13, %v3101_v7  ;;  %v1889_v17 = vmul.f32 %v3084_v33, %v3786_v0  ;;  %v3071_v42 = vld [vmem:[%s3765_s29 + $0x248] sm:$0xff] }
 0x116   : > { %3115 = vst [vmem:[%s3885_s7 + $0x128] sm:$0xff] %v2095_v58  ;;  %v1808_v44 = vadd.f32 %v1792_v25, %v1760_v12  ;;  %v1713_v37 = vadd.f32 %v4171_v46, %v1697_v11  ;;  %v1793_v61 = vmul.f32 %v3099_v22, %v3782_v62  ;;  %v2048_v1 = vadd.f32 %v2032_v27, %v2000_v50  ;;  %v3087_v25 = vld [vmem:[%s3765_s29 + $0x249] sm:$0xff] }
 0x117   : > { %v1952_v59 = vadd.f32 %v1936_v26, %v1904_v52  ;;  %v1937_v36 = vmul.f32 %v3100_v41, %v3790_v4  ;;  %v1986_v8 = vmul.f32 %v3070_v60, %v3792_v5  ;;  %v1842_v21 = vmul.f32 %v3069_v55, %v3784_v63  ;;  %v3072_v52 = vld [vmem:[%s3765_s29 + $0x258] sm:$0xff] }
 0x118   : > { %v1857_v16 = vadd.f32 %v1841_v39, %v1808_v44  ;;  %v1761_v2 = vadd.f32 %v1745_v6, %v1713_v37  ;;  %v1698_v31 = vmul.f32 %v3068_v29, %v3774_v56  ;;  %v2096_v20 = vadd.f32 %v2080_v18, %v2048_v1 }
 0x119   : > { %v2001_v3 = vadd.f32 %v1985_v54, %v1952_v59  ;;  %v1890_v15 = vmul.f32 %v3085_v10, %v3786_v0  ;;  %v1746_v22 = vmul.f32 %v3084_v33, %v3776_v57  ;;  %v1794_v38 = vmul.f32 %v3100_v41, %v3782_v62  ;;  %v3088_v59 = vld [vmem:[%s3765_s29 + $0x259] sm:$0xff] }
 0x11a   : > { %v1905_v23 = vadd.f32 %v1889_v17, %v1857_v16  ;;  %v1809_v35 = vadd.f32 %v1793_v61, %v1761_v2  ;;  %v1714_v28 = vadd.f32 %v4171_v46, %v1698_v31  ;;  %3116 = vst [vmem:[%s3885_s7 + $0x130] sm:$0xff] %v2096_v20  ;;  %v2034_v29 = vmul.f32 %v3086_v24, %v3799_v9 }
 0x11b   : > { %v2049_v32 = vadd.f32 %v2033_v14, %v2001_v3  ;;  %v2082_v34 = vmul.f32 %v4164_v13, %v3102_v40  ;;  %v1938_v27 = vmul.f32 %v3101_v7, %v3790_v4  ;;  %v1843_v18 = vmul.f32 %v3070_v60, %v3784_v63 }
 0x11c   : > { %v1953_v33 = vadd.f32 %v1937_v36, %v1905_v23  ;;  %v1858_v48 = vadd.f32 %v1842_v21, %v1809_v35  ;;  %v1762_v45 = vadd.f32 %v1746_v22, %v1714_v28  ;;  %v1987_v41 = vmul.f32 %v3071_v42, %v3792_v5  ;;  %v3104_v36 = vld [vmem:[%s3765_s29 + $0x25a] sm:$0xff] }
 0x11d   : > { %v2097_v43 = vadd.f32 %v2081_v51, %v2049_v32  ;;  %v1699_v30 = vmul.f32 %v3069_v55, %v3774_v56  ;;  %v1747_v19 = vmul.f32 %v3085_v10, %v3776_v57  ;;  %v1891_v54 = vmul.f32 %v3086_v24, %v3786_v0  ;;  %v3073_v23 = vld [vmem:[%s3765_s29 + $0x260] sm:$0xff] }
 0x11e   : > { %v2002_v26 = vadd.f32 %v1986_v8, %v1953_v33  ;;  %v1906_v47 = vadd.f32 %v1890_v15, %v1858_v48  ;;  %v1810_v53 = vadd.f32 %v1794_v38, %v1762_v45  ;;  %v2035_v39 = vmul.f32 %v3087_v25, %v3799_v9 }
 0x11f   : > { %3117 = vst [vmem:[%s3885_s7 + $0x138] sm:$0xff] %v2097_v43  ;;  %v2083_v58 = vmul.f32 %v4164_v13, %v3103_v49  ;;  %v1715_v12 = vadd.f32 %v4171_v46, %v1699_v30  ;;  %v1795_v55 = vmul.f32 %v3101_v7, %v3782_v62  ;;  %v1939_v50 = vmul.f32 %v3102_v40, %v3790_v4  ;;  %v3105_v43 = vld [vmem:[%s3765_s29 + $0x262] sm:$0xff] }
 0x120   : > { %v2050_v10 = vadd.f32 %v2034_v29, %v2002_v26  ;;  %v1954_v11 = vadd.f32 %v1938_v27, %v1906_v47  ;;  %v1859_v6 = vadd.f32 %v1843_v18, %v1810_v53  ;;  %v1988_v14 = vmul.f32 %v3072_v52, %v3792_v5  ;;  %v3074_v53 = vld [vmem:[%s3765_s29 + $0x270] sm:$0xff] }
 0x121   : > { %v1763_v51 = vadd.f32 %v1747_v19, %v1715_v12  ;;  %v1844_v44 = vmul.f32 %v3071_v42, %v3784_v63  ;;  %v1700_v17 = vmul.f32 %v3070_v60, %v3774_v56  ;;  %v1748_v7 = vmul.f32 %v3086_v24, %v3776_v57 }
 0x122   : > { %v2098_v37 = vadd.f32 %v2082_v34, %v2050_v10  ;;  %v2003_v61 = vadd.f32 %v1987_v41, %v1954_v11  ;;  %v1907_v1 = vadd.f32 %v1891_v54, %v1859_v6  ;;  %v1892_v16 = vmul.f32 %v3087_v25, %v3786_v0  ;;  %v3089_v34 = vld [vmem:[%s3765_s29 + $0x261] sm:$0xff]  ;;  %v3090_v10 = vld [vmem:[%s3765_s29 + $0x271] sm:$0xff] }
 0x123   : > { %v1811_v8 = vadd.f32 %v1795_v55, %v1763_v51  ;;  %v1716_v2 = vadd.f32 %v4171_v46, %v1700_v17  ;;  %v1796_v21 = vmul.f32 %v3102_v40, %v3782_v62  ;;  %v2036_v60 = vmul.f32 %v3088_v59, %v3799_v9  ;;  %v3106_v11 = vld [vmem:[%s3765_s29 + $0x272] sm:$0xff] }
 0x124   : > { %3118 = vst [vmem:[%s3885_s7 + $0x140] sm:$0xff] %v2098_v37  ;;  %v2051_v31 = vadd.f32 %v2035_v39, %v2003_v61  ;;  %v1955_v20 = vadd.f32 %v1939_v50, %v1907_v1  ;;  %v2084_v3 = vmul.f32 %v4164_v13, %v3104_v36  ;;  %v1940_v22 = vmul.f32 %v3103_v49, %v3790_v4  ;;  %v3075_v61 = vld [vmem:[%s3765_s29 + $0x278] sm:$0xff] }
 0x125   : > { %v1860_v15 = vadd.f32 %v1844_v44, %v1811_v8  ;;  %v1764_v24 = vadd.f32 %v1748_v7, %v1716_v2  ;;  %v1845_v35 = vmul.f32 %v3072_v52, %v3784_v63  ;;  %v1989_v40 = vmul.f32 %v3073_v23, %v3792_v5 }
 0x126   : > { %v2099_v28 = vadd.f32 %v2083_v58, %v2051_v31  ;;  %v2004_v38 = vadd.f32 %v1988_v14, %v1955_v20  ;;  %v1701_v32 = vmul.f32 %v3071_v42, %v3774_v56  ;;  %v1893_v33 = vmul.f32 %v3088_v59, %v3786_v0 }
 0x127   : > { %v1908_v29 = vadd.f32 %v1892_v16, %v1860_v15  ;;  %v1812_v27 = vadd.f32 %v1796_v21, %v1764_v24  ;;  %v1749_v48 = vmul.f32 %v3087_v25, %v3776_v57  ;;  %v2037_v18 = vmul.f32 %v3089_v34, %v3799_v9  ;;  %v3091_v21 = vld [vmem:[%s3765_s29 + $0x279] sm:$0xff] }
 0x128   : > { %3119 = vst [vmem:[%s3885_s7 + $0x148] sm:$0xff] %v2099_v28  ;;  %v2052_v45 = vadd.f32 %v2036_v60, %v2004_v38  ;;  %v1717_v41 = vadd.f32 %v4171_v46, %v1701_v32  ;;  %v1797_v30 = vmul.f32 %v3103_v49, %v3782_v62  ;;  %v2085_v19 = vmul.f32 %v4164_v13, %v3105_v43  ;;  %v4506_v28 = vld [vmem:[%s3772_s5] ss:$0 sm:$0xff]  ;;  %v4511_v32 = vld [vmem:[%s3761_s27 + $0x8] ss:$0 sm:$0xff]  ;;  %s3360_s27 = scalar_lea.vmem %s3359_s24, 16384 }
 0x129   : > { %v1956_v42 = vadd.f32 %v1940_v22, %v1908_v29  ;;  %v1861_v26 = vadd.f32 %v1845_v35, %v1812_v27  ;;  %v1941_v47 = vmul.f32 %v3104_v36, %v3790_v4  ;;  %v1990_v54 = vmul.f32 %v3074_v53, %v3792_v5  ;;  %v3107_v22 = vld [vmem:[%s3765_s29 + $0x27a] sm:$0xff]  ;;  %v3076_v35 = vld [vmem:[%s3765_s29 + $0x288] sm:$0xff]  ;;  %p3362_p6 = scmp.lt.s32.totalorder %s3360_s27, %s3354_s19 }
 0x12a   : > { %v2100_v25 = vadd.f32 %v2084_v3, %v2052_v45  ;;  %v1765_v39 = vadd.f32 %v1749_v48, %v1717_v41  ;;  %v1846_v58 = vmul.f32 %v3073_v23, %v3784_v63  ;;  %v1702_v49 = vmul.f32 %v3072_v52, %v3774_v56  ;;  %v3092_v45 = vld [vmem:[%s3765_s29 + $0x289] sm:$0xff] }
 0x12b   : > { %v2005_v12 = vadd.f32 %v1989_v40, %v1956_v42  ;;  %v1909_v55 = vadd.f32 %v1893_v33, %v1861_v26  ;;  %v1750_v6 = vmul.f32 %v3088_v59, %v3776_v57  ;;  %v2038_v50 = vmul.f32 %v3090_v10, %v3799_v9  ;;  %v3108_v42 = vld [vmem:[%s3765_s29 + $0x28a] sm:$0xff]  ;;  %p3363_p7 = por %p3362_p6, %p3361_p4 }
 0x12c   : > { %3120 = vst [vmem:[%s3885_s7 + $0x150] sm:$0xff] %v2100_v25  ;;  %v2086_v14 = vmul.f32 %v4164_v13, %v3106_v11  ;;  %v1813_v51 = vadd.f32 %v1797_v30, %v1765_v39  ;;  %v1894_v44 = vmul.f32 %v3089_v34, %v3786_v0  ;;  %v1718_v1 = vadd.f32 %v4171_v46, %v1702_v49 }
 0x12d   : > { %v2053_v17 = vadd.f32 %v2037_v18, %v2005_v12  ;;  %v1957_v37 = vadd.f32 %v1941_v47, %v1909_v55  ;;  %v1798_v7 = vmul.f32 %v3104_v36, %v3782_v62  ;;  %v1942_v59 = vmul.f32 %v3105_v43, %v3790_v4  ;;  %v3077_v55 = vld [vmem:[%s3765_s29 + $0x290] sm:$0xff]  ;;  %p3364_p8 = pnand %p3363_p7, %p3357_p3 }
 0x12e   : > { %v1862_v52 = vadd.f32 %v1846_v58, %v1813_v51  ;;  %v1991_v8 = vmul.f32 %v3075_v61, %v3792_v5  ;;  %v1847_v13 = vmul.f32 %v3074_v53, %v3784_v63  ;;  %v1766_v31 = vadd.f32 %v1750_v6, %v1718_v1 }
 0x12f   : > { %v2101_v16 = vadd.f32 %v2085_v19, %v2053_v17  ;;  %v2006_v2 = vadd.f32 %v1990_v54, %v1957_v37  ;;  %v1703_v20 = vmul.f32 %v3073_v23, %v3774_v56  ;;  %v2039_v36 = vmul.f32 %v3091_v21, %v3799_v9  ;;  %v3109_v17 = vld [vmem:[%s3765_s29 + $0x292] sm:$0xff] }
 0x130   : > { %v1910_v46 = vadd.f32 %v1894_v44, %v1862_v52  ;;  %v1895_v60 = vmul.f32 %v3090_v10, %v3786_v0  ;;  %v1751_v3 = vmul.f32 %v3089_v34, %v3776_v57  ;;  %v1814_v24 = vadd.f32 %v1798_v7, %v1766_v31  ;;  %v3093_v44 = vld [vmem:[%s3765_s29 + $0x291] sm:$0xff] }
 0x131   : > { %3121 = vst [vmem:[%s3885_s7 + $0x158] sm:$0xff] %v2101_v16  ;;  %v2054_v15 = vadd.f32 %v2038_v50, %v2006_v2  ;;  %v1719_v38 = vadd.f32 %v4506_v28, %v1703_v20  ;;  %v1799_v23 = vmul.f32 %v3105_v43, %v3782_v62  ;;  %v2087_v29 = vmul.f32 %v4511_v32, %v3107_v22  ;;  %v3222_v2 = vld [vmem:[%s3765_s29 + $0x2a0] sm:$0xff] }
 0x132   : > { %v1958_v40 = vadd.f32 %v1942_v59, %v1910_v46  ;;  %v1943_v34 = vmul.f32 %v3106_v11, %v3790_v4  ;;  %v1992_v27 = vmul.f32 %v3076_v35, %v3792_v5  ;;  %v1863_v48 = vadd.f32 %v1847_v13, %v1814_v24 }
 0x133   : > { %v2102_v33 = vadd.f32 %v2086_v14, %v2054_v15  ;;  %v1767_v18 = vadd.f32 %v1751_v3, %v1719_v38  ;;  %v1848_v41 = vmul.f32 %v3075_v61, %v3784_v63  ;;  %v2040_v43 = vmul.f32 %v3092_v45, %v3799_v9 }
 0x134   : > { %v2007_v30 = vadd.f32 %v1991_v8, %v1958_v40  ;;  %v2140_v19 = vmul.f32 %v3074_v53, %v3774_v56  ;;  %v2188_v26 = vmul.f32 %v3090_v10, %v3776_v57  ;;  %v1911_v47 = vadd.f32 %v1895_v60, %v1863_v48 }
 0x135   : > { %3122 = vst [vmem:[%s3885_s7 + $0x160] sm:$0xff] %v2102_v33  ;;  %v2088_v25 = vmul.f32 %v4511_v32, %v3108_v42  ;;  %v1815_v54 = vadd.f32 %v1799_v23, %v1767_v18  ;;  %v1896_v39 = vmul.f32 %v3091_v21, %v3786_v0  ;;  %v1944_v12 = vmul.f32 %v3107_v22, %v3790_v4 }
 0x136   : > { %v2055_v58 = vadd.f32 %v2039_v36, %v2007_v30  ;;  %v2156_v49 = vadd.f32 %v4506_v28, %v2140_v19  ;;  %v2236_v53 = vmul.f32 %v3106_v11, %v3782_v62  ;;  %v1959_v6 = vadd.f32 %v1943_v34, %v1911_v47  ;;  %v3238_v34 = vld [vmem:[%s3765_s29 + $0x2a1] sm:$0xff] }
 0x137   : > { %v1864_v10 = vadd.f32 %v1848_v41, %v1815_v54  ;;  %v1993_v50 = vmul.f32 %v3077_v55, %v3792_v5  ;;  %v2285_v14 = vmul.f32 %v3076_v35, %v3784_v63  ;;  %v2141_v1 = vmul.f32 %v3075_v61, %v3774_v56 }
 0x138   : > { %v2103_v51 = vadd.f32 %v2087_v29, %v2055_v58  ;;  %v2204_v37 = vadd.f32 %v2188_v26, %v2156_v49  ;;  %v2189_v7 = vmul.f32 %v3091_v21, %v3776_v57  ;;  %v2008_v52 = vadd.f32 %v1992_v27, %v1959_v6  ;;  %v3254_v27 = vld [vmem:[%s3765_s29 + $0x2a2] sm:$0xff]  ;;  %v3255_v6 = vld [vmem:[%s3765_s29 + $0x2aa] sm:$0xff] }
 0x139   : > { %v1912_v59 = vadd.f32 %v1896_v39, %v1864_v10  ;;  %v2041_v8 = vmul.f32 %v3093_v44, %v3799_v9  ;;  %v2089_v11 = vmul.f32 %v4511_v32, %v3109_v17  ;;  %v2333_v16 = vmul.f32 %v3092_v45, %v3786_v0  ;;  %v3223_v26 = vld [vmem:[%s3765_s29 + $0x2a8] sm:$0xff] }
 0x13a   : > { %3123 = vst [vmem:[%s3885_s7 + $0x168] sm:$0xff] %v2103_v51  ;;  %v2252_v13 = vadd.f32 %v2236_v53, %v2204_v37  ;;  %v2157_v31 = vadd.f32 %v4506_v28, %v2141_v1  ;;  %v2237_v20 = vmul.f32 %v3107_v22, %v3782_v62  ;;  %v2056_v61 = vadd.f32 %v2040_v43, %v2008_v52  ;;  %v3239_v53 = vld [vmem:[%s3765_s29 + $0x2a9] sm:$0xff] }
 0x13b   : > { %v1960_v46 = vadd.f32 %v1944_v12, %v1912_v59  ;;  %v2381_v21 = vmul.f32 %v3108_v42, %v3790_v4  ;;  %v2430_v36 = vmul.f32 %v3222_v2, %v3792_v5  ;;  %v2286_v15 = vmul.f32 %v3077_v55, %v3784_v63  ;;  %v3224_v59 = vld [vmem:[%s3765_s29 + $0x2b8] sm:$0xff] }
 0x13c   : > { %v2301_v60 = vadd.f32 %v2285_v14, %v2252_v13  ;;  %v2205_v3 = vadd.f32 %v2189_v7, %v2157_v31  ;;  %v2142_v24 = vmul.f32 %v3076_v35, %v3774_v56  ;;  %v2104_v38 = vadd.f32 %v2088_v25, %v2056_v61 }
 0x13d   : > { %v2009_v23 = vadd.f32 %v1993_v50, %v1960_v46  ;;  %v2334_v40 = vmul.f32 %v3093_v44, %v3786_v0  ;;  %v2190_v22 = vmul.f32 %v3092_v45, %v3776_v57  ;;  %v2238_v18 = vmul.f32 %v3108_v42, %v3782_v62  ;;  %v3240_v46 = vld [vmem:[%s3765_s29 + $0x2b9] sm:$0xff] }
 0x13e   : > { %v2349_v29 = vadd.f32 %v2333_v16, %v2301_v60  ;;  %v2253_v33 = vadd.f32 %v2237_v20, %v2205_v3  ;;  %v2158_v48 = vadd.f32 %v4506_v28, %v2142_v24  ;;  %3124 = vst [vmem:[%s3885_s7 + $0x170] sm:$0xff] %v2104_v38  ;;  %v2478_v35 = vmul.f32 %v3238_v34, %v3799_v9 }
 0x13f   : > { %v2057_v41 = vadd.f32 %v2041_v8, %v2009_v23  ;;  %v2526_v30 = vmul.f32 %v4511_v32, %v3254_v27  ;;  %v2382_v43 = vmul.f32 %v3109_v17, %v3790_v4  ;;  %v2287_v25 = vmul.f32 %v3222_v2, %v3784_v63 }
 0x140   : > { %v2397_v45 = vadd.f32 %v2381_v21, %v2349_v29  ;;  %v2302_v19 = vadd.f32 %v2286_v15, %v2253_v33  ;;  %v2206_v47 = vadd.f32 %v2190_v22, %v2158_v48  ;;  %v2431_v42 = vmul.f32 %v3223_v26, %v3792_v5  ;;  %v3256_v21 = vld [vmem:[%s3765_s29 + $0x2ba] sm:$0xff] }
 0x141   : > { %v2105_v54 = vadd.f32 %v2089_v11, %v2057_v41  ;;  %v2143_v39 = vmul.f32 %v3077_v55, %v3774_v56  ;;  %v2191_v58 = vmul.f32 %v3093_v44, %v3776_v57  ;;  %v2335_v50 = vmul.f32 %v3238_v34, %v3786_v0  ;;  %v3225_v29 = vld [vmem:[%s3765_s29 + $0x2c0] sm:$0xff] }
 0x142   : > { %v2446_v12 = vadd.f32 %v2430_v36, %v2397_v45  ;;  %v2350_v49 = vadd.f32 %v2334_v40, %v2302_v19  ;;  %v2254_v10 = vadd.f32 %v2238_v18, %v2206_v47  ;;  %v2479_v14 = vmul.f32 %v3239_v53, %v3799_v9 }
 0x143   : > { %3125 = vst [vmem:[%s3885_s7 + $0x178] sm:$0xff] %v2105_v54  ;;  %v2527_v51 = vmul.f32 %v4511_v32, %v3255_v6  ;;  %v2159_v37 = vadd.f32 %v4506_v28, %v2143_v39  ;;  %v2239_v55 = vmul.f32 %v3109_v17, %v3782_v62  ;;  %v2383_v52 = vmul.f32 %v3254_v27, %v3790_v4  ;;  %v3257_v54 = vld [vmem:[%s3765_s29 + $0x2c2] sm:$0xff] }
 0x144   : > { %v2494_v44 = vadd.f32 %v2478_v35, %v2446_v12  ;;  %v2398_v1 = vadd.f32 %v2382_v43, %v2350_v49  ;;  %v2303_v7 = vadd.f32 %v2287_v25, %v2254_v10  ;;  %v2432_v8 = vmul.f32 %v3224_v59, %v3792_v5  ;;  %v3226_v10 = vld [vmem:[%s3765_s29 + $0x2d0] sm:$0xff] }
 0x145   : > { %v2207_v11 = vadd.f32 %v2191_v58, %v2159_v37  ;;  %v2288_v13 = vmul.f32 %v3223_v26, %v3784_v63  ;;  %v2144_v16 = vmul.f32 %v3222_v2, %v3774_v56  ;;  %v2192_v17 = vmul.f32 %v3238_v34, %v3776_v57 }
 0x146   : > { %v2542_v31 = vadd.f32 %v2526_v30, %v2494_v44  ;;  %v2447_v20 = vadd.f32 %v2431_v42, %v2398_v1  ;;  %v2351_v61 = vadd.f32 %v2335_v50, %v2303_v7  ;;  %v2336_v60 = vmul.f32 %v3239_v53, %v3786_v0  ;;  %v3241_v30 = vld [vmem:[%s3765_s29 + $0x2c1] sm:$0xff]  ;;  %v3242_v44 = vld [vmem:[%s3765_s29 + $0x2d1] sm:$0xff] }
 0x147   : > { %v2255_v36 = vadd.f32 %v2239_v55, %v2207_v11  ;;  %v2160_v3 = vadd.f32 %v4506_v28, %v2144_v16  ;;  %v2240_v15 = vmul.f32 %v3254_v27, %v3782_v62  ;;  %v2480_v2 = vmul.f32 %v3240_v46, %v3799_v9  ;;  %v3258_v1 = vld [vmem:[%s3765_s29 + $0x2d2] sm:$0xff] }
 0x148   : > { %3270 = vst [vmem:[%s3885_s7 + $0x180] sm:$0xff] %v2542_v31  ;;  %v2495_v24 = vadd.f32 %v2479_v14, %v2447_v20  ;;  %v2399_v38 = vadd.f32 %v2383_v52, %v2351_v61  ;;  %v2528_v23 = vmul.f32 %v4511_v32, %v3256_v21  ;;  %v2384_v22 = vmul.f32 %v3255_v6, %v3790_v4  ;;  %v3227_v20 = vld [vmem:[%s3765_s29 + $0x2d8] sm:$0xff] }
 0x149   : > { %v2304_v40 = vadd.f32 %v2288_v13, %v2255_v36  ;;  %v2208_v34 = vadd.f32 %v2192_v17, %v2160_v3  ;;  %v2289_v33 = vmul.f32 %v3224_v59, %v3784_v63  ;;  %v2433_v27 = vmul.f32 %v3225_v29, %v3792_v5 }
 0x14a   : > { %v2543_v48 = vadd.f32 %v2527_v51, %v2495_v24  ;;  %v2448_v18 = vadd.f32 %v2432_v8, %v2399_v38  ;;  %v2145_v41 = vmul.f32 %v3223_v26, %v3774_v56  ;;  %v2337_v45 = vmul.f32 %v3240_v46, %v3786_v0  ;;  %v3243_v24 = vld [vmem:[%s3765_s29 + $0x2d9] sm:$0xff] }
 0x14b   : > { %v2352_v35 = vadd.f32 %v2336_v60, %v2304_v40  ;;  %v2256_v43 = vadd.f32 %v2240_v15, %v2208_v34  ;;  %v2193_v19 = vmul.f32 %v3239_v53, %v3776_v57  ;;  %v2481_v25 = vmul.f32 %v3241_v30, %v3799_v9 }
 0x14c   : > { %3271 = vst [vmem:[%s3885_s7 + $0x188] sm:$0xff] %v2543_v48  ;;  %v2496_v47 = vadd.f32 %v2480_v2, %v2448_v18  ;;  %v2161_v42 = vadd.f32 %v4506_v28, %v2145_v41  ;;  %v2241_v39 = vmul.f32 %v3255_v6, %v3782_v62  ;;  %v2529_v58 = vmul.f32 %v4511_v32, %v3257_v54  ;;  %v3228_v18 = vld [vmem:[%s3765_s29 + $0x2e8] sm:$0xff] }
 0x14d   : > { %v2400_v26 = vadd.f32 %v2384_v22, %v2352_v35  ;;  %v2305_v12 = vadd.f32 %v2289_v33, %v2256_v43  ;;  %v2385_v49 = vmul.f32 %v3256_v21, %v3790_v4  ;;  %v2434_v50 = vmul.f32 %v3226_v10, %v3792_v5  ;;  %v3259_v33 = vld [vmem:[%s3765_s29 + $0x2da] sm:$0xff] }
 0x14e   : > { %v2544_v53 = vadd.f32 %v2528_v23, %v2496_v47  ;;  %v2209_v14 = vadd.f32 %v2193_v19, %v2161_v42  ;;  %v2290_v51 = vmul.f32 %v3225_v29, %v3784_v63  ;;  %v2146_v6 = vmul.f32 %v3224_v59, %v3774_v56  ;;  %v3244_v47 = vld [vmem:[%s3765_s29 + $0x2e9] sm:$0xff] }
 0x14f   : > { %v2449_v37 = vadd.f32 %v2433_v27, %v2400_v26  ;;  %v2353_v55 = vadd.f32 %v2337_v45, %v2305_v12  ;;  %v2194_v7 = vmul.f32 %v3240_v46, %v3776_v57  ;;  %v2482_v52 = vmul.f32 %v3242_v44, %v3799_v9 }
 0x150   : > { %3272 = vst [vmem:[%s3885_s7 + $0x190] sm:$0xff] %v2544_v53  ;;  %v2530_v8 = vmul.f32 %v4511_v32, %v3258_v1  ;;  %v2257_v11 = vadd.f32 %v2241_v39, %v2209_v14  ;;  %v2338_v13 = vmul.f32 %v3241_v30, %v3786_v0  ;;  %v2162_v61 = vadd.f32 %v4506_v28, %v2146_v6 }
 0x151   : > { %v2497_v16 = vadd.f32 %v2481_v25, %v2449_v37  ;;  %v2401_v31 = vadd.f32 %v2385_v49, %v2353_v55  ;;  %v2242_v17 = vmul.f32 %v3256_v21, %v3782_v62  ;;  %v2386_v46 = vmul.f32 %v3257_v54, %v3790_v4  ;;  %v3229_v55 = vld [vmem:[%s3765_s29 + $0x2f0] sm:$0xff] }
 0x152   : > { %v2306_v59 = vadd.f32 %v2290_v51, %v2257_v11  ;;  %v2435_v36 = vmul.f32 %v3227_v20, %v3792_v5  ;;  %v2291_v60 = vmul.f32 %v3226_v10, %v3784_v63  ;;  %v2210_v38 = vadd.f32 %v2194_v7, %v2162_v61 }
 0x153   : > { %v2545_v3 = vadd.f32 %v2529_v58, %v2497_v16  ;;  %v2450_v15 = vadd.f32 %v2434_v50, %v2401_v31  ;;  %v2147_v2 = vmul.f32 %v3225_v29, %v3774_v56  ;;  %v2483_v40 = vmul.f32 %v3243_v24, %v3799_v9  ;;  %v3260_v58 = vld [vmem:[%s3765_s29 + $0x2ea] sm:$0xff]  ;;  %v3261_v16 = vld [vmem:[%s3765_s29 + $0x2f2] sm:$0xff] }
 0x154   : > { %v2354_v23 = vadd.f32 %v2338_v13, %v2306_v59  ;;  %v2339_v21 = vmul.f32 %v3242_v44, %v3786_v0  ;;  %v2195_v22 = vmul.f32 %v3241_v30, %v3776_v57  ;;  %v2258_v48 = vadd.f32 %v2242_v17, %v2210_v38  ;;  %v3245_v13 = vld [vmem:[%s3765_s29 + $0x2f1] sm:$0xff] }
 0x155   : > { %3273 = vst [vmem:[%s3885_s7 + $0x198] sm:$0xff] %v2545_v3  ;;  %v2498_v34 = vadd.f32 %v2482_v52, %v2450_v15  ;;  %v2163_v27 = vadd.f32 %v4506_v28, %v2147_v2  ;;  %v2243_v41 = vmul.f32 %v3257_v54, %v3782_v62  ;;  %v2531_v35 = vmul.f32 %v4511_v32, %v3259_v33  ;;  %v3230_v15 = vld [vmem:[%s3765_s29 + $0x300] sm:$0xff] }
 0x156   : > { %v2402_v29 = vadd.f32 %v2386_v46, %v2354_v23  ;;  %v2387_v43 = vmul.f32 %v3258_v1, %v3790_v4  ;;  %v2436_v45 = vmul.f32 %v3228_v18, %v3792_v5  ;;  %v2307_v30 = vadd.f32 %v2291_v60, %v2258_v48 }
 0x157   : > { %v2546_v19 = vadd.f32 %v2530_v8, %v2498_v34  ;;  %v2211_v25 = vadd.f32 %v2195_v22, %v2163_v27  ;;  %v2292_v42 = vmul.f32 %v3227_v20, %v3784_v63  ;;  %v2484_v26 = vmul.f32 %v3244_v47, %v3799_v9 }
 0x158   : > { %v2451_v39 = vadd.f32 %v2435_v36, %v2402_v29  ;;  %v2148_v54 = vmul.f32 %v3226_v10, %v3774_v56  ;;  %v2196_v12 = vmul.f32 %v3242_v44, %v3776_v57  ;;  %v2355_v49 = vadd.f32 %v2339_v21, %v2307_v30 }
 0x159   : > { %3274 = vst [vmem:[%s3885_s7 + $0x1a0] sm:$0xff] %v2546_v19  ;;  %v2532_v53 = vmul.f32 %v4511_v32, %v3260_v58  ;;  %v2259_v50 = vadd.f32 %v2243_v41, %v2211_v25  ;;  %v2340_v14 = vmul.f32 %v3243_v24, %v3786_v0  ;;  %v2388_v37 = vmul.f32 %v3259_v33, %v3790_v4 }
 0x15a   : > { %v2499_v51 = vadd.f32 %v2483_v40, %v2451_v39  ;;  %v2164_v6 = vadd.f32 %v4506_v28, %v2148_v54  ;;  %v2244_v10 = vmul.f32 %v3258_v1, %v3782_v62  ;;  %v2403_v7 = vadd.f32 %v2387_v43, %v2355_v49  ;;  %v3246_v43 = vld [vmem:[%s3765_s29 + $0x301] sm:$0xff] }
 0x15b   : > { %v2308_v44 = vadd.f32 %v2292_v42, %v2259_v50  ;;  %v2437_v52 = vmul.f32 %v3229_v55, %v3792_v5  ;;  %v2293_v8 = vmul.f32 %v3228_v18, %v3784_v63  ;;  %v2149_v61 = vmul.f32 %v3227_v20, %v3774_v56 }
 0x15c   : > { %v2547_v11 = vadd.f32 %v2531_v35, %v2499_v51  ;;  %v2212_v31 = vadd.f32 %v2196_v12, %v2164_v6  ;;  %v2197_v17 = vmul.f32 %v3243_v24, %v3776_v57  ;;  %v2452_v59 = vadd.f32 %v2436_v45, %v2403_v7  ;;  %v3262_v45 = vld [vmem:[%s3765_s29 + $0x302] sm:$0xff]  ;;  %v3263_v7 = vld [vmem:[%s3765_s29 + $0x30a] sm:$0xff] }
 0x15d   : > { %v2356_v46 = vadd.f32 %v2340_v14, %v2308_v44  ;;  %v2485_v36 = vmul.f32 %v3245_v13, %v3799_v9  ;;  %v2533_v1 = vmul.f32 %v4511_v32, %v3261_v16  ;;  %v2341_v3 = vmul.f32 %v3244_v47, %v3786_v0  ;;  %v3231_v12 = vld [vmem:[%s3765_s29 + $0x308] sm:$0xff] }
 0x15e   : > { %3275 = vst [vmem:[%s3885_s7 + $0x1a8] sm:$0xff] %v2547_v11  ;;  %v2260_v60 = vadd.f32 %v2244_v10, %v2212_v31  ;;  %v2165_v38 = vadd.f32 %v4506_v28, %v2149_v61  ;;  %v2245_v2 = vmul.f32 %v3259_v33, %v3782_v62  ;;  %v2500_v20 = vadd.f32 %v2484_v26, %v2452_v59  ;;  %v3247_v10 = vld [vmem:[%s3765_s29 + $0x309] sm:$0xff] }
 0x15f   : > { %v2404_v23 = vadd.f32 %v2388_v37, %v2356_v46  ;;  %v2389_v24 = vmul.f32 %v3260_v58, %v3790_v4  ;;  %v2438_v40 = vmul.f32 %v3230_v15, %v3792_v5  ;;  %v2294_v34 = vmul.f32 %v3229_v55, %v3784_v63  ;;  %v3232_v46 = vld [vmem:[%s3765_s29 + $0x318] sm:$0xff] }
 0x160   : > { %v2309_v21 = vadd.f32 %v2293_v8, %v2260_v60  ;;  %v2213_v22 = vadd.f32 %v2197_v17, %v2165_v38  ;;  %v2150_v48 = vmul.f32 %v3228_v18, %v3774_v56  ;;  %v2548_v27 = vadd.f32 %v2532_v53, %v2500_v20 }
 0x161   : > { %v2453_v41 = vadd.f32 %v2437_v52, %v2404_v23  ;;  %v2342_v29 = vmul.f32 %v3245_v13, %v3786_v0  ;;  %v2198_v33 = vmul.f32 %v3244_v47, %v3776_v57  ;;  %v2246_v25 = vmul.f32 %v3260_v58, %v3782_v62  ;;  %v3248_v23 = vld [vmem:[%s3765_s29 + $0x319] sm:$0xff] }
 0x162   : > { %v2357_v35 = vadd.f32 %v2341_v3, %v2309_v21  ;;  %v2261_v19 = vadd.f32 %v2245_v2, %v2213_v22  ;;  %v2166_v30 = vadd.f32 %v4506_v28, %v2150_v48  ;;  %3276 = vst [vmem:[%s3885_s7 + $0x1b0] sm:$0xff] %v2548_v27  ;;  %v2486_v18 = vmul.f32 %v3246_v43, %v3799_v9 }
 0x163   : > { %v2501_v42 = vadd.f32 %v2485_v36, %v2453_v41  ;;  %v2534_v39 = vmul.f32 %v4511_v32, %v3262_v45  ;;  %v2390_v26 = vmul.f32 %v3261_v16, %v3790_v4  ;;  %v2295_v53 = vmul.f32 %v3230_v15, %v3784_v63 }
 0x164   : > { %v2405_v47 = vadd.f32 %v2389_v24, %v2357_v35  ;;  %v2310_v54 = vadd.f32 %v2294_v34, %v2261_v19  ;;  %v2214_v49 = vadd.f32 %v2198_v33, %v2166_v30  ;;  %v2439_v58 = vmul.f32 %v3231_v12, %v3792_v5  ;;  %v3264_v24 = vld [vmem:[%s3765_s29 + $0x31a] sm:$0xff] }
 0x165   : > { %v2549_v50 = vadd.f32 %v2533_v1, %v2501_v42  ;;  %v2151_v14 = vmul.f32 %v3229_v55, %v3774_v56  ;;  %v2199_v51 = vmul.f32 %v3245_v13, %v3776_v57  ;;  %v2343_v52 = vmul.f32 %v3246_v43, %v3786_v0  ;;  %v3233_v35 = vld [vmem:[%s3765_s29 + $0x320] sm:$0xff] }
 0x166   : > { %v2454_v37 = vadd.f32 %v2438_v40, %v2405_v47  ;;  %v2358_v6 = vadd.f32 %v2342_v29, %v2310_v54  ;;  %v2262_v44 = vadd.f32 %v2246_v25, %v2214_v49  ;;  %v2487_v8 = vmul.f32 %v3247_v10, %v3799_v9 }
 0x167   : > { %3277 = vst [vmem:[%s3885_s7 + $0x1b8] sm:$0xff] %v2549_v50  ;;  %v2535_v11 = vmul.f32 %v4511_v32, %v3263_v7  ;;  %v2167_v31 = vadd.f32 %v4506_v28, %v2151_v14  ;;  %v2247_v55 = vmul.f32 %v3261_v16, %v3782_v62  ;;  %v2391_v59 = vmul.f32 %v3262_v45, %v3790_v4  ;;  %v3265_v50 = vld [vmem:[%s3765_s29 + $0x322] sm:$0xff] }
 0x168   : > { %v2502_v13 = vadd.f32 %v2486_v18, %v2454_v37  ;;  %v2406_v61 = vadd.f32 %v2390_v26, %v2358_v6  ;;  %v2311_v17 = vadd.f32 %v2295_v53, %v2262_v44  ;;  %v2440_v36 = vmul.f32 %v3232_v46, %v3792_v5  ;;  %v3234_v44 = vld [vmem:[%s3765_s29 + $0x330] sm:$0xff] }
 0x169   : > { %v2215_v1 = vadd.f32 %v2199_v51, %v2167_v31  ;;  %v2296_v60 = vmul.f32 %v3231_v12, %v3784_v63  ;;  %v2152_v3 = vmul.f32 %v3230_v15, %v3774_v56  ;;  %v2200_v16 = vmul.f32 %v3246_v43, %v3776_v57 }
 0x16a   : > { %v2550_v38 = vadd.f32 %v2534_v39, %v2502_v13  ;;  %v2455_v2 = vadd.f32 %v2439_v58, %v2406_v61  ;;  %v2359_v20 = vadd.f32 %v2343_v52, %v2311_v17  ;;  %v2344_v21 = vmul.f32 %v3247_v10, %v3786_v0  ;;  %v3249_v39 = vld [vmem:[%s3765_s29 + $0x321] sm:$0xff]  ;;  %v3250_v13 = vld [vmem:[%s3765_s29 + $0x331] sm:$0xff] }
 0x16b   : > { %v2263_v40 = vadd.f32 %v2247_v55, %v2215_v1  ;;  %v2168_v22 = vadd.f32 %v4506_v28, %v2152_v3  ;;  %v2248_v34 = vmul.f32 %v3262_v45, %v3782_v62  ;;  %v2488_v15 = vmul.f32 %v3248_v23, %v3799_v9  ;;  %v3266_v3 = vld [vmem:[%s3765_s29 + $0x332] sm:$0xff] }
 0x16c   : > { %3278 = vst [vmem:[%s3885_s7 + $0x1c0] sm:$0xff] %v2550_v38  ;;  %v2503_v48 = vadd.f32 %v2487_v8, %v2455_v2  ;;  %v2407_v27 = vadd.f32 %v2391_v59, %v2359_v20  ;;  %v2536_v41 = vmul.f32 %v4511_v32, %v3264_v24  ;;  %v2392_v33 = vmul.f32 %v3263_v7, %v3790_v4 }
 0x16d   : > { %v2312_v29 = vadd.f32 %v2296_v60, %v2263_v40  ;;  %v2216_v43 = vadd.f32 %v2200_v16, %v2168_v22  ;;  %v2297_v19 = vmul.f32 %v3232_v46, %v3784_v63  ;;  %v2441_v45 = vmul.f32 %v3233_v35, %v3792_v5  ;;  %v3235_v22 = vld [vmem:[%s3765_s29 + $0x338] sm:$0xff] }
 0x16e   : > { %v2551_v30 = vadd.f32 %v2535_v11, %v2503_v48  ;;  %v2456_v25 = vadd.f32 %v2440_v36, %v2407_v27  ;;  %v2153_v42 = vmul.f32 %v3231_v12, %v3774_v56  ;;  %v2345_v47 = vmul.f32 %v3248_v23, %v3786_v0 }
 0x16f   : > { %v2360_v18 = vadd.f32 %v2344_v21, %v2312_v29  ;;  %v2264_v26 = vadd.f32 %v2248_v34, %v2216_v43  ;;  %v2201_v54 = vmul.f32 %v3247_v10, %v3776_v57  ;;  %v2489_v53 = vmul.f32 %v3249_v39, %v3799_v9 }
 0x170   : > { %3279 = vst [vmem:[%s3885_s7 + $0x1c8] sm:$0xff] %v2551_v30  ;;  %v2504_v49 = vadd.f32 %v2488_v15, %v2456_v25  ;;  %v2169_v58 = vadd.f32 %v4506_v28, %v2153_v42  ;;  %v2249_v14 = vmul.f32 %v3263_v7, %v3782_v62  ;;  %v2537_v51 = vmul.f32 %v4511_v32, %v3265_v50 }
 0x171   : > { %v2408_v12 = vadd.f32 %v2392_v33, %v2360_v18  ;;  %v2313_v37 = vadd.f32 %v2297_v19, %v2264_v26  ;;  %v2393_v6 = vmul.f32 %v3264_v24, %v3790_v4  ;;  %v2442_v52 = vmul.f32 %v3234_v44, %v3792_v5  ;;  %v3251_v33 = vld [vmem:[%s3765_s29 + $0x339] sm:$0xff] }
 0x172   : > { %v2552_v10 = vadd.f32 %v2536_v41, %v2504_v49  ;;  %v2217_v8 = vadd.f32 %v2201_v54, %v2169_v58  ;;  %v2298_v11 = vmul.f32 %v3233_v35, %v3784_v63  ;;  %v2154_v61 = vmul.f32 %v3232_v46, %v3774_v56  ;;  %v3252_v54 = vld [vmem:[%s3765_s29 + $0x349] sm:$0xff] }
 0x173   : > { %v2457_v31 = vadd.f32 %v2441_v45, %v2408_v12  ;;  %v2361_v55 = vadd.f32 %v2345_v47, %v2313_v37  ;;  %v2202_v7 = vmul.f32 %v3248_v23, %v3776_v57  ;;  %v2490_v17 = vmul.f32 %v3250_v13, %v3799_v9  ;;  %v3236_v45 = vld [vmem:[%s3765_s29 + $0x348] sm:$0xff]  ;;  %v3237_v12 = vld [vmem:[%s3765_s29 + $0x350] sm:$0xff] }
 0x174   : > { %3280 = vst [vmem:[%s3885_s7 + $0x1d0] sm:$0xff] %v2552_v10  ;;  %v2265_v59 = vadd.f32 %v2249_v14, %v2217_v8  ;;  %v2346_v36 = vmul.f32 %v3249_v39, %v3786_v0  ;;  %v2170_v38 = vadd.f32 %v4506_v28, %v2154_v61  ;;  %v2250_v2 = vmul.f32 %v3264_v24, %v3782_v62  ;;  %v3268_v14 = vld [vmem:[%s3765_s29 + $0x34a] sm:$0xff] }
 0x175   : > { %v2505_v1 = vadd.f32 %v2489_v53, %v2457_v31  ;;  %v2409_v60 = vadd.f32 %v2393_v6, %v2361_v55  ;;  %v2538_v46 = vmul.f32 %v4511_v32, %v3266_v3  ;;  %v2394_v16 = vmul.f32 %v3265_v50, %v3790_v4  ;;  %v3253_v10 = vld [vmem:[%s3765_s29 + $0x351] sm:$0xff] }
 0x176   : > { %v2314_v20 = vadd.f32 %v2298_v11, %v2265_v59  ;;  %v2299_v23 = vmul.f32 %v3234_v44, %v3784_v63  ;;  %v2218_v34 = vadd.f32 %v2202_v7, %v2170_v38  ;;  %v2155_v48 = vmul.f32 %v3233_v35, %v3774_v56  ;;  %v3269_v31 = vld [vmem:[%s3765_s29 + $0x352] sm:$0xff] }
 0x177   : > { %v2553_v40 = vadd.f32 %v2537_v51, %v2505_v1  ;;  %v2458_v21 = vadd.f32 %v2442_v52, %v2409_v60  ;;  %v2443_v15 = vmul.f32 %v3235_v22, %v3792_v5  ;;  %v2347_v24 = vmul.f32 %v3250_v13, %v3786_v0 }
 0x178   : > { %v2362_v27 = vadd.f32 %v2346_v36, %v2314_v20  ;;  %v2203_v41 = vmul.f32 %v3249_v39, %v3776_v57  ;;  %v2266_v43 = vadd.f32 %v2250_v2, %v2218_v34  ;;  %v2171_v19 = vadd.f32 %v4506_v28, %v2155_v48  ;;  %v3267_v57 = vld [vmem:[%s3765_s29 + $0x33a] sm:$0xff] }
 0x179   : > { %3281 = vst [vmem:[%s3885_s7 + $0x1d8] sm:$0xff] %v2553_v40  ;;  %v2506_v29 = vadd.f32 %v2490_v17, %v2458_v21  ;;  %v2251_v30 = vmul.f32 %v3265_v50, %v3782_v62  ;;  %v2491_v56 = vmul.f32 %v3251_v33, %v3799_v9  ;;  %v2395_v35 = vmul.f32 %v3266_v3, %v3790_v4 }
 0x17a   : > { %v2410_v25 = vadd.f32 %v2394_v16, %v2362_v27  ;;  %v2315_v18 = vadd.f32 %v2299_v23, %v2266_v43  ;;  %v2219_v39 = vadd.f32 %v2203_v41, %v2171_v19  ;;  %v2300_v26 = vmul.f32 %v3235_v22, %v3784_v63 }
 0x17b   : > { %v2554_v42 = vadd.f32 %v2538_v46, %v2506_v29  ;;  %v2539_v28 = vmul.f32 %v4511_v32, %v3267_v57  ;;  %v2444_v49 = vmul.f32 %v3236_v45, %v3792_v5  ;;  %v2348_v50 = vmul.f32 %v3251_v33, %v3786_v0 }
 0x17c   : > { %v2459_v47 = vadd.f32 %v2443_v15, %v2410_v25  ;;  %v2363_v62 = vadd.f32 %v2347_v24, %v2315_v18  ;;  %v2267_v53 = vadd.f32 %v2251_v30, %v2219_v39  ;;  %v2492_v63 = vmul.f32 %v3252_v54, %v3799_v9 }
 0x17d   : > { %3282 = vst [vmem:[%s3885_s7 + $0x1e0] sm:$0xff] %v2554_v42  ;;  %v2396_v6 = vmul.f32 %v3267_v57, %v3790_v4  ;;  %v2540_v8 = vmul.f32 %v4511_v32, %v3268_v14  ;;  %v2445_v0 = vmul.f32 %v3237_v12, %v3792_v5  ;;  %v2493_v61 = vmul.f32 %v3253_v10, %v3799_v9 }
 0x17e   : > { %v2507_v58 = vadd.f32 %v2491_v56, %v2459_v47  ;;  %v2411_v51 = vadd.f32 %v2395_v35, %v2363_v62  ;;  %v2316_v37 = vadd.f32 %v2300_v26, %v2267_v53  ;;  %v2541_v17 = vmul.f32 %v4511_v32, %v3269_v31 }
 0x180   : > { %v2555_v44 = vadd.f32 %v2539_v28, %v2507_v58  ;;  %v2460_v52 = vadd.f32 %v2444_v49, %v2411_v51  ;;  %v2364_v11 = vadd.f32 %v2348_v50, %v2316_v37 }
 0x182   : > { %3283 = vst [vmem:[%s3885_s7 + $0x1e8] sm:$0xff] %v2555_v44  ;;  %v2508_v55 = vadd.f32 %v2492_v63, %v2460_v52  ;;  %v2412_v13 = vadd.f32 %v2396_v6, %v2364_v11 }
 0x184   : > { %v2556_v4 = vadd.f32 %v2540_v8, %v2508_v55  ;;  %v2461_v7 = vadd.f32 %v2445_v0, %v2412_v13 }
 0x186   : > { %3284 = vst [vmem:[%s3885_s7 + $0x1f0] sm:$0xff] %v2556_v4  ;;  %v2509_v59 = vadd.f32 %v2493_v61, %v2461_v7 }
 0x188   : > { %v2557_v5 = vadd.f32 %v2541_v17, %v2509_v59 }
 0x18a   : > { %3285 = vst [vmem:[%s3885_s7 + $0x1f8] sm:$0xff] %v2557_v5 }
 0x18b   : > { %3367 = shalt.err (!%p3364_p8)
}
 0x18c   : > { %s3368_s28 = scalar_lea.hbm %s4761_s18, 8192  ;;  %s3372_s4 = scalar_lea.hbm %s4816_s3, 16384 }
 0x18d   : > { %p3369_p11 = scmp.ne.s32.totalorder %s4761_s18, %s3368_s28  ;;  %p3373_p0 = scmp.lt.u32.totalorder %s4761_s18, %s4816_s3 }
 0x18e   : > { %p3374_p1 = scmp.lt.u32.totalorder %s3372_s4, %s3368_s28  ;;  %p3376_p3 = scmp.lt.u32.totalorder %s3368_s28, %s4761_s18 }
 0x18f   : > { %p3370_p12 = pnand %p3369_p11, %p3501_p5 }
 0x190   : > { %p3375_p2 = por %p3374_p1, %p3373_p0 }
 0x191   : > { %p3371_p13 = pneg %p3370_p12 }
 0x192   : > { %p3377_p4 = por %p3376_p3, %p3375_p2 }
 0x194   : > { %p3378_p6 = pnand %p3377_p4, %p3371_p13 }
 0x196   : > { %3381 = shalt.err (!%p3378_p6)
}
 0x197   : > { %s3435_s7 = smov 128   ;;  %s3436_s8 = smov 256  }
 0x198   : > { %s3437_s10 = smov 8  }
 0x199   : > { %3292 = dma.vmem_to_hbm [thread:$0]  (%p3501_p5), %s4763_s9, 8192, %s4761_s18, %s2576_s15, %s3435_s7, %s3436_s8, %s3437_s10  }
 0x19a PF: > { %s2606_s11 = sand.u32 1, %s3412_s12   ;;  %p3295_p7 = pnand %p2701_p10, %p3512_p9 }
 0x19b   : > { %s2607_s19 = scalar_lea.sflag [#allocation5], %s2606_s11 }
 0x19c   : > { %3407 = dma.done.wait (!%p3295_p7), %s2607_s19, 8192  }
 0x19d   : > { %3409 = vsyncadd (!%p3295_p7), %s2607_s19, 4294959104  ;;  %s16_s17 = sadd.s32 1, %s3432_s17   ;;  %s4820_s12 = smov %s3416_s13 }
 0x19e   : > { %p13_p8 = scmp.ge.s32.totalorder %s16_s17, 4   ;;  %s4821_s13 = smov %s3420_s14 }
 0x19f   : > { %s4822_s14 = smov %s3510_s25  ;;  %s4823_s15 = smov %s3428_s16 }
 0x1a0   : > { %s4824_s16 = smov %s4826_s20  ;;  %15 = sbr.rel (!%p13_p8) target bundleno = 4 (0x4), region = 173 }
 0x1a7   :  { %2612 = vsyncpa [#allocation5], 1 }
 0x1a8   :  { %2614 = vsyncpa [#allocation5 + $0x1], 1 }

</bundles_post_ra>
